<compile_context>
chip_gen: v7x
topology: tpu7x:2x2x1
jax: 0.10.0
libtpu: 0.0.40
codegen_flags: <defaults>
</compile_context>

<pallas_src>
import jax
import jax.numpy as jnp
from jax import lax
from jax.experimental import pallas as pl
from jax.experimental.pallas import tpu as pltpu


# Contractions smaller than this use unrolled VPU broadcast-FMA instead of the
# MXU (a 4- or 16-deep contraction fills <=3% of the systolic array).
_MXU_MIN_DIM = 32
_LANE = 128


def _roundup(a, m):
    return -(-a // m) * m


def _pointwise_conv(x3d, w):
    """1x1 conv: x3d (R, W, Cin) @ w (Cin, Cout) -> (R, W, Cout) float32."""
    R, Wd, Cin = x3d.shape
    Cout = w.shape[1]
    if Cin < _MXU_MIN_DIM:
        xf = x3d.astype(jnp.float32)
        wf = w.astype(jnp.float32)
        acc = jnp.zeros((R, Wd, Cout), jnp.float32)
        for c in range(Cin):                      # unrolled broadcast-FMA (VPU)
            acc = acc + xf[:, :, c:c + 1] * wf[c][None, None, :]
        return acc
    out = jnp.dot(x3d.reshape(R * Wd, Cin), w,    # MXU for real MobileNet dims
                  preferred_element_type=jnp.float32)
    return out.reshape(R, Wd, Cout)


def _make_kernel(*, expand, use_shortcut, stride, k, H, W, Wo,
                 tile_ho, rows_in, we, use_cin):
    pad = k // 2
    if stride == 1:
        c_lo, c_hi = pad, pad + W          # interior cols of padded layout
    else:
        c_lo, c_hi = 1, 2 * Wo + 1         # interior cols of [even|odd] layout

    def kernel(*refs):
        if expand:
            (x_ref, w1_ref, b1_ref, wdw_ref, b2_ref, w2_ref, b3_ref, o_ref) = refs
        else:
            (x_ref, wdw_ref, b2_ref, w2_ref, b3_ref, o_ref) = refs

        t = pl.program_id(1)
        row0 = pl.multiple_of(t * (tile_ho * stride), tile_ho * stride)
        xs = x_ref[0, pl.ds(row0, rows_in), :, :]          # (rows_in, Wr, cin_p)
        Wr = xs.shape[1]

        # Real (unpadded) input channels for the compute path.
        xin = xs[:, :, :use_cin] if xs.shape[-1] != use_cin else xs

        # ---- 1x1 expansion (BN scale folded into weights; bias + ReLU here) ----
        if expand:
            h = _pointwise_conv(xin, w1_ref[...])
            h = jnp.maximum(h + b1_ref[0], 0.0)
            # Re-zero the padded border: the depthwise input must be padded with
            # exact zeros, but expanding pre-padded zeros yields relu(bias).
            # (Single fused select; cheap relative to the depthwise loop.)
            col = lax.broadcasted_iota(jnp.int32, (rows_in, Wr, 1), 1)
            row = lax.broadcasted_iota(jnp.int32, (rows_in, Wr, 1), 0) + row0
            interior = ((col >= c_lo) & (col < c_hi) &
                        (row >= pad) & (row < pad + H))
            h = jnp.where(interior, h, 0.0)
        else:
            h = xin.astype(jnp.float32)
        hidden = h.shape[-1]

        # ---- depthwise k x k conv, stride `stride` (VPU + XLU rolls) ----
        # One pltpu.roll per dx (XLU slot, overlaps the VPU work) replaces the
        # previous sublane-unaligned slices; crops below are start-aligned.
        wdw = wdw_ref[...].astype(jnp.float32)             # (k, k, hidden)
        partials = []
        for dx in range(k):
            if stride == 1:
                base = dx
            else:
                base = (dx % 2) * we + dx // 2             # [even|odd] layout
            hx = h if base == 0 else pltpu.roll(h, shift=Wr - base, axis=1)
            hx = hx[:, :Wo, :]                             # start-aligned crop
            p_dx = jnp.zeros((tile_ho, Wo, hidden), jnp.float32)
            for dy in range(k):
                if stride == 1:
                    rows = hx[dy:dy + tile_ho]
                else:
                    rows = hx[dy:dy + stride * tile_ho]
                    rows = rows.reshape(tile_ho, stride, Wo, hidden)[:, 0]
                p_dx = p_dx + rows * wdw[dy, dx][None, None, :]
            partials.append(p_dx)
        acc = partials[0]
        for p_dx in partials[1:]:                          # k short chains, ILP
            acc = acc + p_dx
        h2 = jnp.maximum(acc + b2_ref[0], 0.0)

        # ---- 1x1 projection (BN scale folded), bias, no activation ----
        out = _pointwise_conv(h2, w2_ref[...]) + b3_ref[0]

        if use_shortcut:
            xsc = xs[pad:pad + tile_ho].astype(jnp.float32)
            if pad:
                xsc = pltpu.roll(xsc, shift=Wr - pad, axis=1)
            out = out + xsc[:, :W, :]

        o_ref[0] = out.astype(o_ref.dtype)

    return kernel


def _fold_bn(w, bn, axis, eps=1e-5):
    """Fold BN scale into conv weight `w` along output-channel `axis`."""
    scale = bn["gamma"] / jnp.sqrt(bn["var"] + eps)
    shift = bn["beta"] - bn["mean"] * scale
    shape = [1] * w.ndim
    shape[axis] = -1
    return w * scale.reshape(shape), shift.reshape(1, -1).astype(jnp.float32)


def _largest_divisor_leq(n, cap):
    best = 1
    for d in range(1, min(n, cap) + 1):
        if n % d == 0:
            best = d
    return best


def inverted_residual_nhwc(x, params, *, inp, oup, stride, t, k=3, eps=1e-5,
                           dtype=jnp.float32, tile_h=None):
    """Pallas forward of InvertedResidual. Input/output are NHWC."""
    assert stride in (1, 2)
    expand = (t != 1)
    hidden = round(inp * t)
    use_shortcut = (inp == oup and stride == 1)
    N, H, W, C = x.shape
    assert C == inp
    pad = k // 2
    Ho = (H + 2 * pad - k) // stride + 1
    Wo = (W + 2 * pad - k) // stride + 1
    if stride == 2:
        # TODO(synk): general odd-W / k!=3 stride-2 support.
        assert k == 3 and W % 2 == 0, "stride-2 path assumes k=3 and even W"

    # Lane-dense output: pad the projection output channels to a multiple of
    # 128 so every output store is a full-lane vst; the wrapper strips the pad.
    oup_p = _roundup(oup, _LANE)
    # The shortcut add needs the input to match the padded output lanes.
    cin_p = oup_p if use_shortcut else inp

    # Fold BN scales into conv weights (zero runtime cost, removes 3 VPU muls).
    if expand:
        w1, b1 = _fold_bn(params["w_exp"].astype(jnp.float32), params["bn_exp"], 1, eps)
    wdw, b2 = _fold_bn(params["w_dw"].astype(jnp.float32), params["bn_dw"], 2, eps)
    w2, b3 = _fold_bn(params["w_proj"].astype(jnp.float32), params["bn_proj"], 1, eps)

    if oup_p != oup:
        w2 = jnp.pad(w2, ((0, 0), (0, oup_p - oup)))
        b3 = jnp.pad(b3, ((0, 0), (0, oup_p - oup)))

    use_cin = inp
    if expand and cin_p != inp and inp >= _MXU_MIN_DIM:
        # Big-channel expansion: pad w1's input rows with zeros so the MXU
        # matmul consumes the channel-padded input directly (no lane slice).
        w1 = jnp.pad(w1, ((0, cin_p - inp), (0, 0)))
        use_cin = cin_p

    x = x.astype(dtype)

    # Zero-pad spatially (and channel-pad for the shortcut) once in the wrapper.
    Hp = max(H + 2 * pad, Ho * stride + k - 1)
    xp = jnp.pad(x, ((0, 0), (pad, Hp - H - pad), (pad, pad), (0, cin_p - inp)))
    if stride == 2:
        # De-interleave columns once: [even cols | odd cols]; the kernel then
        # only needs rolls/offsets for the W taps and a leading-dim subsample.
        xp = jnp.concatenate([xp[:, :, 0::2, :], xp[:, :, 1::2, :]], axis=2)
        we = (W + 2 * pad + 1) // 2
    else:
        we = 0
    # Pad width up to a multiple of 8 sublanes (extra zero cols are never read).
    Wr = xp.shape[2]
    Wr8 = _roundup(Wr, 8)
    if Wr8 != Wr:
        xp = jnp.pad(xp, ((0, 0), (0, 0), (0, Wr8 - Wr), (0, 0)))
    Wr = Wr8
    Hp = xp.shape[1]

    itemsize = jnp.dtype(dtype).itemsize

    # ---- generation-aware VMEM budget (v7x: 64 MiB/TC; v5e/v6e: 128 MiB) ----
    try:
        kind = jax.devices()[0].device_kind.lower()
    except Exception:  # pragma: no cover - defensive
        kind = ""
    vmem_cap = (48 << 20) if "7" in kind else (96 << 20)

    # Lane/sublane-padding-aware per-tile VMEM estimate.
    hid_l = _roundup(hidden, _LANE)
    cin_l = _roundup(cin_p, _LANE)
    oup_l = _roundup(oup_p, _LANE)
    Wo8 = _roundup(Wo, 8)

    fixed = 2 * Hp * Wr * cin_l * itemsize                 # resident x, dbl-buf
    wbytes = k * 8 * hid_l * 4 + 8 * hid_l * 4             # wdw + b2 (f32)
    wbytes += _roundup(hidden, 8) * oup_l * itemsize + 8 * oup_l * 4   # w2 + b3
    if expand:
        wbytes += _roundup(use_cin, 8) * hid_l * itemsize + 8 * hid_l * 4
    fixed += 2 * wbytes                                    # pipeline dbl-buffers

    def tile_bytes(th):
        rows = stride * th + (k - 1)
        b = 3 * rows * Wr * hid_l * 4          # expanded h + roll/crop temps
        b += rows * Wr * cin_l * 4             # xs as f32 (shortcut / t==1)
        b += (k + 1) * th * Wo8 * hid_l * 4    # depthwise partials + h2
        b += 2 * th * Wo8 * oup_l * 4          # projection out (+ store temp)
        b += 2 * th * Wo8 * oup_l * itemsize   # double-buffered output tile
        return b

    if tile_h is None:
        budget = int(vmem_cap * 0.6)           # headroom for compiler scratch
        cap_h = Ho
        if N == 1 and Ho > 1:
            cap_h = max(1, Ho // 2)            # keep >=2 grid steps (v7x TCs)
        best = 1
        for cand in range(1, cap_h + 1):
            if Ho % cand == 0 and fixed + tile_bytes(cand) <= budget:
                best = cand
        tile_h = best
    tile_h = _largest_divisor_leq(Ho, tile_h)
    n_tiles = Ho // tile_h
    rows_in = stride * tile_h + (k - 1)

    def const_spec(a):
        nd = a.ndim
        return pl.BlockSpec(a.shape, lambda n, tt: (0,) * nd)

    args = [xp]
    in_specs = [pl.BlockSpec((1, Hp, Wr, cin_p), lambda n, tt: (n, 0, 0, 0))]
    if expand:
        w1c = w1.astype(dtype)
        args += [w1c, b1]
        in_specs += [const_spec(w1c), const_spec(b1)]
    w2c = w2.astype(dtype)
    args += [wdw, b2, w2c, b3]
    in_specs += [const_spec(wdw), const_spec(b2), const_spec(w2c), const_spec(b3)]

    kernel = _make_kernel(expand=expand, use_shortcut=use_shortcut,
                          stride=stride, k=k, H=H, W=W, Wo=Wo,
                          tile_ho=tile_h, rows_in=rows_in, we=we,
                          use_cin=use_cin)

    out = pl.pallas_call(
        kernel,
        out_shape=jax.ShapeDtypeStruct((N, Ho, Wo, oup_p), dtype),
        grid=(N, n_tiles),
        in_specs=in_specs,
        out_specs=pl.BlockSpec((1, tile_h, Wo, oup_p), lambda n, tt: (n, tt, 0, 0)),
        compiler_params=pltpu.CompilerParams(
            dimension_semantics=("parallel", "parallel"),
            vmem_limit_bytes=vmem_cap,
        ),
    )(*args)
    # Strip the lane padding (free-ish XLA slice, fuses with downstream ops).
    return out[..., :oup]


def inverted_residual(x_nchw, params, **kw):
    """NCHW adapter. When chaining blocks, call inverted_residual_nhwc directly
    and keep activations NHWC end-to-end (avoids per-block HBM transposes)."""
    x = jnp.transpose(x_nchw, (0, 2, 3, 1))
    out = inverted_residual_nhwc(x, params, **kw)
    return jnp.transpose(out, (0, 3, 1, 2))


def reference(x_nchw, params, *, inp, oup, stride, t, k=3, eps=1e-5):
    """Pure-JAX reference matching the PyTorch forward (inference-mode BN)."""
    hidden = round(inp * t)
    expand = (t != 1)
    use_shortcut = (inp == oup and stride == 1)
    x = jnp.transpose(x_nchw, (0, 2, 3, 1)).astype(jnp.float32)

    def bn(h, p):
        scale = p["gamma"] / jnp.sqrt(p["var"] + eps)
        return h * scale + (p["beta"] - p["mean"] * scale)

    h = x
    if expand:
        h = jnp.einsum("nhwc,cd->nhwd", h, params["w_exp"].astype(jnp.float32))
        h = jax.nn.relu(bn(h, params["bn_exp"]))
    pad = k // 2
    h = lax.conv_general_dilated(
        h, params["w_dw"].astype(jnp.float32).reshape(k, k, 1, hidden),
        window_strides=(stride, stride), padding=((pad, pad), (pad, pad)),
        dimension_numbers=("NHWC", "HWIO", "NHWC"), feature_group_count=hidden)
    h = jax.nn.relu(bn(h, params["bn_dw"]))
    h = jnp.einsum("nhwc,cd->nhwd", h, params["w_proj"].astype(jnp.float32))
    h = bn(h, params["bn_proj"])
    if use_shortcut:
        h = h + x
    return jnp.transpose(h, (0, 3, 1, 2))


if __name__ == "__main__":
    def make_params(key, inp, oup, t, k):
        hidden = round(inp * t)
        ks = jax.random.split(key, 6)

        def bn_params(kk, c):
            k0, k1, k2, k3 = jax.random.split(kk, 4)
            return {
                "gamma": 1.0 + 0.1 * jax.random.normal(k0, (c,), jnp.float32),
                "beta": 0.1 * jax.random.normal(k1, (c,), jnp.float32),
                "mean": 0.1 * jax.random.normal(k2, (c,), jnp.float32),
                "var": 1.0 + 0.1 * jnp.abs(jax.random.normal(k3, (c,), jnp.float32)),
            }

        # PyTorch conv weights are (out, in, kh, kw); stored here pre-transposed.
        p = {"w_dw": 0.2 * jax.random.normal(ks[2], (k, k, hidden), jnp.float32),
             "bn_dw": bn_params(ks[3], hidden),
             "w_proj": 0.2 * jax.random.normal(ks[4], (hidden, oup), jnp.float32),
             "bn_proj": bn_params(ks[5], oup)}
        if t != 1:
            p["w_exp"] = 0.2 * jax.random.normal(ks[0], (inp, hidden), jnp.float32)
            p["bn_exp"] = bn_params(ks[1], hidden)
        return p

    root = jax.random.PRNGKey(0)
    configs = [
        # original config: expand + shortcut, stride 1, 2 row tiles
        dict(inp=4, oup=4, stride=1, t=4, k=3, N=2, H=16, W=16,
             tile_h=8, dtype=jnp.float32, tol=1e-4),
        # stride-2 path
        dict(inp=4, oup=8, stride=2, t=4, k=3, N=2, H=16, W=16,
             tile_h=4, dtype=jnp.float32, tol=1e-4),
        # t=1 path: no expansion, with shortcut, auto tile (N=1 -> >=2 tiles)
        dict(inp=8, oup=8, stride=1, t=1, k=3, N=1, H=16, W=16,
             tile_h=None, dtype=jnp.float32, tol=1e-4),
        # bf16 storage / DMA variant (f32 accumulation in-kernel)
        dict(inp=4, oup=4, stride=1, t=4, k=3, N=2, H=16, W=16,
             tile_h=8, dtype=jnp.bfloat16, tol=5e-2),
    ]

    for i, cfg in enumerate(configs):
        kp, kx = jax.random.split(jax.random.fold_in(root, i))
        params = make_params(kp, cfg["inp"], cfg["oup"], cfg["t"], cfg["k"])
        x = jax.random.normal(kx, (cfg["N"], cfg["inp"], cfg["H"], cfg["W"]),
                              jnp.float32)

        out = inverted_residual(x, params, inp=cfg["inp"], oup=cfg["oup"],
                                stride=cfg["stride"], t=cfg["t"], k=cfg["k"],
                                dtype=cfg["dtype"], tile_h=cfg["tile_h"])
        out = jax.block_until_ready(out).astype(jnp.float32)

        ref = reference(x, params, inp=cfg["inp"], oup=cfg["oup"],
                        stride=cfg["stride"], t=cfg["t"], k=cfg["k"])

        pad = cfg["k"] // 2
        Ho = (cfg["H"] + 2 * pad - cfg["k"]) // cfg["stride"] + 1
        Wo = (cfg["W"] + 2 * pad - cfg["k"]) // cfg["stride"] + 1
        assert out.shape == (cfg["N"], cfg["oup"], Ho, Wo), out.shape
        max_err = float(jnp.max(jnp.abs(out - ref)))
        assert jnp.allclose(out, ref, rtol=cfg["tol"], atol=cfg["tol"]), \
            f"config {i}: max_err={max_err}"

    print("KERNEL_OK")
</pallas_src>

<mosaic_0001>
module attributes {stable_mosaic.version = 11 : i64} {
  func.func @kernel(%arg0: i32, %arg1: i32, %arg2: memref<1x18x24x128xf32, #tpu.memory_space<vmem>>, %arg3: memref<4x16xf32, #tpu.memory_space<vmem>>, %arg4: memref<1x16xf32, #tpu.memory_space<vmem>>, %arg5: memref<3x3x16xf32, #tpu.memory_space<vmem>>, %arg6: memref<1x16xf32, #tpu.memory_space<vmem>>, %arg7: memref<16x128xf32, #tpu.memory_space<vmem>>, %arg8: memref<1x128xf32, #tpu.memory_space<vmem>>, %arg9: memref<1x8x16x128xf32, #tpu.memory_space<vmem>>) attributes {dimension_semantics = [#tpu.dimension_semantics<parallel>, #tpu.dimension_semantics<parallel>], iteration_bounds = array<i64: 2, 2>, scalar_prefetch = 0 : i64, scratch_operands = 0 : i64, tpu.core_type = #tpu.core_type<tc>, window_params = [{transform_indices = @transform_0, window_bounds = array<i64: 1, 18, 24, 128>}, {pipeline_mode = #tpu.pipeline_mode<synchronous>, transform_indices = @transform_1, window_bounds = array<i64: 4, 16>}, {pipeline_mode = #tpu.pipeline_mode<synchronous>, transform_indices = @transform_2, window_bounds = array<i64: 1, 16>}, {pipeline_mode = #tpu.pipeline_mode<synchronous>, transform_indices = @transform_3, window_bounds = array<i64: 3, 3, 16>}, {pipeline_mode = #tpu.pipeline_mode<synchronous>, transform_indices = @transform_4, window_bounds = array<i64: 1, 16>}, {pipeline_mode = #tpu.pipeline_mode<synchronous>, transform_indices = @transform_5, window_bounds = array<i64: 16, 128>}, {pipeline_mode = #tpu.pipeline_mode<synchronous>, transform_indices = @transform_6, window_bounds = array<i64: 1, 128>}, {transform_indices = @transform_7, window_bounds = array<i64: 1, 8, 16, 128>}]} {
    %c8_i32 = arith.constant 8 : i32
    %0 = arith.muli %arg1, %c8_i32 : i32
    %1 = tpu.assume_multiple %0, 8 : i32
    %c0 = arith.constant 0 : index
    %2 = arith.index_cast %1 : i32 to index
    %c0_0 = arith.constant 0 : index
    %c0_1 = arith.constant 0 : index
    %3 = vector.load %arg2[%c0, %2, %c0_0, %c0_1] : memref<1x18x24x128xf32, #tpu.memory_space<vmem>>, vector<1x10x24x128xf32>
    %4 = vector.shape_cast %3 : vector<1x10x24x128xf32> to vector<10x24x128xf32>
    %5 = vector.extract_strided_slice %4 {offsets = [0, 0, 0], sizes = [10, 24, 4], strides = [1, 1, 1]} : vector<10x24x128xf32> to vector<10x24x4xf32>
    %c0_2 = arith.constant 0 : index
    %c0_3 = arith.constant 0 : index
    %6 = vector.load %arg3[%c0_2, %c0_3] : memref<4x16xf32, #tpu.memory_space<vmem>>, vector<4x16xf32>
    %cst = arith.constant 0.000000e+00 : f32
    %7 = vector.broadcast %cst : f32 to vector<10x24x16xf32>
    %8 = vector.extract_strided_slice %5 {offsets = [0, 0, 0], sizes = [10, 24, 1], strides = [1, 1, 1]} : vector<10x24x4xf32> to vector<10x24x1xf32>
    %9 = vector.extract_strided_slice %6 {offsets = [0, 0], sizes = [1, 16], strides = [1, 1]} : vector<4x16xf32> to vector<1x16xf32>
    %10 = vector.shape_cast %9 : vector<1x16xf32> to vector<16xf32>
    %11 = vector.shape_cast %10 : vector<16xf32> to vector<1x1x16xf32>
    %12 = vector.broadcast %8 : vector<10x24x1xf32> to vector<10x24x16xf32>
    %13 = vector.broadcast %11 : vector<1x1x16xf32> to vector<10x24x16xf32>
    %14 = arith.mulf %12, %13 : vector<10x24x16xf32>
    %15 = arith.addf %7, %14 : vector<10x24x16xf32>
    %16 = vector.extract_strided_slice %5 {offsets = [0, 0, 1], sizes = [10, 24, 1], strides = [1, 1, 1]} : vector<10x24x4xf32> to vector<10x24x1xf32>
    %17 = vector.extract_strided_slice %6 {offsets = [1, 0], sizes = [1, 16], strides = [1, 1]} : vector<4x16xf32> to vector<1x16xf32>
    %18 = vector.shape_cast %17 : vector<1x16xf32> to vector<16xf32>
    %19 = vector.shape_cast %18 : vector<16xf32> to vector<1x1x16xf32>
    %20 = vector.broadcast %16 : vector<10x24x1xf32> to vector<10x24x16xf32>
    %21 = vector.broadcast %19 : vector<1x1x16xf32> to vector<10x24x16xf32>
    %22 = arith.mulf %20, %21 : vector<10x24x16xf32>
    %23 = arith.addf %15, %22 : vector<10x24x16xf32>
    %24 = vector.extract_strided_slice %5 {offsets = [0, 0, 2], sizes = [10, 24, 1], strides = [1, 1, 1]} : vector<10x24x4xf32> to vector<10x24x1xf32>
    %25 = vector.extract_strided_slice %6 {offsets = [2, 0], sizes = [1, 16], strides = [1, 1]} : vector<4x16xf32> to vector<1x16xf32>
    %26 = vector.shape_cast %25 : vector<1x16xf32> to vector<16xf32>
    %27 = vector.shape_cast %26 : vector<16xf32> to vector<1x1x16xf32>
    %28 = vector.broadcast %24 : vector<10x24x1xf32> to vector<10x24x16xf32>
    %29 = vector.broadcast %27 : vector<1x1x16xf32> to vector<10x24x16xf32>
    %30 = arith.mulf %28, %29 : vector<10x24x16xf32>
    %31 = arith.addf %23, %30 : vector<10x24x16xf32>
    %32 = vector.extract_strided_slice %5 {offsets = [0, 0, 3], sizes = [10, 24, 1], strides = [1, 1, 1]} : vector<10x24x4xf32> to vector<10x24x1xf32>
    %33 = vector.extract_strided_slice %6 {offsets = [3, 0], sizes = [1, 16], strides = [1, 1]} : vector<4x16xf32> to vector<1x16xf32>
    %34 = vector.shape_cast %33 : vector<1x16xf32> to vector<16xf32>
    %35 = vector.shape_cast %34 : vector<16xf32> to vector<1x1x16xf32>
    %36 = vector.broadcast %32 : vector<10x24x1xf32> to vector<10x24x16xf32>
    %37 = vector.broadcast %35 : vector<1x1x16xf32> to vector<10x24x16xf32>
    %38 = arith.mulf %36, %37 : vector<10x24x16xf32>
    %39 = arith.addf %31, %38 : vector<10x24x16xf32>
    %c0_4 = arith.constant 0 : index
    %c0_5 = arith.constant 0 : index
    %40 = vector.load %arg4[%c0_4, %c0_5] : memref<1x16xf32, #tpu.memory_space<vmem>>, vector<1x16xf32>
    %41 = vector.shape_cast %40 : vector<1x16xf32> to vector<16xf32>
    %42 = vector.shape_cast %41 : vector<16xf32> to vector<1x1x16xf32>
    %43 = vector.broadcast %42 : vector<1x1x16xf32> to vector<10x24x16xf32>
    %44 = arith.addf %39, %43 : vector<10x24x16xf32>
    %cst_6 = arith.constant 0.000000e+00 : f32
    %45 = vector.broadcast %cst_6 : f32 to vector<10x24x16xf32>
    %46 = arith.maximumf %44, %45 : vector<10x24x16xf32>
    %47 = tpu.iota {dimensions = array<i32: 1>} : vector<10x24x1xi32>
    %48 = tpu.iota {dimensions = array<i32: 0>} : vector<10x24x1xi32>
    %49 = vector.broadcast %1 : i32 to vector<10x24x1xi32>
    %50 = arith.addi %48, %49 : vector<10x24x1xi32>
    %c1_i32 = arith.constant 1 : i32
    %51 = vector.broadcast %c1_i32 : i32 to vector<10x24x1xi32>
    %52 = arith.cmpi sge, %47, %51 : vector<10x24x1xi32>
    %c17_i32 = arith.constant 17 : i32
    %53 = vector.broadcast %c17_i32 : i32 to vector<10x24x1xi32>
    %54 = arith.cmpi slt, %47, %53 : vector<10x24x1xi32>
    %55 = arith.andi %52, %54 : vector<10x24x1xi1>
    %c1_i32_7 = arith.constant 1 : i32
    %56 = vector.broadcast %c1_i32_7 : i32 to vector<10x24x1xi32>
    %57 = arith.cmpi sge, %50, %56 : vector<10x24x1xi32>
    %58 = arith.andi %55, %57 : vector<10x24x1xi1>
    %c17_i32_8 = arith.constant 17 : i32
    %59 = vector.broadcast %c17_i32_8 : i32 to vector<10x24x1xi32>
    %60 = arith.cmpi slt, %50, %59 : vector<10x24x1xi32>
    %61 = arith.andi %58, %60 : vector<10x24x1xi1>
    %cst_9 = arith.constant 0.000000e+00 : f32
    %62 = vector.shape_cast %61 : vector<10x24x1xi1> to vector<10x24x1xi1>
    %63 = vector.broadcast %62 : vector<10x24x1xi1> to vector<10x24x16xi1>
    %64 = vector.broadcast %cst_9 : f32 to vector<10x24x16xf32>
    %65 = arith.select %63, %46, %64 : vector<10x24x16xi1>, vector<10x24x16xf32>
    %c0_10 = arith.constant 0 : index
    %c0_11 = arith.constant 0 : index
    %c0_12 = arith.constant 0 : index
    %66 = vector.load %arg5[%c0_10, %c0_11, %c0_12] : memref<3x3x16xf32, #tpu.memory_space<vmem>>, vector<3x3x16xf32>
    %67 = vector.extract_strided_slice %65 {offsets = [0, 0, 0], sizes = [10, 16, 16], strides = [1, 1, 1]} : vector<10x24x16xf32> to vector<10x16x16xf32>
    %cst_13 = arith.constant 0.000000e+00 : f32
    %68 = vector.broadcast %cst_13 : f32 to vector<8x16x16xf32>
    %69 = vector.extract_strided_slice %67 {offsets = [0, 0, 0], sizes = [8, 16, 16], strides = [1, 1, 1]} : vector<10x16x16xf32> to vector<8x16x16xf32>
    %70 = vector.extract_strided_slice %66 {offsets = [0, 0, 0], sizes = [1, 1, 16], strides = [1, 1, 1]} : vector<3x3x16xf32> to vector<1x1x16xf32>
    %71 = vector.shape_cast %70 : vector<1x1x16xf32> to vector<16xf32>
    %72 = vector.shape_cast %71 : vector<16xf32> to vector<1x1x16xf32>
    %73 = vector.broadcast %72 : vector<1x1x16xf32> to vector<8x16x16xf32>
    %74 = arith.mulf %69, %73 : vector<8x16x16xf32>
    %75 = arith.addf %68, %74 : vector<8x16x16xf32>
    %76 = vector.extract_strided_slice %67 {offsets = [1, 0, 0], sizes = [8, 16, 16], strides = [1, 1, 1]} : vector<10x16x16xf32> to vector<8x16x16xf32>
    %77 = vector.extract_strided_slice %66 {offsets = [1, 0, 0], sizes = [1, 1, 16], strides = [1, 1, 1]} : vector<3x3x16xf32> to vector<1x1x16xf32>
    %78 = vector.shape_cast %77 : vector<1x1x16xf32> to vector<16xf32>
    %79 = vector.shape_cast %78 : vector<16xf32> to vector<1x1x16xf32>
    %80 = vector.broadcast %79 : vector<1x1x16xf32> to vector<8x16x16xf32>
    %81 = arith.mulf %76, %80 : vector<8x16x16xf32>
    %82 = arith.addf %75, %81 : vector<8x16x16xf32>
    %83 = vector.extract_strided_slice %67 {offsets = [2, 0, 0], sizes = [8, 16, 16], strides = [1, 1, 1]} : vector<10x16x16xf32> to vector<8x16x16xf32>
    %84 = vector.extract_strided_slice %66 {offsets = [2, 0, 0], sizes = [1, 1, 16], strides = [1, 1, 1]} : vector<3x3x16xf32> to vector<1x1x16xf32>
    %85 = vector.shape_cast %84 : vector<1x1x16xf32> to vector<16xf32>
    %86 = vector.shape_cast %85 : vector<16xf32> to vector<1x1x16xf32>
    %87 = vector.broadcast %86 : vector<1x1x16xf32> to vector<8x16x16xf32>
    %88 = arith.mulf %83, %87 : vector<8x16x16xf32>
    %89 = arith.addf %82, %88 : vector<8x16x16xf32>
    %c23_i32 = arith.constant 23 : i32
    %90 = tpu.dynamic_rotate %65 by %c23_i32 dim 1 : vector<10x24x16xf32>, i32 -> vector<10x24x16xf32>
    %91 = vector.extract_strided_slice %90 {offsets = [0, 0, 0], sizes = [10, 16, 16], strides = [1, 1, 1]} : vector<10x24x16xf32> to vector<10x16x16xf32>
    %cst_14 = arith.constant 0.000000e+00 : f32
    %92 = vector.broadcast %cst_14 : f32 to vector<8x16x16xf32>
    %93 = vector.extract_strided_slice %91 {offsets = [0, 0, 0], sizes = [8, 16, 16], strides = [1, 1, 1]} : vector<10x16x16xf32> to vector<8x16x16xf32>
    %94 = vector.extract_strided_slice %66 {offsets = [0, 1, 0], sizes = [1, 1, 16], strides = [1, 1, 1]} : vector<3x3x16xf32> to vector<1x1x16xf32>
    %95 = vector.shape_cast %94 : vector<1x1x16xf32> to vector<16xf32>
    %96 = vector.shape_cast %95 : vector<16xf32> to vector<1x1x16xf32>
    %97 = vector.broadcast %96 : vector<1x1x16xf32> to vector<8x16x16xf32>
    %98 = arith.mulf %93, %97 : vector<8x16x16xf32>
    %99 = arith.addf %92, %98 : vector<8x16x16xf32>
    %100 = vector.extract_strided_slice %91 {offsets = [1, 0, 0], sizes = [8, 16, 16], strides = [1, 1, 1]} : vector<10x16x16xf32> to vector<8x16x16xf32>
    %101 = vector.extract_strided_slice %66 {offsets = [1, 1, 0], sizes = [1, 1, 16], strides = [1, 1, 1]} : vector<3x3x16xf32> to vector<1x1x16xf32>
    %102 = vector.shape_cast %101 : vector<1x1x16xf32> to vector<16xf32>
    %103 = vector.shape_cast %102 : vector<16xf32> to vector<1x1x16xf32>
    %104 = vector.broadcast %103 : vector<1x1x16xf32> to vector<8x16x16xf32>
    %105 = arith.mulf %100, %104 : vector<8x16x16xf32>
    %106 = arith.addf %99, %105 : vector<8x16x16xf32>
    %107 = vector.extract_strided_slice %91 {offsets = [2, 0, 0], sizes = [8, 16, 16], strides = [1, 1, 1]} : vector<10x16x16xf32> to vector<8x16x16xf32>
    %108 = vector.extract_strided_slice %66 {offsets = [2, 1, 0], sizes = [1, 1, 16], strides = [1, 1, 1]} : vector<3x3x16xf32> to vector<1x1x16xf32>
    %109 = vector.shape_cast %108 : vector<1x1x16xf32> to vector<16xf32>
    %110 = vector.shape_cast %109 : vector<16xf32> to vector<1x1x16xf32>
    %111 = vector.broadcast %110 : vector<1x1x16xf32> to vector<8x16x16xf32>
    %112 = arith.mulf %107, %111 : vector<8x16x16xf32>
    %113 = arith.addf %106, %112 : vector<8x16x16xf32>
    %c22_i32 = arith.constant 22 : i32
    %114 = tpu.dynamic_rotate %65 by %c22_i32 dim 1 : vector<10x24x16xf32>, i32 -> vector<10x24x16xf32>
    %115 = vector.extract_strided_slice %114 {offsets = [0, 0, 0], sizes = [10, 16, 16], strides = [1, 1, 1]} : vector<10x24x16xf32> to vector<10x16x16xf32>
    %cst_15 = arith.constant 0.000000e+00 : f32
    %116 = vector.broadcast %cst_15 : f32 to vector<8x16x16xf32>
    %117 = vector.extract_strided_slice %115 {offsets = [0, 0, 0], sizes = [8, 16, 16], strides = [1, 1, 1]} : vector<10x16x16xf32> to vector<8x16x16xf32>
    %118 = vector.extract_strided_slice %66 {offsets = [0, 2, 0], sizes = [1, 1, 16], strides = [1, 1, 1]} : vector<3x3x16xf32> to vector<1x1x16xf32>
    %119 = vector.shape_cast %118 : vector<1x1x16xf32> to vector<16xf32>
    %120 = vector.shape_cast %119 : vector<16xf32> to vector<1x1x16xf32>
    %121 = vector.broadcast %120 : vector<1x1x16xf32> to vector<8x16x16xf32>
    %122 = arith.mulf %117, %121 : vector<8x16x16xf32>
    %123 = arith.addf %116, %122 : vector<8x16x16xf32>
    %124 = vector.extract_strided_slice %115 {offsets = [1, 0, 0], sizes = [8, 16, 16], strides = [1, 1, 1]} : vector<10x16x16xf32> to vector<8x16x16xf32>
    %125 = vector.extract_strided_slice %66 {offsets = [1, 2, 0], sizes = [1, 1, 16], strides = [1, 1, 1]} : vector<3x3x16xf32> to vector<1x1x16xf32>
    %126 = vector.shape_cast %125 : vector<1x1x16xf32> to vector<16xf32>
    %127 = vector.shape_cast %126 : vector<16xf32> to vector<1x1x16xf32>
    %128 = vector.broadcast %127 : vector<1x1x16xf32> to vector<8x16x16xf32>
    %129 = arith.mulf %124, %128 : vector<8x16x16xf32>
    %130 = arith.addf %123, %129 : vector<8x16x16xf32>
    %131 = vector.extract_strided_slice %115 {offsets = [2, 0, 0], sizes = [8, 16, 16], strides = [1, 1, 1]} : vector<10x16x16xf32> to vector<8x16x16xf32>
    %132 = vector.extract_strided_slice %66 {offsets = [2, 2, 0], sizes = [1, 1, 16], strides = [1, 1, 1]} : vector<3x3x16xf32> to vector<1x1x16xf32>
    %133 = vector.shape_cast %132 : vector<1x1x16xf32> to vector<16xf32>
    %134 = vector.shape_cast %133 : vector<16xf32> to vector<1x1x16xf32>
    %135 = vector.broadcast %134 : vector<1x1x16xf32> to vector<8x16x16xf32>
    %136 = arith.mulf %131, %135 : vector<8x16x16xf32>
    %137 = arith.addf %130, %136 : vector<8x16x16xf32>
    %138 = arith.addf %89, %113 : vector<8x16x16xf32>
    %139 = arith.addf %138, %137 : vector<8x16x16xf32>
    %c0_16 = arith.constant 0 : index
    %c0_17 = arith.constant 0 : index
    %140 = vector.load %arg6[%c0_16, %c0_17] : memref<1x16xf32, #tpu.memory_space<vmem>>, vector<1x16xf32>
    %141 = vector.shape_cast %140 : vector<1x16xf32> to vector<16xf32>
    %142 = vector.shape_cast %141 : vector<16xf32> to vector<1x1x16xf32>
    %143 = vector.broadcast %142 : vector<1x1x16xf32> to vector<8x16x16xf32>
    %144 = arith.addf %139, %143 : vector<8x16x16xf32>
    %cst_18 = arith.constant 0.000000e+00 : f32
    %145 = vector.broadcast %cst_18 : f32 to vector<8x16x16xf32>
    %146 = arith.maximumf %144, %145 : vector<8x16x16xf32>
    %c0_19 = arith.constant 0 : index
    %c0_20 = arith.constant 0 : index
    %147 = vector.load %arg7[%c0_19, %c0_20] : memref<16x128xf32, #tpu.memory_space<vmem>>, vector<16x128xf32>
    %cst_21 = arith.constant 0.000000e+00 : f32
    %148 = vector.broadcast %cst_21 : f32 to vector<8x16x128xf32>
    %149 = vector.extract_strided_slice %146 {offsets = [0, 0, 0], sizes = [8, 16, 1], strides = [1, 1, 1]} : vector<8x16x16xf32> to vector<8x16x1xf32>
    %150 = vector.extract_strided_slice %147 {offsets = [0, 0], sizes = [1, 128], strides = [1, 1]} : vector<16x128xf32> to vector<1x128xf32>
    %151 = vector.shape_cast %150 : vector<1x128xf32> to vector<128xf32>
    %152 = vector.shape_cast %151 : vector<128xf32> to vector<1x1x128xf32>
    %153 = vector.broadcast %149 : vector<8x16x1xf32> to vector<8x16x128xf32>
    %154 = vector.broadcast %152 : vector<1x1x128xf32> to vector<8x16x128xf32>
    %155 = arith.mulf %153, %154 : vector<8x16x128xf32>
    %156 = arith.addf %148, %155 : vector<8x16x128xf32>
    %157 = vector.extract_strided_slice %146 {offsets = [0, 0, 1], sizes = [8, 16, 1], strides = [1, 1, 1]} : vector<8x16x16xf32> to vector<8x16x1xf32>
    %158 = vector.extract_strided_slice %147 {offsets = [1, 0], sizes = [1, 128], strides = [1, 1]} : vector<16x128xf32> to vector<1x128xf32>
    %159 = vector.shape_cast %158 : vector<1x128xf32> to vector<128xf32>
    %160 = vector.shape_cast %159 : vector<128xf32> to vector<1x1x128xf32>
    %161 = vector.broadcast %157 : vector<8x16x1xf32> to vector<8x16x128xf32>
    %162 = vector.broadcast %160 : vector<1x1x128xf32> to vector<8x16x128xf32>
    %163 = arith.mulf %161, %162 : vector<8x16x128xf32>
    %164 = arith.addf %156, %163 : vector<8x16x128xf32>
    %165 = vector.extract_strided_slice %146 {offsets = [0, 0, 2], sizes = [8, 16, 1], strides = [1, 1, 1]} : vector<8x16x16xf32> to vector<8x16x1xf32>
    %166 = vector.extract_strided_slice %147 {offsets = [2, 0], sizes = [1, 128], strides = [1, 1]} : vector<16x128xf32> to vector<1x128xf32>
    %167 = vector.shape_cast %166 : vector<1x128xf32> to vector<128xf32>
    %168 = vector.shape_cast %167 : vector<128xf32> to vector<1x1x128xf32>
    %169 = vector.broadcast %165 : vector<8x16x1xf32> to vector<8x16x128xf32>
    %170 = vector.broadcast %168 : vector<1x1x128xf32> to vector<8x16x128xf32>
    %171 = arith.mulf %169, %170 : vector<8x16x128xf32>
    %172 = arith.addf %164, %171 : vector<8x16x128xf32>
    %173 = vector.extract_strided_slice %146 {offsets = [0, 0, 3], sizes = [8, 16, 1], strides = [1, 1, 1]} : vector<8x16x16xf32> to vector<8x16x1xf32>
    %174 = vector.extract_strided_slice %147 {offsets = [3, 0], sizes = [1, 128], strides = [1, 1]} : vector<16x128xf32> to vector<1x128xf32>
    %175 = vector.shape_cast %174 : vector<1x128xf32> to vector<128xf32>
    %176 = vector.shape_cast %175 : vector<128xf32> to vector<1x1x128xf32>
    %177 = vector.broadcast %173 : vector<8x16x1xf32> to vector<8x16x128xf32>
    %178 = vector.broadcast %176 : vector<1x1x128xf32> to vector<8x16x128xf32>
    %179 = arith.mulf %177, %178 : vector<8x16x128xf32>
    %180 = arith.addf %172, %179 : vector<8x16x128xf32>
    %181 = vector.extract_strided_slice %146 {offsets = [0, 0, 4], sizes = [8, 16, 1], strides = [1, 1, 1]} : vector<8x16x16xf32> to vector<8x16x1xf32>
    %182 = vector.extract_strided_slice %147 {offsets = [4, 0], sizes = [1, 128], strides = [1, 1]} : vector<16x128xf32> to vector<1x128xf32>
    %183 = vector.shape_cast %182 : vector<1x128xf32> to vector<128xf32>
    %184 = vector.shape_cast %183 : vector<128xf32> to vector<1x1x128xf32>
    %185 = vector.broadcast %181 : vector<8x16x1xf32> to vector<8x16x128xf32>
    %186 = vector.broadcast %184 : vector<1x1x128xf32> to vector<8x16x128xf32>
    %187 = arith.mulf %185, %186 : vector<8x16x128xf32>
    %188 = arith.addf %180, %187 : vector<8x16x128xf32>
    %189 = vector.extract_strided_slice %146 {offsets = [0, 0, 5], sizes = [8, 16, 1], strides = [1, 1, 1]} : vector<8x16x16xf32> to vector<8x16x1xf32>
    %190 = vector.extract_strided_slice %147 {offsets = [5, 0], sizes = [1, 128], strides = [1, 1]} : vector<16x128xf32> to vector<1x128xf32>
    %191 = vector.shape_cast %190 : vector<1x128xf32> to vector<128xf32>
    %192 = vector.shape_cast %191 : vector<128xf32> to vector<1x1x128xf32>
    %193 = vector.broadcast %189 : vector<8x16x1xf32> to vector<8x16x128xf32>
    %194 = vector.broadcast %192 : vector<1x1x128xf32> to vector<8x16x128xf32>
    %195 = arith.mulf %193, %194 : vector<8x16x128xf32>
    %196 = arith.addf %188, %195 : vector<8x16x128xf32>
    %197 = vector.extract_strided_slice %146 {offsets = [0, 0, 6], sizes = [8, 16, 1], strides = [1, 1, 1]} : vector<8x16x16xf32> to vector<8x16x1xf32>
    %198 = vector.extract_strided_slice %147 {offsets = [6, 0], sizes = [1, 128], strides = [1, 1]} : vector<16x128xf32> to vector<1x128xf32>
    %199 = vector.shape_cast %198 : vector<1x128xf32> to vector<128xf32>
    %200 = vector.shape_cast %199 : vector<128xf32> to vector<1x1x128xf32>
    %201 = vector.broadcast %197 : vector<8x16x1xf32> to vector<8x16x128xf32>
    %202 = vector.broadcast %200 : vector<1x1x128xf32> to vector<8x16x128xf32>
    %203 = arith.mulf %201, %202 : vector<8x16x128xf32>
    %204 = arith.addf %196, %203 : vector<8x16x128xf32>
    %205 = vector.extract_strided_slice %146 {offsets = [0, 0, 7], sizes = [8, 16, 1], strides = [1, 1, 1]} : vector<8x16x16xf32> to vector<8x16x1xf32>
    %206 = vector.extract_strided_slice %147 {offsets = [7, 0], sizes = [1, 128], strides = [1, 1]} : vector<16x128xf32> to vector<1x128xf32>
    %207 = vector.shape_cast %206 : vector<1x128xf32> to vector<128xf32>
    %208 = vector.shape_cast %207 : vector<128xf32> to vector<1x1x128xf32>
    %209 = vector.broadcast %205 : vector<8x16x1xf32> to vector<8x16x128xf32>
    %210 = vector.broadcast %208 : vector<1x1x128xf32> to vector<8x16x128xf32>
    %211 = arith.mulf %209, %210 : vector<8x16x128xf32>
    %212 = arith.addf %204, %211 : vector<8x16x128xf32>
    %213 = vector.extract_strided_slice %146 {offsets = [0, 0, 8], sizes = [8, 16, 1], strides = [1, 1, 1]} : vector<8x16x16xf32> to vector<8x16x1xf32>
    %214 = vector.extract_strided_slice %147 {offsets = [8, 0], sizes = [1, 128], strides = [1, 1]} : vector<16x128xf32> to vector<1x128xf32>
    %215 = vector.shape_cast %214 : vector<1x128xf32> to vector<128xf32>
    %216 = vector.shape_cast %215 : vector<128xf32> to vector<1x1x128xf32>
    %217 = vector.broadcast %213 : vector<8x16x1xf32> to vector<8x16x128xf32>
    %218 = vector.broadcast %216 : vector<1x1x128xf32> to vector<8x16x128xf32>
    %219 = arith.mulf %217, %218 : vector<8x16x128xf32>
    %220 = arith.addf %212, %219 : vector<8x16x128xf32>
    %221 = vector.extract_strided_slice %146 {offsets = [0, 0, 9], sizes = [8, 16, 1], strides = [1, 1, 1]} : vector<8x16x16xf32> to vector<8x16x1xf32>
    %222 = vector.extract_strided_slice %147 {offsets = [9, 0], sizes = [1, 128], strides = [1, 1]} : vector<16x128xf32> to vector<1x128xf32>
    %223 = vector.shape_cast %222 : vector<1x128xf32> to vector<128xf32>
    %224 = vector.shape_cast %223 : vector<128xf32> to vector<1x1x128xf32>
    %225 = vector.broadcast %221 : vector<8x16x1xf32> to vector<8x16x128xf32>
    %226 = vector.broadcast %224 : vector<1x1x128xf32> to vector<8x16x128xf32>
    %227 = arith.mulf %225, %226 : vector<8x16x128xf32>
    %228 = arith.addf %220, %227 : vector<8x16x128xf32>
    %229 = vector.extract_strided_slice %146 {offsets = [0, 0, 10], sizes = [8, 16, 1], strides = [1, 1, 1]} : vector<8x16x16xf32> to vector<8x16x1xf32>
    %230 = vector.extract_strided_slice %147 {offsets = [10, 0], sizes = [1, 128], strides = [1, 1]} : vector<16x128xf32> to vector<1x128xf32>
    %231 = vector.shape_cast %230 : vector<1x128xf32> to vector<128xf32>
    %232 = vector.shape_cast %231 : vector<128xf32> to vector<1x1x128xf32>
    %233 = vector.broadcast %229 : vector<8x16x1xf32> to vector<8x16x128xf32>
    %234 = vector.broadcast %232 : vector<1x1x128xf32> to vector<8x16x128xf32>
    %235 = arith.mulf %233, %234 : vector<8x16x128xf32>
    %236 = arith.addf %228, %235 : vector<8x16x128xf32>
    %237 = vector.extract_strided_slice %146 {offsets = [0, 0, 11], sizes = [8, 16, 1], strides = [1, 1, 1]} : vector<8x16x16xf32> to vector<8x16x1xf32>
    %238 = vector.extract_strided_slice %147 {offsets = [11, 0], sizes = [1, 128], strides = [1, 1]} : vector<16x128xf32> to vector<1x128xf32>
    %239 = vector.shape_cast %238 : vector<1x128xf32> to vector<128xf32>
    %240 = vector.shape_cast %239 : vector<128xf32> to vector<1x1x128xf32>
    %241 = vector.broadcast %237 : vector<8x16x1xf32> to vector<8x16x128xf32>
    %242 = vector.broadcast %240 : vector<1x1x128xf32> to vector<8x16x128xf32>
    %243 = arith.mulf %241, %242 : vector<8x16x128xf32>
    %244 = arith.addf %236, %243 : vector<8x16x128xf32>
    %245 = vector.extract_strided_slice %146 {offsets = [0, 0, 12], sizes = [8, 16, 1], strides = [1, 1, 1]} : vector<8x16x16xf32> to vector<8x16x1xf32>
    %246 = vector.extract_strided_slice %147 {offsets = [12, 0], sizes = [1, 128], strides = [1, 1]} : vector<16x128xf32> to vector<1x128xf32>
    %247 = vector.shape_cast %246 : vector<1x128xf32> to vector<128xf32>
    %248 = vector.shape_cast %247 : vector<128xf32> to vector<1x1x128xf32>
    %249 = vector.broadcast %245 : vector<8x16x1xf32> to vector<8x16x128xf32>
    %250 = vector.broadcast %248 : vector<1x1x128xf32> to vector<8x16x128xf32>
    %251 = arith.mulf %249, %250 : vector<8x16x128xf32>
    %252 = arith.addf %244, %251 : vector<8x16x128xf32>
    %253 = vector.extract_strided_slice %146 {offsets = [0, 0, 13], sizes = [8, 16, 1], strides = [1, 1, 1]} : vector<8x16x16xf32> to vector<8x16x1xf32>
    %254 = vector.extract_strided_slice %147 {offsets = [13, 0], sizes = [1, 128], strides = [1, 1]} : vector<16x128xf32> to vector<1x128xf32>
    %255 = vector.shape_cast %254 : vector<1x128xf32> to vector<128xf32>
    %256 = vector.shape_cast %255 : vector<128xf32> to vector<1x1x128xf32>
    %257 = vector.broadcast %253 : vector<8x16x1xf32> to vector<8x16x128xf32>
    %258 = vector.broadcast %256 : vector<1x1x128xf32> to vector<8x16x128xf32>
    %259 = arith.mulf %257, %258 : vector<8x16x128xf32>
    %260 = arith.addf %252, %259 : vector<8x16x128xf32>
    %261 = vector.extract_strided_slice %146 {offsets = [0, 0, 14], sizes = [8, 16, 1], strides = [1, 1, 1]} : vector<8x16x16xf32> to vector<8x16x1xf32>
    %262 = vector.extract_strided_slice %147 {offsets = [14, 0], sizes = [1, 128], strides = [1, 1]} : vector<16x128xf32> to vector<1x128xf32>
    %263 = vector.shape_cast %262 : vector<1x128xf32> to vector<128xf32>
    %264 = vector.shape_cast %263 : vector<128xf32> to vector<1x1x128xf32>
    %265 = vector.broadcast %261 : vector<8x16x1xf32> to vector<8x16x128xf32>
    %266 = vector.broadcast %264 : vector<1x1x128xf32> to vector<8x16x128xf32>
    %267 = arith.mulf %265, %266 : vector<8x16x128xf32>
    %268 = arith.addf %260, %267 : vector<8x16x128xf32>
    %269 = vector.extract_strided_slice %146 {offsets = [0, 0, 15], sizes = [8, 16, 1], strides = [1, 1, 1]} : vector<8x16x16xf32> to vector<8x16x1xf32>
    %270 = vector.extract_strided_slice %147 {offsets = [15, 0], sizes = [1, 128], strides = [1, 1]} : vector<16x128xf32> to vector<1x128xf32>
    %271 = vector.shape_cast %270 : vector<1x128xf32> to vector<128xf32>
    %272 = vector.shape_cast %271 : vector<128xf32> to vector<1x1x128xf32>
    %273 = vector.broadcast %269 : vector<8x16x1xf32> to vector<8x16x128xf32>
    %274 = vector.broadcast %272 : vector<1x1x128xf32> to vector<8x16x128xf32>
    %275 = arith.mulf %273, %274 : vector<8x16x128xf32>
    %276 = arith.addf %268, %275 : vector<8x16x128xf32>
    %c0_22 = arith.constant 0 : index
    %c0_23 = arith.constant 0 : index
    %277 = vector.load %arg8[%c0_22, %c0_23] : memref<1x128xf32, #tpu.memory_space<vmem>>, vector<1x128xf32>
    %278 = vector.shape_cast %277 : vector<1x128xf32> to vector<128xf32>
    %279 = vector.shape_cast %278 : vector<128xf32> to vector<1x1x128xf32>
    %280 = vector.broadcast %279 : vector<1x1x128xf32> to vector<8x16x128xf32>
    %281 = arith.addf %276, %280 : vector<8x16x128xf32>
    %282 = vector.extract_strided_slice %4 {offsets = [1, 0, 0], sizes = [8, 24, 128], strides = [1, 1, 1]} : vector<10x24x128xf32> to vector<8x24x128xf32>
    %c23_i32_24 = arith.constant 23 : i32
    %283 = tpu.dynamic_rotate %282 by %c23_i32_24 dim 1 : vector<8x24x128xf32>, i32 -> vector<8x24x128xf32>
    %284 = vector.extract_strided_slice %283 {offsets = [0, 0, 0], sizes = [8, 16, 128], strides = [1, 1, 1]} : vector<8x24x128xf32> to vector<8x16x128xf32>
    %285 = arith.addf %281, %284 : vector<8x16x128xf32>
    %c0_25 = arith.constant 0 : index
    %c0_26 = arith.constant 0 : index
    %c0_27 = arith.constant 0 : index
    %c0_28 = arith.constant 0 : index
    %286 = vector.load %arg9[%c0_25, %c0_26, %c0_27, %c0_28] : memref<1x8x16x128xf32, #tpu.memory_space<vmem>>, vector<1x8x16x128xf32>
    %287 = vector.shape_cast %286 : vector<1x8x16x128xf32> to vector<8x16x128xf32>
    %288 = vector.shape_cast %285 : vector<8x16x128xf32> to vector<1x8x16x128xf32>
    tpu.vector_store %arg9[%c0_25, %c0_26, %c0_27, %c0_28], %288 {strides = array<i32>} : memref<1x8x16x128xf32, #tpu.memory_space<vmem>>, vector<1x8x16x128xf32>,
    return
  }
  func.func @transform_0(%arg0: i32, %arg1: i32) -> (i32, i32, i32, i32) {
    %c0_i32 = arith.constant 0 : i32
    %c0_i32_0 = arith.constant 0 : i32
    %c0_i32_1 = arith.constant 0 : i32
    %c0_i32_2 = arith.constant 0 : i32
    return %arg0, %c0_i32, %c0_i32_0, %c0_i32_1 : i32, i32, i32, i32
  }
  func.func @transform_1(%arg0: i32, %arg1: i32) -> (i32, i32) {
    %c0_i32 = arith.constant 0 : i32
    %c0_i32_0 = arith.constant 0 : i32
    %c0_i32_1 = arith.constant 0 : i32
    return %c0_i32, %c0_i32_0 : i32, i32
  }
  func.func @transform_2(%arg0: i32, %arg1: i32) -> (i32, i32) {
    %c0_i32 = arith.constant 0 : i32
    %c0_i32_0 = arith.constant 0 : i32
    %c0_i32_1 = arith.constant 0 : i32
    return %c0_i32, %c0_i32_0 : i32, i32
  }
  func.func @transform_3(%arg0: i32, %arg1: i32) -> (i32, i32, i32) {
    %c0_i32 = arith.constant 0 : i32
    %c0_i32_0 = arith.constant 0 : i32
    %c0_i32_1 = arith.constant 0 : i32
    %c0_i32_2 = arith.constant 0 : i32
    return %c0_i32, %c0_i32_0, %c0_i32_1 : i32, i32, i32
  }
  func.func @transform_4(%arg0: i32, %arg1: i32) -> (i32, i32) {
    %c0_i32 = arith.constant 0 : i32
    %c0_i32_0 = arith.constant 0 : i32
    %c0_i32_1 = arith.constant 0 : i32
    return %c0_i32, %c0_i32_0 : i32, i32
  }
  func.func @transform_5(%arg0: i32, %arg1: i32) -> (i32, i32) {
    %c0_i32 = arith.constant 0 : i32
    %c0_i32_0 = arith.constant 0 : i32
    %c0_i32_1 = arith.constant 0 : i32
    return %c0_i32, %c0_i32_0 : i32, i32
  }
  func.func @transform_6(%arg0: i32, %arg1: i32) -> (i32, i32) {
    %c0_i32 = arith.constant 0 : i32
    %c0_i32_0 = arith.constant 0 : i32
    %c0_i32_1 = arith.constant 0 : i32
    return %c0_i32, %c0_i32_0 : i32, i32
  }
  func.func @transform_7(%arg0: i32, %arg1: i32) -> (i32, i32, i32, i32) {
    %c0_i32 = arith.constant 0 : i32
    %c0_i32_0 = arith.constant 0 : i32
    %c0_i32_1 = arith.constant 0 : i32
    return %arg0, %arg1, %c0_i32, %c0_i32_0 : i32, i32, i32, i32
  }
}

</mosaic_0001>

<bundles_post_ra>
// kernel: tpu_custom_call.1
= control target key start
LH: loop header
LB: loop body
LE: loop exit
PB: predicated region body
PF: predicated region fallthrough
CT: control target
= control target key end

     0   :  { %s8156_s0 = inlined_call_operand.hbm [shape: f32[2,18,24,128], index: 0, kind: input, shape index: {}]   ;;  %s8157_s1 = inlined_call_operand.hbm [shape: f32[4,16], index: 1, kind: input, shape index: {}]   ;;  %s8158_s2 = inlined_call_operand.hbm [shape: f32[1,16], index: 2, kind: input, shape index: {}]   ;;  %s8159_s3 = inlined_call_operand.hbm [shape: f32[3,3,16], index: 3, kind: input, shape index: {}]   ;;  %s8160_s4 = inlined_call_operand.hbm [shape: f32[1,16], index: 4, kind: input, shape index: {}]   ;;  %s8161_s5 = inlined_call_operand.hbm [shape: f32[16,128], index: 5, kind: input, shape index: {}]   ;;  %s8162_s6 = inlined_call_operand.hbm [shape: f32[1,128], index: 6, kind: input, shape index: {}]   ;;  %s8163_s7 = inlined_call_operand.hbm [shape: f32[2,16,16,128], index: 7, kind: output, shape index: {}]  }
   0x1   :  { %8277 = sst [smem:[#allocation168_spill]] %s8156_s0 }
   0x2   :  { %8278 = sst [smem:[#allocation169_spill]] %s8157_s1 }
   0x3   :  { %8279 = sst [smem:[#allocation170_spill]] %s8158_s2 }
   0x4   :  { %8280 = sst [smem:[#allocation171_spill]] %s8159_s3 }
   0x5   :  { %8281 = sst [smem:[#allocation172_spill]] %s8160_s4 }
   0x6   :  { %8282 = sst [smem:[#allocation173_spill]] %s8161_s5 }
   0x7   :  { %8283 = sst [smem:[#allocation174_spill]] %s8163_s7 }
   0x8   :  { %12 = vsyncpa [#allocation3], 0 }
   0x9   :  { %14 = vsyncpa [#allocation3 + $0x1], 0 }
   0xa   :  { %15 = vsyncpa [#allocation6], 0 }
   0xb   :  { %16 = vsyncpa [#allocation9], 0 }
   0xc   :  { %17 = vsyncpa [#allocation12], 0 }
   0xd   :  { %18 = vsyncpa [#allocation4], 0 }
   0xe   :  { %20 = vsyncpa [#allocation4 + $0x1], 0  ;;  %s4517_s24 = smov 0   ;;  %s4519_s25 = smov 0  }
   0xf   :  { %s4521_s26 = smov 0   ;;  %s4523_s27 = smov 0  }
  0x10   :  { %s4525_s28 = smov 0   ;;  %s4527_s29 = smov 0  }
  0x11   :  { %s4529_s30 = smov 0   ;;  %s4531_s8 = smov 0  }
  0x12   :  { %s4533_s9 = smov 0   ;;  %s4535_s10 = smov 0  }
  0x13   :  { %s4537_s11 = smov 0  }
  0x14 LB: > { %8284 = sst [smem:[#allocation20_spill]] %s4429_s30  ;;  %s3827_s12 = sadd.s32 4294967295, %s4445_s11   ;;  %s4445_s11 = sphi %s4537_s11, %s26_s11   ;;  %s4441_s10 = sphi %s4535_s10, %s8925_s10   ;;  %s4437_s9 = sphi %s4533_s9, %s8924_s9   ;;  %s4433_s8 = sphi %s4531_s8, %s8923_s8   ;;  %s4429_s30 = sphi %s4529_s30, %s8922_s30   ;;  %s4425_s29 = sphi %s4527_s29, %s8921_s29   ;;  %s4421_s28 = sphi %s4525_s28, %s8920_s28   ;;  %s4417_s27 = sphi %s4523_s27, %s8919_s27   ;;  %s4413_s26 = sphi %s4521_s26, %s8918_s26   ;;  %s4409_s25 = sphi %s4519_s25, %s8917_s25   ;;  %s4405_s24 = sphi %s4517_s24, %s8916_s24  }
  0x15   : > { %8285 = sst [smem:[#allocation21_spill]] %s4433_s8  ;;  %p3829_p0 = scmp.ge.s32.totalorder %s4445_s11, 1 }
  0x16   : > { %p4574_p1 = scmp.eq.s32.totalorder %s3827_s12, 0  ;;  %p4578_p2 = scmp.eq.s32.totalorder %s3827_s12, 3 }
  0x17   : > { %p223_p3 = scmp.lt.s32.totalorder %s4445_s11, 5  ;;  %s4447_s16 = smov [#allocation5]  }
  0x18   : > { %s8286_s13 = scalar_select %p4574_p1, 1, 0 }
  0x19   : > { %s8287_s14 = scalar_select %p4578_p2, 1, 0 }
  0x1a   : > { %p4583_p4 = pnand %p3829_p0, %p223_p3  ;;  %s236_s17 = sshll.u32 %s4447_s16, 4  ;;  %s237_s17 = int_to_ptr.vmem [resolvable:$true] %s236_s17 }
  0x1b   : > { %s4448_s18 = smov [#allocation8]   ;;  %s4449_s21 = smov [#allocation11]  }
  0x1c   : > { %s8288_s15 = scalar_select %p4583_p4, 1, 0 }
  0x1d   : > { %p3890_p5 = pneg %p4583_p4  ;;  %s257_s19 = sshll.u32 %s4448_s18, 4  ;;  %s4589_s19 = int_to_ptr.vmem [resolvable:$true] %s257_s19 }
  0x1e   : > { %8289 = sst [smem:[#allocation22_spill]] %s8288_s15  ;;  %s4597_s22 = sshll.u32 %s4449_s21, 4  ;;  %s282_s22 = int_to_ptr.vmem [resolvable:$true] %s4597_s22 }
  0x1f   : > { %p4593_p6 = pnand %p3890_p5, %p4574_p1  ;;  %s8291_s1 = sld [smem:[#allocation169_spill]] }
  0x21   : > { %p4607_p8 = pneg %p4593_p6 }
  0x25   : > { %s4113_s16 = scalar_lea.hbm %s8291_s1, 64 }
  0x26   : > { %p4114_p7 = scmp.ne.s32.totalorder %s8291_s1, %s4113_s16  ;;  %p4120_p11 = scmp.lt.u32.totalorder %s4113_s16, %s8291_s1 }
  0x28   : > { %p4116_p9 = pnand %p4607_p8, %p4114_p7 }
  0x2a   : > { %p4117_p10 = pneg %p4116_p9 }
  0x2c   : > { %p4122_p12 = pnand %p4120_p11, %p4117_p10 }
  0x2e   : > { %4125 = shalt.err (!%p4122_p12)
}
  0x2f   : > { %s4126_s23 = scalar_lea.vmem %s237_s17, 64  ;;  %p4134_p5 = scmp.lt.s32.totalorder %s237_s17, %s237_s17 }
  0x30   : > { %p4127_p13 = scmp.ne.s32.totalorder %s237_s17, %s4126_s23  ;;  %p4135_p4 = scmp.lt.s32.totalorder %s4126_s23, %s4126_s23 }
  0x32   : > { %p4129_p0 = pnand %p4127_p13, %p4607_p8  ;;  %p4136_p2 = por %p4135_p4, %p4134_p5 }
  0x34   : > { %p4130_p3 = pneg %p4129_p0 }
  0x36   : > { %p4137_p1 = pnand %p4136_p2, %p4130_p3 }
  0x38   : > { %4140 = shalt.err (!%p4137_p1)
}
  0x39   : > { %3893 = dma.hbm_to_vmem [thread:$0]  (!%p4593_p6), %s8291_s1, 64, %s237_s17, [#allocation6]  }
  0x3a   : > { %s8293_s3 = sld [smem:[#allocation171_spill]] }
  0x40   : > { %s4141_s16 = scalar_lea.hbm %s8293_s3, 192 }
  0x41   : > { %p4142_p7 = scmp.ne.s32.totalorder %s8293_s3, %s4141_s16  ;;  %p4148_p1 = scmp.lt.u32.totalorder %s4141_s16, %s8293_s3 }
  0x43   : > { %p4144_p9 = pnand %p4142_p7, %p4607_p8 }
  0x45   : > { %p4145_p4 = pneg %p4144_p9 }
  0x47   : > { %p4150_p2 = pnand %p4148_p1, %p4145_p4 }
  0x49   : > { %4153 = shalt.err (!%p4150_p2)
}
  0x4a   : > { %s4154_s17 = scalar_lea.vmem %s4589_s19, 192  ;;  %p4162_p13 = scmp.lt.s32.totalorder %s4589_s19, %s4589_s19 }
  0x4b   : > { %p4155_p10 = scmp.ne.s32.totalorder %s4589_s19, %s4154_s17  ;;  %p4163_p0 = scmp.lt.s32.totalorder %s4154_s17, %s4154_s17 }
  0x4d   : > { %p4157_p11 = pnand %p4155_p10, %p4607_p8  ;;  %p4164_p3 = por %p4163_p0, %p4162_p13 }
  0x4f   : > { %p4158_p12 = pneg %p4157_p11 }
  0x51   : > { %p4165_p5 = pnand %p4164_p3, %p4158_p12 }
  0x53   : > { %4168 = shalt.err (!%p4165_p5)
}
  0x54   : > { %s4450_s15 = smov 64   ;;  %s4451_s0 = smov 4  }
  0x55   : > { %3899 = dma.hbm_to_vmem [thread:$0]  (!%p4593_p6), %s8293_s3, 192, %s4589_s19, [#allocation9], %s4450_s15, %s4450_s15, %s4451_s0  }
  0x56   : > { %s8294_s5 = sld [smem:[#allocation173_spill]] }
  0x5c   : > { %s4169_s16 = scalar_lea.hbm %s8294_s5, 256 }
  0x5d   : > { %p4170_p7 = scmp.ne.s32.totalorder %s8294_s5, %s4169_s16  ;;  %p4176_p1 = scmp.lt.u32.totalorder %s4169_s16, %s8294_s5 }
  0x5f   : > { %p4172_p9 = pnand %p4170_p7, %p4607_p8 }
  0x61   : > { %p4173_p4 = pneg %p4172_p9 }
  0x63   : > { %p4178_p2 = pnand %p4176_p1, %p4173_p4 }
  0x65   : > { %4181 = shalt.err (!%p4178_p2)
}
  0x66   : > { %s4182_s7 = scalar_lea.vmem %s282_s22, 256  ;;  %p4190_p13 = scmp.lt.s32.totalorder %s282_s22, %s282_s22 }
  0x67   : > { %p4183_p10 = scmp.ne.s32.totalorder %s282_s22, %s4182_s7  ;;  %p4191_p0 = scmp.lt.s32.totalorder %s4182_s7, %s4182_s7 }
  0x69   : > { %p4185_p11 = pnand %p4183_p10, %p4607_p8  ;;  %p4192_p3 = por %p4191_p0, %p4190_p13 }
  0x6b   : > { %p4186_p12 = pneg %p4185_p11 }
  0x6d   : > { %p4193_p5 = pnand %p4192_p3, %p4186_p12 }
  0x6f   : > { %4196 = shalt.err (!%p4193_p5)
}
  0x70   : > { %s8171_s19 = smov 128   ;;  %s8172_s15 = smov 8  }
  0x71   : > { %3905 = dma.hbm_to_vmem [thread:$0]  (!%p4593_p6), %s8294_s5, 256, %s282_s22, [#allocation12], %s8171_s19, %s8171_s19, %s8172_s15  }
  0x72   : > { %s4454_s8 = smov [#allocation7]   ;;  %s4455_s12 = smov [#allocation10]  }
  0x73   : > { %s247_s30 = sshll.u32 %s4454_s8, 4  ;;  %s271_s16 = sshll.u32 %s4455_s12, 4  ;;  %s248_s30 = int_to_ptr.vmem [resolvable:$true] %s247_s30  ;;  %s4668_s16 = int_to_ptr.vmem [resolvable:$true] %s271_s16 }
  0x74   : > { %s8295_s2 = sld [smem:[#allocation170_spill]] }
  0x7a   : > { %s4197_s17 = scalar_lea.hbm %s8295_s2, 16 }
  0x7b   : > { %p4198_p7 = scmp.ne.s32.totalorder %s8295_s2, %s4197_s17  ;;  %p4204_p1 = scmp.lt.u32.totalorder %s4197_s17, %s8295_s2 }
  0x7d   : > { %p4200_p9 = pnand %p4198_p7, %p4607_p8 }
  0x7f   : > { %p4201_p4 = pneg %p4200_p9 }
  0x81   : > { %p4206_p2 = pnand %p4204_p1, %p4201_p4 }
  0x83   : > { %4209 = shalt.err (!%p4206_p2)
}
  0x84   : > { %s4210_s0 = scalar_lea.vmem %s248_s30, 16  ;;  %s4217_s8 = scalar_lea.vmem %s248_s30, 32 }
  0x85   : > { %p4211_p10 = scmp.ne.s32.totalorder %s248_s30, %s4210_s0  ;;  %p4218_p13 = scmp.lt.s32.totalorder %s248_s30, %s248_s30 }
  0x86   : > { %p4219_p0 = scmp.lt.s32.totalorder %s4217_s8, %s4210_s0 }
  0x87   : > { %p4213_p11 = pnand %p4211_p10, %p4607_p8 }
  0x88   : > { %p4220_p3 = por %p4219_p0, %p4218_p13 }
  0x89   : > { %p4214_p12 = pneg %p4213_p11 }
  0x8b   : > { %p4221_p5 = pnand %p4220_p3, %p4214_p12 }
  0x8d   : > { %4224 = shalt.err (!%p4221_p5)
}
  0x8e   : > { %3896 = dma.hbm_to_vmem [thread:$0]  (!%p4593_p6), %s8295_s2, 16, %s248_s30, [#allocation6]  }
  0x8f   : > { %s8296_s4 = sld [smem:[#allocation172_spill]] }
  0x95   : > { %s4225_s17 = scalar_lea.hbm %s8296_s4, 16 }
  0x96   : > { %p4226_p7 = scmp.ne.s32.totalorder %s8296_s4, %s4225_s17  ;;  %p4232_p1 = scmp.lt.u32.totalorder %s4225_s17, %s8296_s4 }
  0x98   : > { %p4228_p9 = pnand %p4226_p7, %p4607_p8 }
  0x9a   : > { %p4229_p4 = pneg %p4228_p9 }
  0x9c   : > { %p4234_p2 = pnand %p4232_p1, %p4229_p4 }
  0x9e   : > { %4237 = shalt.err (!%p4234_p2)
}
  0x9f   : > { %s4238_s30 = scalar_lea.vmem %s4668_s16, 16  ;;  %s4245_s8 = scalar_lea.vmem %s4668_s16, 32 }
  0xa0   : > { %p4239_p10 = scmp.ne.s32.totalorder %s4668_s16, %s4238_s30  ;;  %p4246_p13 = scmp.lt.s32.totalorder %s4668_s16, %s4668_s16 }
  0xa1   : > { %p4247_p0 = scmp.lt.s32.totalorder %s4245_s8, %s4238_s30 }
  0xa2   : > { %p4241_p11 = pnand %p4239_p10, %p4607_p8 }
  0xa3   : > { %p4248_p3 = por %p4247_p0, %p4246_p13 }
  0xa4   : > { %p4242_p12 = pneg %p4241_p11 }
  0xa6   : > { %p4249_p5 = pnand %p4248_p3, %p4242_p12 }
  0xa8   : > { %4252 = shalt.err (!%p4249_p5)
}
  0xa9   : > { %3902 = dma.hbm_to_vmem [thread:$0]  (!%p4593_p6), %s8296_s4, 16, %s4668_s16, [#allocation9]  }
  0xaa   : > { %s4456_s21 = smov [#allocation13]   ;;  %s4253_s1 = scalar_lea.hbm %s8162_s6, 16 }
  0xab   : > { %s295_s23 = sshll.u32 %s4456_s21, 4  ;;  %p4254_p7 = scmp.ne.s32.totalorder %s8162_s6, %s4253_s1  ;;  %s296_s23 = int_to_ptr.vmem [resolvable:$true] %s295_s23 }
  0xac   : > { %p4260_p1 = scmp.lt.u32.totalorder %s4253_s1, %s8162_s6 }
  0xad   : > { %p4256_p9 = pnand %p4254_p7, %p4607_p8 }
  0xaf   : > { %p4257_p4 = pneg %p4256_p9 }
  0xb1   : > { %p4262_p2 = pnand %p4260_p1, %p4257_p4 }
  0xb3   : > { %4265 = shalt.err (!%p4262_p2)
}
  0xb4   : > { %s4266_s16 = scalar_lea.vmem %s296_s23, 16  ;;  %s4273_s3 = scalar_lea.vmem %s296_s23, 32 }
  0xb5   : > { %p4267_p10 = scmp.ne.s32.totalorder %s296_s23, %s4266_s16  ;;  %p4274_p13 = scmp.lt.s32.totalorder %s296_s23, %s296_s23 }
  0xb6   : > { %p4275_p0 = scmp.lt.s32.totalorder %s4273_s3, %s4266_s16 }
  0xb7   : > { %p4269_p11 = pnand %p4267_p10, %p4607_p8 }
  0xb8   : > { %p4276_p3 = por %p4275_p0, %p4274_p13 }
  0xb9   : > { %p4270_p12 = pneg %p4269_p11 }
  0xbb   : > { %p4277_p5 = pnand %p4276_p3, %p4270_p12 }
  0xbd   : > { %4280 = shalt.err (!%p4277_p5)
}
  0xbe   : > { %3908 = dma.hbm_to_vmem [thread:$0]  (!%p4593_p6), %s8162_s6, 16, %s296_s23, [#allocation12]  }
  0xbf   : > { %s3828_s18 = sadd.s32 4294967294, %s4445_s11   ;;  %s35_s20 = sadd.s32 1, %s4437_s9 }
  0xc0   : > { %s38_s17 = sadd.s32 1, %s4441_s10  ;;  %p36_p8 = scmp.ge.s32.totalorder %s35_s20, 2 }
  0xc1   : > { %s45_s7 = sadd.s32 1, %s4425_s29  ;;  %p52_p7 = scmp.ne.s32.totalorder %s4425_s29, %s4421_s28 }
  0xc2   : > { %p53_p9 = scmp.eq.s32.totalorder %s4445_s11, 0  ;;  %s8927_s20 = smov (%p36_p8, %s35_s20), 0 }
  0xc3   : > { %s8929_s17 = smov (!%p36_p8, %s38_s17), %s4441_s10  ;;  %p58_p6 = scmp.ne.s32.totalorder %s4421_s28, %s4417_s27 }
  0xc4   : > { %p4740_p4 = por %p53_p9, %p52_p7  ;;  %p40_p1 = scmp.ge.s32.totalorder %s8929_s17, 2 }
  0xc5   : > { %s195_s1 = ssub.s32 %s4437_s9, %s8927_s20  ;;  %p8298_p2 = scmp.ne.s32.totalorder %s8286_s13, 0 }
  0xc6   : > { %s199_s0 = sadd.s32 1, %s4413_s26  ;;  %s8931_s17 = smov (%p40_p1, %s8929_s17), 0 }
  0xc7   : > { %p4750_p10 = por %p8298_p2, %p58_p6  ;;  %p209_p11 = scmp.ne.s32.totalorder %s4413_s26, %s4409_s25 }
  0xc8   : > { %p215_p12 = scmp.ne.s32.totalorder %s4409_s25, %s4405_s24  ;;  %s42_s30 = ssub.s32 %s4441_s10, %s8931_s17 }
  0xc9   : > { %p216_p13 = scmp.eq.s32.totalorder %s3828_s18, 3  ;;  %p43_p0 = scmp.eq.s32.totalorder %s42_s30, 0 }
  0xca   : > { %s196_s27 = sor.u32 %s195_s1, %s42_s30  ;;  %p8300_p5 = scmp.ne.s32.totalorder %s8287_s14, 0 }
  0xcb   : > { %p197_p3 = scmp.eq.s32.totalorder %s196_s27, 0  ;;  %p4775_p7 = por %p216_p13, %p215_p12 }
  0xcc   : > { %p4765_p8 = por %p8300_p5, %p209_p11  ;;  %p3923_p9 = scmp.lt.s32.totalorder %s4445_s11, 4 }
  0xcd   : > { %s4770_s16 = scalar_select %p43_p0, %s4425_s29, %s45_s7  }
  0xce   : > { %s8301_s8 = scalar_select %p4765_p8, 1, 0 }
  0xcf   : > { %s4773_s3 = scalar_select %p197_p3, %s4413_s26, %s199_s0  }
  0xd0   : > { %s8302_s12 = scalar_select %p4775_p7, 1, 0 }
  0xd1   : > { %s306_s21 = sand.u32 1, %s4425_s29   ;;  %s3860_s19 = smul.u32 6912, %s4441_s10 }
  0xd2   : > { %s3859_s18 = smul.u32 432, %s306_s21  ;;  %p4784_p6 = pnand %p3923_p9, %p4740_p4 }
  0xd3   : > { %s8304_s27 = sld [smem:[#allocation168_spill]]  ;;  %s4795_s23 = scalar_lea.sflag [#allocation3], %s306_s21 }
  0xd4   : > { %s310_s0 = scalar_lea.vmem [#allocation2], %s3859_s18  ;;  %p4283_p1 = pneg %p4784_p6 }
  0xd5   : > { %s317_s2 = sshll.u32 %s310_s0, 4  ;;  %s4793_s2 = int_to_ptr.vmem [resolvable:$true] %s317_s2 }
  0xd9   : > { %s8305_s15 = smov %s8304_s27  ;;  %s4791_s7 = scalar_lea.hbm %s8304_s27, %s3860_s19 }
  0xda   : > { %s4281_s4 = scalar_lea.hbm %s4791_s7, 6912  ;;  %s4286_s30 = scalar_lea.hbm %s8305_s15, 13824 }
  0xdb   : > { %p4282_p4 = scmp.ne.s32.totalorder %s4791_s7, %s4281_s4  ;;  %p4287_p12 = scmp.lt.u32.totalorder %s4791_s7, %s8305_s15 }
  0xdc   : > { %p4288_p13 = scmp.lt.u32.totalorder %s4286_s30, %s4281_s4  ;;  %p4290_p3 = scmp.lt.u32.totalorder %s4281_s4, %s4791_s7 }
  0xdd   : > { %p4284_p2 = pnand %p4283_p1, %p4282_p4 }
  0xde   : > { %p4289_p0 = por %p4288_p13, %p4287_p12 }
  0xdf   : > { %p4285_p11 = pneg %p4284_p2 }
  0xe0   : > { %p4291_p5 = por %p4290_p3, %p4289_p0 }
  0xe2   : > { %p4292_p9 = pnand %p4291_p5, %p4285_p11 }
  0xe4   : > { %4295 = shalt.err (!%p4292_p9)
}
  0xe5   : > { %s4296_s21 = scalar_lea.vmem %s4793_s2, 6912  ;;  %s4457_s18 = smov [#allocation2]  }
  0xe6   : > { %p4297_p4 = scmp.ne.s32.totalorder %s4793_s2, %s4296_s21  ;;  %s4301_s0 = sshll.u32 %s4457_s18, 4  ;;  %s4302_s0 = int_to_ptr.vmem [resolvable:$false] %s4301_s0 }
  0xe7   : > { %s4303_s5 = scalar_lea.vmem %s4302_s0, 13824  ;;  %p4304_p8 = scmp.lt.s32.totalorder %s4793_s2, %s4302_s0 }
  0xe8   : > { %p4299_p2 = pnand %p4297_p4, %p4283_p1  ;;  %p4305_p12 = scmp.lt.s32.totalorder %s4303_s5, %s4296_s21 }
  0xea   : > { %p4300_p7 = pneg %p4299_p2  ;;  %p4306_p13 = por %p4305_p12, %p4304_p8 }
  0xec   : > { %p4307_p0 = pnand %p4306_p13, %p4300_p7 }
  0xee   : > { %4310 = shalt.err (!%p4307_p0)
}
  0xef   : > { %s8306_s4 = smov 8   ;;  %s8307_s19 = smov 128  }
  0xf0   : > { %3912 = dma.hbm_to_vmem [thread:$0]  (!%p4784_p6), %s4791_s7, 6912, %s4793_s2, %s4795_s23, %s8307_s19, %s8307_s19, %s8306_s4  }
  0xf1   : > { %s8308_s14 = sld [smem:[#allocation22_spill]] }
  0xf7   : > { %p8309_p1 = scmp.ne.s32.totalorder %s8308_s14, 0 }
  0xf9   : > { %329 = sbr.rel (%p8309_p1) target bundleno = 1569 (0x621), region = 48 }
 0x100   : > { %s331_s30 = sand.u32 1, %s4421_s28  }
 0x101   : > { %s3861_s27 = smul.u32 432, %s331_s30  ;;  %s332_s21 = scalar_lea.sflag [#allocation3], %s331_s30 }
 0x103   : > { %s335_s18 = scalar_lea.vmem [#allocation2], %s3861_s27 }
 0x104   : > { %4384 = dma.done.wait (%p4750_p10), %s332_s21, 6912  }
 0x105   : > { %4386 = vsyncadd (%p4750_p10), %s332_s21, 4294960384  ;;  %p8310_p8 = scmp.ne.s32.totalorder %s8286_s13, 0 }
 0x107   : > { %4388 = dma.done.wait (%p8310_p8), [#allocation6], 80  }
 0x108   : > { %4390 = vsyncadd (%p8310_p8), [#allocation6], 4294967216 }
 0x109   : > { %4392 = dma.done.wait (%p8310_p8), [#allocation9], 208  }
 0x10a   : > { %4394 = vsyncadd (%p8310_p8), [#allocation9], 4294967088 }
 0x10b   : > { %4396 = dma.done.wait (%p8310_p8), [#allocation12], 272  }
 0x10c   : > { %4398 = vsyncadd (%p8310_p8), [#allocation12], 4294967024  ;;  %s8311_s2 = sld [smem:[#allocation20_spill]]  ;;  %v8178_v0 = vmov 1   ;;  %v4459_v1 = vmov 0   ;;  %v8176_v19 = vmov 2  }
 0x10d   : > { %4048 = vset.pattern.permute.xlu0 %v8178_v0  ;;  %4047 = vset.pattern.permute.xlu1 %v4459_v1  ;;  %v8174_v33 = vmov 3   ;;  %s387_s7 = sand.u32 1, %s4409_s25   ;;  %s8912_s5 = sld [smem:[#allocation21_spill]] }
 0x10e   : > { %s3845_s23 = sshll.u32 %s387_s7, 7  ;;  %p8914_p7 = scmp.ne.s32.totalorder %s8301_s8, 0 }
 0x10f   : > { %s7904_s0 = scalar_lea.vmem [#allocation14], %s3845_s23  ;;  %s4474_s23 = smov [#allocation14]  }
 0x110   : > { %s3681_s27 = sshll.u32 %s7904_s0, 4  ;;  %s8090_s27 = int_to_ptr.vmem [resolvable:$true] %s3681_s27 }
 0x112   : > { %s3847_s22 = smul.u32 192, %s8311_s2  ;;  %s3846_s13 = sshll.u32 %s8311_s2, 3 }
 0x113   : > { %s3858_s4 = sshll.u32 %s8311_s2, 4  ;;  %s3854_s19 = sshll.u32 %s8912_s5, 5 }
 0x114   : > { %s4848_s1 = scalar_lea.vmem %s335_s18, %s3847_s22 [#allocation2]  ;;  %s3678_s14 = sadd.s32 %s3858_s4, %s3854_s19 }
 0x115   : > { %v4851_v2 = vld [vmem:[%s4848_s1 + $0x10] sm:$0xff]  ;;  %v4854_v3 = vld [vmem:[%s4848_s1] sm:$0xff]  ;;  %v4859_v4 = vld [vmem:[%s4848_s1 + $0x18] sm:$0xff]  ;;  %s3855_s30 = sshll.u32 %s3678_s14, 7  ;;  %s8913_s2 = sld [smem:[#allocation174_spill]] }
 0x116   : > { %437 = vperm.xlu1 %4047, %v4851_v2   ;;  %640 = vperm.xlu0 %4048, %v4854_v3   ;;  %v4864_v5 = vld [vmem:[%s4848_s1 + $0x28] sm:$0xff]  ;;  %v4869_v6 = vld [vmem:[%s4848_s1 + $0x38] sm:$0xff]  ;;  %v4933_v20 = vld [vmem:[%s4848_s1 + $0x20] sm:$0xff]  ;;  %s4315_s5 = sshll.u32 %s4474_s23, 4  ;;  %s4316_s5 = int_to_ptr.vmem [resolvable:$false] %s4315_s5 }
 0x117   : > { %v4874_v7 = vld [vmem:[%s4848_s1 + $0x48] sm:$0xff]  ;;  %v4879_v8 = vld [vmem:[%s4848_s1 + $0x58] sm:$0xff]  ;;  %v4939_v21 = vld [vmem:[%s4848_s1 + $0x30] sm:$0xff]  ;;  %s4317_s4 = scalar_lea.vmem %s4316_s5, 4096  ;;  %p4318_p3 = scmp.lt.s32.totalorder %s8090_s27, %s4316_s5 }
 0x118   : > { %v4884_v9 = vld [vmem:[%s4848_s1 + $0x68] sm:$0xff]  ;;  %v4889_v10 = vld [vmem:[%s4848_s1 + $0x78] sm:$0xff]  ;;  %v4944_v22 = vld [vmem:[%s4848_s1 + $0x40] sm:$0xff] }
 0x119   : > { %v4894_v11 = vld [vmem:[%s4848_s1 + $0x88] sm:$0xff]  ;;  %v4899_v12 = vld [vmem:[%s4848_s1 + $0x98] sm:$0xff]  ;;  %v4949_v23 = vld [vmem:[%s4848_s1 + $0x50] sm:$0xff] }
 0x11a   : > { %442 = vperm.xlu1 %4047, %v4859_v4   ;;  %652 = vperm.xlu0 %4048, %v4859_v4   ;;  %v4904_v13 = vld [vmem:[%s4848_s1 + $0xa8] sm:$0xff]  ;;  %v4909_v14 = vld [vmem:[%s4848_s1 + $0xb8] sm:$0xff]  ;;  %v4954_v24 = vld [vmem:[%s4848_s1 + $0x60] sm:$0xff] }
 0x11b   : > { %v4914_v15 = vld [vmem:[%s4848_s1 + $0xc8] sm:$0xff]  ;;  %v4919_v16 = vld [vmem:[%s4848_s1 + $0xd8] sm:$0xff]  ;;  %v4959_v25 = vld [vmem:[%s4848_s1 + $0x70] sm:$0xff]  ;;  %s8088_s22 = scalar_lea.hbm %s8913_s2, %s3855_s30 }
 0x11c   : > { %v4924_v17 = vld [vmem:[%s4848_s1 + $0xe8] sm:$0xff]  ;;  %v4964_v26 = vld [vmem:[%s4848_s1 + $0x80] sm:$0xff]  ;;  %v4969_v27 = vld [vmem:[%s4848_s1 + $0x90] sm:$0xff] }
 0x11d   : > { %v4927_v18 = vld [vmem:[%s4848_s1 + $0x8] sm:$0xff]  ;;  %v4974_v28 = vld [vmem:[%s4848_s1 + $0xa0] sm:$0xff]  ;;  %v4979_v29 = vld [vmem:[%s4848_s1 + $0xb0] sm:$0xff] }
 0x11e   : > { %452 = vperm.xlu1 %4047, %v4864_v5   ;;  %660 = vperm.xlu0 %4048, %v4864_v5   ;;  %v4984_v30 = vld [vmem:[%s4848_s1 + $0xc0] sm:$0xff]  ;;  %v4989_v31 = vld [vmem:[%s4848_s1 + $0xd0] sm:$0xff] }
 0x11f   : > { %v4994_v32 = vld [vmem:[%s4848_s1 + $0xe0] sm:$0xff] }
 0x122   : > { %462 = vperm.xlu1 %4047, %v4869_v6   ;;  %668 = vperm.xlu0 %4048, %v4869_v6  }
 0x126   : > { %472 = vperm.xlu1 %4047, %v4874_v7   ;;  %676 = vperm.xlu0 %4048, %v4874_v7  }
 0x12a   : > { %482 = vperm.xlu1 %4047, %v4879_v8   ;;  %684 = vperm.xlu0 %4048, %v4879_v8  }
 0x12e   : > { %492 = vperm.xlu1 %4047, %v4884_v9   ;;  %692 = vperm.xlu0 %4048, %v4884_v9  }
 0x132   : > { %502 = vperm.xlu1 %4047, %v4889_v10   ;;  %700 = vperm.xlu0 %4048, %v4889_v10  }
 0x136   : > { %512 = vperm.xlu1 %4047, %v4894_v11   ;;  %708 = vperm.xlu0 %4048, %v4894_v11  }
 0x13a   : > { %522 = vperm.xlu1 %4047, %v4899_v12   ;;  %716 = vperm.xlu0 %4048, %v4899_v12  }
 0x13e   : > { %532 = vperm.xlu1 %4047, %v4904_v13   ;;  %724 = vperm.xlu0 %4048, %v4904_v13  }
 0x142   : > { %542 = vperm.xlu1 %4047, %v4909_v14   ;;  %732 = vperm.xlu0 %4048, %v4909_v14  }
 0x146   : > { %552 = vperm.xlu1 %4047, %v4914_v15   ;;  %740 = vperm.xlu0 %4048, %v4914_v15  }
 0x14a   : > { %562 = vperm.xlu1 %4047, %v4919_v16   ;;  %748 = vperm.xlu0 %4048, %v4919_v16  }
 0x14e   : > { %572 = vperm.xlu1 %4047, %v4924_v17   ;;  %4051 = vset.pattern.permute.xlu0 %v8176_v19 }
 0x14f   : > { %828 = vperm.xlu0 %4051, %v4927_v18  }
 0x152   : > { %4049 = vset.pattern.permute.xlu1 %v8178_v0 }
 0x153   : > { %644 = vperm.xlu1 %4049, %v4927_v18   ;;  %840 = vperm.xlu0 %4051, %v4933_v20  }
 0x157   : > { %648 = vperm.xlu1 %4049, %v4851_v2   ;;  %848 = vperm.xlu0 %4051, %v4939_v21  }
 0x15b   : > { %656 = vperm.xlu1 %4049, %v4933_v20   ;;  %856 = vperm.xlu0 %4051, %v4944_v22  }
 0x15f   : > { %664 = vperm.xlu1 %4049, %v4939_v21   ;;  %864 = vperm.xlu0 %4051, %v4949_v23  }
 0x163   : > { %672 = vperm.xlu1 %4049, %v4944_v22   ;;  %872 = vperm.xlu0 %4051, %v4954_v24  }
 0x167   : > { %680 = vperm.xlu1 %4049, %v4949_v23   ;;  %880 = vperm.xlu0 %4051, %v4959_v25  }
 0x16b   : > { %688 = vperm.xlu1 %4049, %v4954_v24   ;;  %888 = vperm.xlu0 %4051, %v4964_v26  }
 0x16f   : > { %696 = vperm.xlu1 %4049, %v4959_v25   ;;  %896 = vperm.xlu0 %4051, %v4969_v27  }
 0x173   : > { %704 = vperm.xlu1 %4049, %v4964_v26   ;;  %904 = vperm.xlu0 %4051, %v4974_v28  }
 0x177   : > { %712 = vperm.xlu1 %4049, %v4969_v27   ;;  %912 = vperm.xlu0 %4051, %v4979_v29  }
 0x17b   : > { %720 = vperm.xlu1 %4049, %v4974_v28   ;;  %920 = vperm.xlu0 %4051, %v4984_v30  }
 0x17f   : > { %728 = vperm.xlu1 %4049, %v4979_v29   ;;  %928 = vperm.xlu0 %4051, %v4989_v31  }
 0x183   : > { %736 = vperm.xlu1 %4049, %v4984_v30   ;;  %936 = vperm.xlu0 %4051, %v4994_v32  }
 0x187   : > { %744 = vperm.xlu1 %4049, %v4989_v31   ;;  %4052 = vset.pattern.permute.xlu0 %v8174_v33 }
 0x188   : > { %1008 = vperm.xlu0 %4052, %v4854_v3  }
 0x18b   : > { %752 = vperm.xlu1 %4049, %v4994_v32  }
 0x18c   : > { %1020 = vperm.xlu0 %4052, %v4859_v4  }
 0x18f   : > { %4050 = vset.pattern.permute.xlu1 %v8176_v19 }
 0x190   : > { %824 = vperm.xlu1 %4050, %v4854_v3   ;;  %1028 = vperm.xlu0 %4052, %v4864_v5  }
 0x194   : > { %832 = vperm.xlu1 %4050, %v4851_v2   ;;  %1036 = vperm.xlu0 %4052, %v4869_v6  }
 0x195   : > { %v5008_v34 = vpop.permute.xlu1 %437  ;;  %v5010_v35 = vpop.permute.xlu0 %640 }
 0x198   : > { %836 = vperm.xlu1 %4050, %v4859_v4   ;;  %1044 = vperm.xlu0 %4052, %v4874_v7  }
 0x199   : > { %v5014_v36 = vpop.permute.xlu1 %442  ;;  %v5016_v37 = vpop.permute.xlu0 %652 }
 0x19c   : > { %844 = vperm.xlu1 %4050, %v4864_v5   ;;  %1052 = vperm.xlu0 %4052, %v4879_v8  }
 0x19d   : > { %v5020_v38 = vpop.permute.xlu1 %452  ;;  %v5022_v39 = vpop.permute.xlu0 %660 }
 0x1a0   : > { %852 = vperm.xlu1 %4050, %v4869_v6   ;;  %1060 = vperm.xlu0 %4052, %v4884_v9  }
 0x1a1   : > { %v5026_v40 = vpop.permute.xlu1 %462  ;;  %v5028_v41 = vpop.permute.xlu0 %668 }
 0x1a4   : > { %860 = vperm.xlu1 %4050, %v4874_v7   ;;  %1068 = vperm.xlu0 %4052, %v4889_v10  }
 0x1a5   : > { %v5032_v42 = vpop.permute.xlu1 %472  ;;  %v5034_v43 = vpop.permute.xlu0 %676 }
 0x1a8   : > { %868 = vperm.xlu1 %4050, %v4879_v8   ;;  %1076 = vperm.xlu0 %4052, %v4894_v11  }
 0x1a9   : > { %v5038_v44 = vpop.permute.xlu1 %482  ;;  %v5040_v45 = vpop.permute.xlu0 %684 }
 0x1ac   : > { %876 = vperm.xlu1 %4050, %v4884_v9   ;;  %1084 = vperm.xlu0 %4052, %v4899_v12  }
 0x1ad   : > { %v5044_v46 = vpop.permute.xlu1 %492  ;;  %v5046_v47 = vpop.permute.xlu0 %692 }
 0x1b0   : > { %884 = vperm.xlu1 %4050, %v4889_v10   ;;  %1092 = vperm.xlu0 %4052, %v4904_v13  }
 0x1b1   : > { %v5050_v48 = vpop.permute.xlu1 %502  ;;  %v5052_v49 = vpop.permute.xlu0 %700 }
 0x1b4   : > { %892 = vperm.xlu1 %4050, %v4894_v11   ;;  %1100 = vperm.xlu0 %4052, %v4909_v14  }
 0x1b5   : > { %v5056_v50 = vpop.permute.xlu1 %512  ;;  %v5058_v51 = vpop.permute.xlu0 %708 }
 0x1b8   : > { %900 = vperm.xlu1 %4050, %v4899_v12   ;;  %1108 = vperm.xlu0 %4052, %v4914_v15  }
 0x1b9   : > { %v5062_v52 = vpop.permute.xlu1 %522  ;;  %v5064_v53 = vpop.permute.xlu0 %716 }
 0x1bc   : > { %908 = vperm.xlu1 %4050, %v4904_v13   ;;  %1116 = vperm.xlu0 %4052, %v4919_v16  }
 0x1bd   : > { %v5068_v54 = vpop.permute.xlu1 %532  ;;  %v5070_v55 = vpop.permute.xlu0 %724 }
 0x1c0   : > { %916 = vperm.xlu1 %4050, %v4909_v14   ;;  %1124 = vperm.xlu0 %4052, %v4924_v17  }
 0x1c1   : > { %v5074_v56 = vpop.permute.xlu1 %542  ;;  %v5076_v57 = vpop.permute.xlu0 %732 }
 0x1c4   : > { %924 = vperm.xlu1 %4050, %v4914_v15   ;;  %4054 = vset.pattern.permute.xlu0 %v4459_v1 }
 0x1c5   : > { %v5080_v58 = vpop.permute.xlu1 %552  ;;  %427 = vperm.xlu0 %4054, %v4854_v3   ;;  %v5083_v59 = vpop.permute.xlu0 %740 }
 0x1c8   : > { %932 = vperm.xlu1 %4050, %v4919_v16  }
 0x1c9   : > { %v5086_v60 = vpop.permute.xlu1 %562  ;;  %432 = vperm.xlu0 %4054, %v4927_v18   ;;  %v5089_v61 = vpop.permute.xlu0 %748 }
 0x1cc   : > { %940 = vperm.xlu1 %4050, %v4924_v17  }
 0x1cd   : > { %v5092_v62 = vpop.permute.xlu1 %572  ;;  %447 = vperm.xlu0 %4054, %v4933_v20  }
 0x1ce   : > { %8312 = vst [vmem:[#allocation23_spill] sm:$0xff] %v5092_v62  ;;  %v5095_v63 = vpop.permute.xlu0 %828 }
 0x1d0   : > { %4053 = vset.pattern.permute.xlu1 %v8174_v33 }
 0x1d1   : > { %1012 = vperm.xlu1 %4053, %v4927_v18   ;;  %457 = vperm.xlu0 %4054, %v4939_v21  }
 0x1d2   : > { %v5100_v3 = vpop.permute.xlu1 %644  ;;  %v5102_v4 = vpop.permute.xlu0 %840 }
 0x1d5   : > { %1016 = vperm.xlu1 %4053, %v4851_v2   ;;  %467 = vperm.xlu0 %4054, %v4944_v22  }
 0x1d6   : > { %v5106_v5 = vpop.permute.xlu1 %648  ;;  %v5108_v6 = vpop.permute.xlu0 %848 }
 0x1d9   : > { %1024 = vperm.xlu1 %4053, %v4933_v20   ;;  %477 = vperm.xlu0 %4054, %v4949_v23  }
 0x1da   : > { %v5112_v7 = vpop.permute.xlu1 %656  ;;  %v5114_v8 = vpop.permute.xlu0 %856 }
 0x1dd   : > { %1032 = vperm.xlu1 %4053, %v4939_v21   ;;  %487 = vperm.xlu0 %4054, %v4954_v24  }
 0x1de   : > { %v5118_v9 = vpop.permute.xlu1 %664  ;;  %v5120_v2 = vpop.permute.xlu0 %864 }
 0x1e1   : > { %1040 = vperm.xlu1 %4053, %v4944_v22   ;;  %497 = vperm.xlu0 %4054, %v4959_v25  }
 0x1e2   : > { %v5124_v10 = vpop.permute.xlu1 %672  ;;  %v5126_v11 = vpop.permute.xlu0 %872 }
 0x1e3   : > { %8313 = vst [vmem:[#allocation24_spill] sm:$0xff] %v5124_v10  ;;  %8314 = vst [vmem:[#allocation25_spill] sm:$0xff] %v5126_v11 }
 0x1e5   : > { %1048 = vperm.xlu1 %4053, %v4949_v23   ;;  %507 = vperm.xlu0 %4054, %v4964_v26  }
 0x1e6   : > { %v5130_v12 = vpop.permute.xlu1 %680  ;;  %v5132_v13 = vpop.permute.xlu0 %880 }
 0x1e7   : > { %8315 = vst [vmem:[#allocation26_spill] sm:$0xff] %v5130_v12  ;;  %8316 = vst [vmem:[#allocation27_spill] sm:$0xff] %v5132_v13  ;;  %v1453_v12 = vld [vmem:[#allocation8 + $0x8] sm:$0x7] }
 0x1e9   : > { %1056 = vperm.xlu1 %4053, %v4954_v24   ;;  %517 = vperm.xlu0 %4054, %v4969_v27  }
 0x1ea   : > { %v5136_v14 = vpop.permute.xlu1 %688  ;;  %v5138_v15 = vpop.permute.xlu0 %888 }
 0x1eb   : > { %8317 = vst [vmem:[#allocation28_spill] sm:$0xff] %v5136_v14  ;;  %8318 = vst [vmem:[#allocation29_spill] sm:$0xff] %v5138_v15 }
 0x1ed   : > { %1064 = vperm.xlu1 %4053, %v4959_v25   ;;  %527 = vperm.xlu0 %4054, %v4974_v28  }
 0x1ee   : > { %v5142_v16 = vpop.permute.xlu1 %696  ;;  %v5144_v17 = vpop.permute.xlu0 %896 }
 0x1ef   : > { %8319 = vst [vmem:[#allocation30_spill] sm:$0xff] %v5142_v16  ;;  %8320 = vst [vmem:[#allocation31_spill] sm:$0xff] %v5144_v17 }
 0x1f1   : > { %1072 = vperm.xlu1 %4053, %v4964_v26   ;;  %537 = vperm.xlu0 %4054, %v4979_v29  }
 0x1f2   : > { %v5148_v18 = vpop.permute.xlu1 %704  ;;  %v5150_v20 = vpop.permute.xlu0 %904 }
 0x1f3   : > { %8321 = vst [vmem:[#allocation32_spill] sm:$0xff] %v5148_v18  ;;  %8322 = vst [vmem:[#allocation33_spill] sm:$0xff] %v5150_v20  ;;  %v5228_v18 = vstv %s3846_s13  ;;  %s4311_s13 = scalar_lea.vmem %s8090_s27, 2048 }
 0x1f4   : > { %p4312_p10 = scmp.ne.s32.totalorder %s8090_s27, %s4311_s13  ;;  %p4319_p5 = scmp.lt.s32.totalorder %s4317_s4, %s4311_s13 }
 0x1f5   : > { %1080 = vperm.xlu1 %4053, %v4969_v27   ;;  %547 = vperm.xlu0 %4054, %v4984_v30  }
 0x1f6   : > { %v5154_v21 = vpop.permute.xlu1 %712  ;;  %v5156_v22 = vpop.permute.xlu0 %912  ;;  %p4313_p6 = pnand %p4312_p10, %p8914_p7  ;;  %p4320_p9 = por %p4319_p5, %p4318_p3 }
 0x1f7   : > { %8323 = vst [vmem:[#allocation34_spill] sm:$0xff] %v5154_v21  ;;  %8324 = vst [vmem:[#allocation35_spill] sm:$0xff] %v5156_v22 }
 0x1f8   : > { %p4314_p11 = pneg %p4313_p6 }
 0x1f9   : > { %1088 = vperm.xlu1 %4053, %v4974_v28   ;;  %557 = vperm.xlu0 %4054, %v4989_v31  }
 0x1fa   : > { %v5160_v23 = vpop.permute.xlu1 %720  ;;  %v5162_v24 = vpop.permute.xlu0 %920  ;;  %p4321_p4 = pnand %p4320_p9, %p4314_p11 }
 0x1fb   : > { %8325 = vst [vmem:[#allocation36_spill] sm:$0xff] %v5160_v23  ;;  %8326 = vst [vmem:[#allocation37_spill] sm:$0xff] %v5162_v24 }
 0x1fd   : > { %1096 = vperm.xlu1 %4053, %v4979_v29   ;;  %567 = vperm.xlu0 %4054, %v4994_v32  }
 0x1fe   : > { %v5166_v25 = vpop.permute.xlu1 %728  ;;  %v5168_v26 = vpop.permute.xlu0 %928 }
 0x1ff   : > { %8327 = vst [vmem:[#allocation38_spill] sm:$0xff] %v5166_v25  ;;  %8328 = vst [vmem:[#allocation39_spill] sm:$0xff] %v5168_v26 }
 0x201   : > { %1104 = vperm.xlu1 %4053, %v4984_v30   ;;  %v575_v30 = vlaneseq }
 0x202   : > { %v5171_v27 = vpop.permute.xlu1 %736  ;;  %v5173_v33 = vpop.permute.xlu0 %936 }
 0x203   : > { %8329 = vst [vmem:[#allocation40_spill] sm:$0xff] %v5171_v27  ;;  %8330 = vst [vmem:[#allocation41_spill] sm:$0xff] %v5173_v33  ;;  %v5190_v33 = vshrl.u32 %v575_v30, 7 }
 0x205   : > { %1112 = vperm.xlu1 %4053, %v4989_v31   ;;  %8335 = vst [vmem:[#allocation46_spill] sm:$0xff] %v5190_v33  ;;  %v5208_v30 = vsub.s32 2, %v5190_v33  ;;  %v5215_v25 = vsub.s32 3, %v5190_v33  ;;  %vm1272_vm0 = vcmp.ge.s32.totalorder %v5190_v33, 1 }
 0x206   : > { %v5176_v28 = vpop.permute.xlu1 %744 }
 0x207   : > { %8331 = vst [vmem:[#allocation42_spill] sm:$0xff] %v5176_v28  ;;  %v5178_v19 = vpop.permute.xlu0 %1008  ;;  %8341 = vst [vmem:[#allocation52_spill] sm:$0xff] %v5208_v30 }
 0x208   : > { %8332 = vst [vmem:[#allocation43_spill] sm:$0xff] %v5178_v19  ;;  %v424_v19 = vld [vmem:[#allocation5] sm:$0xf]  ;;  %8343 = vst [vmem:[#allocation54_spill] sm:$0xff] %v5215_v25 }
 0x209   : > { %1120 = vperm.xlu1 %4053, %v4994_v32   ;;  %v5197_v32 = vsub.s32 1, %v5190_v33  ;;  %v5226_v20 = vrot.slane %v424_v19, %v5208_v30  ;;  %v5251_v14 = vrot.slane %v424_v19, %v5215_v25 }
 0x20a   : > { %v5181_v29 = vpop.permute.xlu1 %752 }
 0x20b   : > { %8333 = vst [vmem:[#allocation44_spill] sm:$0xff] %v5181_v29  ;;  %v5183_v0 = vpop.permute.xlu0 %1020  ;;  %8337 = vst [vmem:[#allocation48_spill] sm:$0xff] %v5197_v32  ;;  %v5200_v29 = vsub.s32 0, %v5190_v33 }
 0x20c   : > { %8345 = vst [vmem:[#allocation56_spill] sm:$0xff] %v5226_v20 }
 0x20d   : > { %4055 = vset.pattern.permute.xlu1 %v4459_v1  ;;  %8338 = vst [vmem:[#allocation49_spill] sm:$0xff] %v5200_v29  ;;  %v5289_v10 = vrot.slane %v1453_v12, %v5200_v29 }
 0x20f   : > { %v5186_v62 = vpop.permute.xlu1 %824  ;;  %v5188_v27 = vpop.permute.xlu0 %1028 }
 0x210   : > { %8334 = vst [vmem:[#allocation45_spill] sm:$0xff] %v5186_v62  ;;  %v5205_v62 = vrot.slane %v424_v19, %v5197_v32 }
 0x212   : > { %8340 = vst [vmem:[#allocation51_spill] sm:$0xff] %v5205_v62  ;;  %v766_v21 = vmul.f32 %v5205_v62, %v5016_v37  ;;  %v768_v16 = vmul.f32 %v5205_v62, %v5022_v39  ;;  %v5240_v37 = vld [vmem:[#allocation8 + $0x4] sm:$0x7]  ;;  %v772_v39 = vmul.f32 %v5205_v62, %v5034_v43  ;;  %v5268_v43 = vadd.s32 1, %v5228_v18 }
 0x213   : > { %v5192_v31 = vpop.permute.xlu1 %832  ;;  %v5194_v28 = vpop.permute.xlu0 %1036  ;;  %8346 = vst [vmem:[#allocation57_spill] sm:$0xff] %v5240_v37 }
 0x214   : > { %8336 = vst [vmem:[#allocation47_spill] sm:$0xff] %v5192_v31  ;;  %v5212_v31 = vrot.slane %v424_v19, %v5200_v29  ;;  %v5265_v19 = vmul.f32 %v5205_v62, %v5010_v35  ;;  %vm8212_vm1 = vcmp.ge.s32.totalorder %v5268_v43, 1  ;;  %vm1322_vm3 = vcmp.lt.s32.totalorder %v5268_v43, 17 }
 0x215   : > { %vm5505_vm8 = vmand %vm1272_vm0, %vm8212_vm1 }
 0x216   : > { %8342 = vst [vmem:[#allocation53_spill] sm:$0xff] %v5212_v31  ;;  %v582_v22 = vmul.f32 %v5212_v31, %v5014_v36  ;;  %v584_v17 = vmul.f32 %v5212_v31, %v5020_v38  ;;  %v770_v36 = vmul.f32 %v5205_v62, %v5028_v41  ;;  %v5244_v15 = vmul.f32 %v5212_v31, %v5008_v34  ;;  %vm1334_vm10 = vmand %vm5505_vm8, %vm1322_vm3 }
 0x217   : > { %v837_v26 = vpop.permute.xlu1 %836  ;;  %v5202_v1 = vpop.permute.xlu0 %1044  ;;  %v588_v38 = vmul.f32 %v5212_v31, %v5032_v42  ;;  %v774_v41 = vmul.f32 %v5205_v62, %v5040_v45  ;;  %v592_v13 = vmul.f32 %v5212_v31, %v5044_v46  ;;  %v776_v34 = vmul.f32 %v5205_v62, %v5046_v47  ;;  %8348 = vst [vmem:[#allocation59_spill] sm:$0xff] %v5265_v19 }
 0x218   : > { %8339 = vst [vmem:[#allocation50_spill] sm:$0xff] %v5202_v1  ;;  %v5238_v1 = vld [vmem:[#allocation8] sm:$0x7]  ;;  %v5276_v45 = vrot.slane %v5240_v37, %v5200_v29  ;;  %v796_v46 = vadd.f32 %v766_v21, %v582_v22  ;;  %v798_v47 = vadd.f32 %v768_v16, %v584_v17  ;;  %v5286_v19 = vadd.s32 2, %v5228_v18 }
 0x219   : > { %v5283_v35 = vadd.f32 %v772_v39, %v588_v38  ;;  %v5296_v21 = vadd.f32 %v776_v34, %v592_v13  ;;  %v594_v16 = vmul.f32 %v5212_v31, %v5050_v48  ;;  %v778_v17 = vmul.f32 %v5205_v62, %v5052_v49 }
 0x21a   : > { %8350 = vst [vmem:[#allocation61_spill] sm:$0xff] %v5286_v19  ;;  %v780_v38 = vmul.f32 %v5205_v62, %v5058_v51  ;;  %v598_v39 = vmul.f32 %v5212_v31, %v5062_v52  ;;  %v782_v13 = vmul.f32 %v5205_v62, %v5064_v53  ;;  %v600_v48 = vmul.f32 %v5212_v31, %v5068_v54 }
 0x21b   : > { %v5217_v24 = vpop.permute.xlu1 %844  ;;  %v5219_v23 = vpop.permute.xlu0 %1052  ;;  %v784_v49 = vmul.f32 %v5205_v62, %v5070_v55  ;;  %v602_v51 = vmul.f32 %v5212_v31, %v5074_v56  ;;  %v786_v52 = vmul.f32 %v5205_v62, %v5076_v57  ;;  %v604_v53 = vmul.f32 %v5212_v31, %v5080_v58 }
 0x21c   : > { %8344 = vst [vmem:[#allocation55_spill] sm:$0xff] %v5219_v23  ;;  %v586_v23 = vmul.f32 %v5212_v31, %v5026_v40  ;;  %v590_v40 = vmul.f32 %v5212_v31, %v5038_v44  ;;  %v5272_v44 = vrot.slane %v5238_v1, %v5200_v29  ;;  %v788_v54 = vmul.f32 %v5205_v62, %v5083_v59 }
 0x21d   : > { %v606_v55 = vmul.f32 %v5212_v31, %v5086_v60  ;;  %v950_v34 = vmul.f32 %v5226_v20, %v837_v26  ;;  %v5340_v57 = vrot.slane %v1453_v12, %v5208_v30  ;;  %v5346_v59 = vadd.f32 %v782_v13, %v598_v39 }
 0x21e   : > { %8349 = vst [vmem:[#allocation60_spill] sm:$0xff] %v5272_v44  ;;  %v5278_v25 = vadd.f32 %v770_v36, %v586_v23  ;;  %v5292_v44 = vadd.s32 3, %v5228_v18  ;;  %v5294_v37 = vadd.f32 %v774_v41, %v590_v40  ;;  %v596_v36 = vmul.f32 %v5212_v31, %v5056_v50 }
 0x21f   : > { %v853_v42 = vpop.permute.xlu1 %852  ;;  %v5261_v11 = vpop.permute.xlu0 %1060  ;;  %v5317_v40 = vadd.s32 4, %v5228_v18  ;;  %v5320_v50 = vrot.slane %v1453_v12, %v5197_v32  ;;  %v790_v41 = vmul.f32 %v5205_v62, %v5089_v61  ;;  %8353 = vst [vmem:[#allocation64_spill] sm:$0xff] %v5340_v57  ;;  %v5349_v60 = vadd.s32 5, %v5228_v18  ;;  %v8368_v57 = vld [vmem:[#allocation26_spill] sm:$0xff] }
 0x220   : > { %8347 = vst [vmem:[#allocation58_spill] sm:$0xff] %v5261_v11  ;;  %v5281_v11 = vadd.s32 16, %v5190_v33  ;;  %v5344_v58 = vadd.f32 %v780_v38, %v596_v36  ;;  %v5351_v31 = vadd.f32 %v784_v49, %v600_v48  ;;  %v952_v61 = vmul.f32 %v5226_v20, %v5217_v24 }
 0x221   : > { %8351 = vst [vmem:[#allocation62_spill] sm:$0xff] %v5317_v40  ;;  %8352 = vst [vmem:[#allocation63_spill] sm:$0xff] %v5320_v50  ;;  %v5342_v50 = vadd.f32 %v778_v17, %v594_v16  ;;  %v5356_v26 = vadd.s32 6, %v5228_v18  ;;  %v5359_v12 = vadd.s32 7, %v5228_v18  ;;  %v5361_v16 = vadd.f32 %v786_v52, %v602_v51 }
 0x222   : > { %8354 = vst [vmem:[#allocation65_spill] sm:$0xff] %v5349_v60  ;;  %v5363_v17 = vadd.f32 %v788_v54, %v604_v53  ;;  %v765_v36 = vmul.f32 %v5205_v62, %v5106_v5  ;;  %v954_v38 = vmul.f32 %v5226_v20, %v853_v42  ;;  %v5370_v24 = vadd.f32 %v790_v41, %v606_v55 }
 0x223   : > { %v861_v22 = vpop.permute.xlu1 %860  ;;  %v5302_v23 = vpop.permute.xlu0 %1068  ;;  %8355 = vst [vmem:[#allocation66_spill] sm:$0xff] %v5356_v26  ;;  %8356 = vst [vmem:[#allocation67_spill] sm:$0xff] %v5359_v12  ;;  %v980_v39 = vadd.f32 %v950_v34, %v796_v46  ;;  %vm1277_vm2 = vcmp.lt.s32.totalorder %v5281_v11, 17  ;;  %v5376_v49 = vadd.s32 8, %v5228_v18  ;;  %v5379_v51 = vadd.s32 9, %v5228_v18 }
 0x224   : > { %v5383_v5 = vmul.f32 %v5226_v20, %v5095_v63  ;;  %v5387_v42 = vmul.f32 %v5205_v62, %v5100_v3  ;;  %v5391_v46 = vmul.f32 %v5226_v20, %v5102_v4  ;;  %v5395_v52 = vrot.slane %v5238_v1, %v5197_v32  ;;  %vm1296_vm9 = vmand %vm1277_vm2, %vm8212_vm1 }
 0x225   : > { %8357 = vst [vmem:[#allocation68_spill] sm:$0xff] %v5376_v49  ;;  %8358 = vst [vmem:[#allocation69_spill] sm:$0xff] %v5379_v51  ;;  %v1134_v53 = vmul.f32 %v5251_v14, %v5183_v0  ;;  %v982_v54 = vadd.f32 %v952_v61, %v798_v47  ;;  %v956_v63 = vmul.f32 %v5226_v20, %v861_v22  ;;  %vm8205_vm4 = vcmp.ge.s32.totalorder %v5286_v19, 1 }
 0x226   : > { %8359 = vst [vmem:[#allocation70_spill] sm:$0xff] %v5395_v52  ;;  %v5403_v3 = vrot.slane %v5238_v1, %v5208_v30  ;;  %v5406_v55 = vadd.f32 %v765_v36, %v5244_v15  ;;  %v5410_v4 = vmul.f32 %v5226_v20, %v5108_v6  ;;  %v5414_v41 = vmul.f32 %v5205_v62, %v5112_v7  ;;  %v8365_v36 = vld [vmem:[#allocation24_spill] sm:$0xff]  ;;  %vm5556_vm11 = vmand %vm1296_vm9, %vm1322_vm3 }
 0x227   : > { %v5335_v29 = vpop.permute.xlu1 %868  ;;  %v5337_v56 = vpop.permute.xlu0 %1076  ;;  %v984_v0 = vadd.f32 %v954_v38, %v5278_v25  ;;  %v5419_v47 = vmul.f32 %v5226_v20, %v5114_v8  ;;  %v5423_v1 = vmul.f32 %v5205_v62, %v5118_v9  ;;  %v1136_v15 = vmul.f32 %v5251_v14, %v5188_v27  ;;  %v5437_v9 = vld [vmem:[#allocation7] ss:$0 sm:$0xff]  ;;  %v8362_v27 = vld [vmem:[#allocation57_spill] sm:$0xff] }
 0x228   : > { %8360 = vst [vmem:[#allocation71_spill] sm:$0xff] %v5403_v3  ;;  %v1164_v22 = vadd.f32 %v1134_v53, %v980_v39  ;;  %vm8204_vm5 = vcmp.lt.s32.totalorder %v5286_v19, 17  ;;  %v5433_v25 = vmul.f32 %v5226_v20, %v5120_v2  ;;  %v1138_v8 = vmul.f32 %v5251_v14, %v5194_v28  ;;  %v8366_v2 = vld [vmem:[#allocation25_spill] sm:$0xff]  ;;  %v8397_v3 = vld [vmem:[#allocation39_spill] sm:$0xff] }
 0x229   : > { %vm8202_vm6 = vcmp.ge.s32.totalorder %v5292_v44, 1  ;;  %v5442_v34 = vrot.slane %v8362_v27, %v5197_v32  ;;  %v5446_v61 = vrot.slane %v8362_v27, %v5208_v30  ;;  %v5450_v38 = vmul.f32 %v5205_v62, %v8365_v36  ;;  %v8370_v32 = vld [vmem:[#allocation27_spill] sm:$0xff]  ;;  %v8372_v27 = vld [vmem:[#allocation28_spill] sm:$0xff]  ;;  %vm5577_vm13 = vmand %vm8205_vm4, %vm8204_vm5 }
 0x22a   : > { %8361 = vst [vmem:[#allocation72_spill] sm:$0xff] %v5433_v25  ;;  %v5454_v39 = vmul.f32 %v5226_v20, %v8366_v2  ;;  %v1166_v28 = vadd.f32 %v1136_v15, %v982_v54  ;;  %v986_v53 = vadd.f32 %v956_v63, %v5283_v35  ;;  %v5459_v25 = vmul.f32 %v5205_v62, %v8368_v57  ;;  %v8376_v35 = vld [vmem:[#allocation50_spill] sm:$0xff]  ;;  %vm5590_vm14 = vmand %vm1272_vm0, %vm8202_vm6 }
 0x22b   : > { %v877_v13 = vpop.permute.xlu1 %876  ;;  %v5373_v48 = vpop.permute.xlu0 %1084  ;;  %8363 = vst [vmem:[#allocation57_spill] sm:$0xff] %v5442_v34  ;;  %8364 = vst [vmem:[#allocation73_spill] sm:$0xff] %v5446_v61  ;;  %v5463_v34 = vmul.f32 %v5226_v20, %v8370_v32  ;;  %v5467_v30 = vmul.f32 %v5205_v62, %v8372_v27  ;;  %v1168_v36 = vadd.f32 %v1138_v8, %v984_v0  ;;  %v8374_v61 = vld [vmem:[#allocation29_spill] sm:$0xff]  ;;  %vm8203_vm7 = vcmp.lt.s32.totalorder %v5292_v44, 17  ;;  %v8377_v27 = vld [vmem:[#allocation30_spill] sm:$0xff] }
 0x22c   : > { %8367 = vst [vmem:[#allocation24_spill] sm:$0xff] %v5454_v39  ;;  %8369 = vst [vmem:[#allocation25_spill] sm:$0xff] %v5459_v25  ;;  %v5471_v2 = vmul.f32 %v5226_v20, %v8374_v61  ;;  %v1201_v54 = vadd.f32 %v5437_v9, %v1164_v22  ;;  %v1140_v63 = vmul.f32 %v5251_v14, %v8376_v35  ;;  %v8379_v8 = vld [vmem:[#allocation31_spill] sm:$0xff]  ;;  %v8381_v22 = vld [vmem:[#allocation32_spill] sm:$0xff]  ;;  %vm8209_vm12 = vcmp.ge.s32.totalorder %v5349_v60, 1 }
 0x22d   : > { %8371 = vst [vmem:[#allocation26_spill] sm:$0xff] %v5463_v34  ;;  %8373 = vst [vmem:[#allocation27_spill] sm:$0xff] %v5467_v30  ;;  %v958_v32 = vmul.f32 %v5226_v20, %v5335_v29  ;;  %v5483_v0 = vmul.f32 %v5205_v62, %v8377_v27  ;;  %v5487_v61 = vmul.f32 %v5226_v20, %v8379_v8  ;;  %v8383_v35 = vld [vmem:[#allocation33_spill] sm:$0xff]  ;;  %v8385_v29 = vld [vmem:[#allocation34_spill] sm:$0xff]  ;;  %vm8210_vm15 = vcmp.ge.s32.totalorder %v5317_v40, 1 }
 0x22e   : > { %8375 = vst [vmem:[#allocation28_spill] sm:$0xff] %v5471_v2  ;;  %v5491_v2 = vmul.f32 %v5205_v62, %v8381_v22  ;;  %v5495_v34 = vmul.f32 %v5226_v20, %v8383_v35  ;;  %v5499_v39 = vmul.f32 %v5205_v62, %v8385_v29  ;;  %v1203_v8 = vadd.f32 %v5437_v9, %v1166_v28 }
 0x22f   : > { %v885_v6 = vpop.permute.xlu1 %884  ;;  %v5429_v7 = vpop.permute.xlu0 %1092  ;;  %8378 = vst [vmem:[#allocation29_spill] sm:$0xff] %v5483_v0  ;;  %8380 = vst [vmem:[#allocation50_spill] sm:$0xff] %v5487_v61  ;;  %v1170_v22 = vadd.f32 %v1140_v63, %v986_v53  ;;  %v960_v61 = vmul.f32 %v5226_v20, %v877_v13  ;;  %v8393_v53 = vld [vmem:[#allocation37_spill] sm:$0xff]  ;;  %v8395_v63 = vld [vmem:[#allocation38_spill] sm:$0xff]  ;;  %v5538_v52 = vmul.f32 %v5226_v20, %v8397_v3  ;;  %vm8208_vm8 = vcmp.lt.s32.totalorder %v5317_v40, 17 }
 0x230   : > { %8382 = vst [vmem:[#allocation30_spill] sm:$0xff] %v5491_v2  ;;  %8384 = vst [vmem:[#allocation31_spill] sm:$0xff] %v5495_v34  ;;  %v8389_v2 = vld [vmem:[#allocation35_spill] sm:$0xff]  ;;  %v8391_v34 = vld [vmem:[#allocation36_spill] sm:$0xff]  ;;  %v962_v28 = vmul.f32 %v5226_v20, %v885_v6  ;;  %v5527_v13 = vmul.f32 %v5226_v20, %v8393_v53  ;;  %v1233_v3 = vmax.f32 %v1203_v8, 0.0  ;;  %vm8211_vm9 = vcmp.lt.s32.totalorder %v5349_v60, 17 }
 0x231   : > { %8386 = vst [vmem:[#allocation32_spill] sm:$0xff] %v5499_v39  ;;  %v5513_v35 = vmul.f32 %v5226_v20, %v8389_v2  ;;  %v5517_v29 = vmul.f32 %v5205_v62, %v8391_v34  ;;  %v1205_v39 = vadd.f32 %v5437_v9, %v1168_v36  ;;  %v5531_v2 = vmul.f32 %v5205_v62, %v8395_v63  ;;  %v8399_v36 = vld [vmem:[#allocation40_spill] sm:$0xff]  ;;  %v8401_v53 = vld [vmem:[#allocation41_spill] sm:$0xff]  ;;  %v8403_v63 = vld [vmem:[#allocation47_spill] sm:$0xff] }
 0x232   : > { %8394 = vst [vmem:[#allocation35_spill] sm:$0xff] %v5527_v13  ;;  %v988_v34 = vadd.f32 %v958_v32, %v5294_v37  ;;  %8398 = vst [vmem:[#allocation37_spill] sm:$0xff] %v5538_v52  ;;  %v5542_v6 = vmul.f32 %v5205_v62, %v8399_v36  ;;  %v5546_v13 = vmul.f32 %v5226_v20, %v8401_v53  ;;  %v8406_v32 = vld [vmem:[#allocation55_spill] sm:$0xff] }
 0x233   : > { %v893_v57 = vpop.permute.xlu1 %892  ;;  %v5479_v15 = vpop.permute.xlu0 %1100  ;;  %8390 = vst [vmem:[#allocation33_spill] sm:$0xff] %v5513_v35  ;;  %8392 = vst [vmem:[#allocation34_spill] sm:$0xff] %v5517_v29  ;;  %v1231_v35 = vmax.f32 %v1201_v54, 0.0  ;;  %v949_v54 = vmul.f32 %v5226_v20, %v8403_v63  ;;  %v1142_v36 = vmul.f32 %v5251_v14, %v8406_v32  ;;  %v1207_v53 = vadd.f32 %v5437_v9, %v1170_v22  ;;  %v8407_v63 = vld [vmem:[#allocation42_spill] sm:$0xff]  ;;  %v8409_v52 = vld [vmem:[#allocation43_spill] sm:$0xff] }
 0x234   : > { %8396 = vst [vmem:[#allocation36_spill] sm:$0xff] %v5531_v2  ;;  %8400 = vst [vmem:[#allocation38_spill] sm:$0xff] %v5542_v6  ;;  %v5567_v27 = vmul.f32 %v5205_v62, %v8407_v63  ;;  %v5571_v6 = vmul.f32 %v5251_v14, %v8409_v52  ;;  %v1235_v22 = vmax.f32 %v1205_v39, 0.0  ;;  %v8412_v32 = vld [vmem:[#allocation58_spill] sm:$0xff]  ;;  %v8417_v2 = vld [vmem:[#allocation45_spill] sm:$0xff] }
 0x235   : > { %8402 = vst [vmem:[#allocation39_spill] sm:$0xff] %v5546_v13  ;;  %v990_v13 = vadd.f32 %v960_v61, %v5296_v21  ;;  %v992_v21 = vadd.f32 %v962_v28, %v5342_v50  ;;  %v5582_v61 = vsel %vm1334_vm10, %v1231_v35, 0.0  ;;  %v1144_v63 = vmul.f32 %v5251_v14, %v8412_v32  ;;  %v8415_v28 = vld [vmem:[#allocation44_spill] sm:$0xff]  ;;  %vm1340_vm10 = vmand %vm5590_vm14, %vm8203_vm7 }
 0x236   : > { %8408 = vst [vmem:[#allocation40_spill] sm:$0xff] %v5567_v27  ;;  %v1172_v27 = vadd.f32 %v1142_v36, %v988_v34  ;;  %v964_v50 = vmul.f32 %v5226_v20, %v893_v57  ;;  %v5601_v32 = vmul.f32 %v5205_v62, %v8415_v28  ;;  %v5605_v30 = vmul.f32 %v5226_v20, %v8417_v2  ;;  %v8418_v62 = vld [vmem:[#allocation60_spill] sm:$0xff]  ;;  %vm5710_vm5 = vmand %vm8210_vm15, %vm8208_vm8 }
 0x237   : > { %v901_v29 = vpop.permute.xlu1 %900  ;;  %v5534_v0 = vpop.permute.xlu0 %1108  ;;  %v5608_v19 = vadd.f32 %v949_v54, %v5406_v55  ;;  %v1146_v34 = vmul.f32 %v5251_v14, %v5302_v23  ;;  %v5615_v57 = vsel %vm5556_vm11, %v1233_v3, 0.0  ;;  %v1237_v36 = vmax.f32 %v1207_v53, 0.0  ;;  %vm1302_vm11 = vmand %vm1277_vm2, %vm8202_vm6 }
 0x238   : > { %8416 = vst [vmem:[#allocation41_spill] sm:$0xff] %v5601_v32  ;;  %v1174_v25 = vadd.f32 %v1144_v63, %v990_v13  ;;  %v966_v28 = vmul.f32 %v5226_v20, %v901_v29  ;;  %v5620_v2 = vmul.f32 %v8418_v62, %v5582_v61  ;;  %v5624_v55 = vmul.f32 %v5276_v45, %v5582_v61  ;;  %vm5667_vm14 = vmand %vm1302_vm11, %vm8203_vm7 }
 0x239   : > { %v5628_v23 = vsel %vm5577_vm13, %v1235_v22, 0.0  ;;  %v1176_v13 = vadd.f32 %v1146_v34, %v992_v21  ;;  %v1209_v54 = vadd.f32 %v5437_v9, %v1172_v27  ;;  %v994_v37 = vadd.f32 %v964_v50, %v5344_v58  ;;  %vm5685_vm11 = vmand %vm1272_vm0, %vm8209_vm12  ;;  %v8426_v22 = vld [vmem:[#allocation53_spill] sm:$0xff] }
 0x23a   : > { %v1148_v27 = vmul.f32 %v5251_v14, %v5337_v56  ;;  %v5651_v58 = vmul.f32 %v8418_v62, %v5628_v23  ;;  %v5653_v21 = vsel %vm1340_vm10, %v1237_v36, 0.0  ;;  %v1211_v52 = vadd.f32 %v5437_v9, %v1174_v25  ;;  %vm5723_vm4 = vmand %vm5685_vm11, %vm8211_vm9 }
 0x23b   : > { %v909_v39 = vpop.permute.xlu1 %908  ;;  %v5597_v35 = vpop.permute.xlu0 %1116  ;;  %v996_v50 = vadd.f32 %v966_v28, %v5346_v59  ;;  %vm8214_vm13 = vcmp.ge.s32.totalorder %v5359_v12, 1  ;;  %v1213_v56 = vadd.f32 %v5437_v9, %v1176_v13  ;;  %v1239_v25 = vmax.f32 %v1209_v54, 0.0 }
 0x23c   : > { %v968_v3 = vmul.f32 %v5226_v20, %v909_v39  ;;  %8420 = vst [vmem:[#allocation55_spill] sm:$0xff] %v5651_v58  ;;  %v5660_v39 = vmul.f32 %v5289_v10, %v5628_v23  ;;  %v1150_v59 = vmul.f32 %v5251_v14, %v5373_v48  ;;  %v1178_v28 = vadd.f32 %v1148_v27, %v994_v37 }
 0x23d   : > { %vm1287_vm10 = vcmp.ge.s32.totalorder %v5356_v26, 1  ;;  %vm1327_vm6 = vcmp.lt.s32.totalorder %v5356_v26, 17  ;;  %v5679_v8 = vmul.f32 %v8418_v62, %v5653_v21  ;;  %vm1328_vm7 = vcmp.lt.s32.totalorder %v5359_v12, 17 }
 0x23e   : > { %v998_v34 = vadd.f32 %v968_v3, %v5351_v31  ;;  %v5693_v37 = vmul.f32 %v5276_v45, %v5628_v23  ;;  %v1241_v3 = vmax.f32 %v1211_v52, 0.0  ;;  %v1152_v27 = vmul.f32 %v5251_v14, %v5429_v7 }
 0x23f   : > { %v917_v53 = vpop.permute.xlu1 %916  ;;  %v5638_v63 = vpop.permute.xlu0 %1124  ;;  %8423 = vst [vmem:[#allocation42_spill] sm:$0xff] %v5679_v8  ;;  %v5704_v8 = vmul.f32 %v5289_v10, %v5653_v21  ;;  %v1243_v7 = vmax.f32 %v1213_v56, 0.0  ;;  %vm1281_vm8 = vcmp.ge.s32.totalorder %v5228_v18, 1  ;;  %vm8216_vm11 = vcmp.ge.s32.totalorder %v5376_v49, 1 }
 0x240   : > { %8419 = vst [vmem:[#allocation47_spill] sm:$0xff] %v5638_v63  ;;  %v970_v32 = vmul.f32 %v5226_v20, %v917_v53  ;;  %v1180_v53 = vadd.f32 %v1150_v59, %v996_v50  ;;  %v5700_v63 = vmul.f32 %v5276_v45, %v5653_v21  ;;  %v5717_v59 = vsel %vm5667_vm14, %v1239_v25, 0.0  ;;  %vm5736_vm14 = vmand %vm1277_vm2, %vm8209_vm12  ;;  %v8433_v25 = vld [vmem:[#allocation59_spill] sm:$0xff] }
 0x241   : > { %v1182_v58 = vadd.f32 %v1152_v27, %v998_v34  ;;  %v1154_v34 = vmul.f32 %v5251_v14, %v5479_v15  ;;  %v5745_v48 = vsel %vm5710_vm5, %v1241_v3, 0.0  ;;  %v1156_v27 = vmul.f32 %v5251_v14, %v5534_v0  ;;  %vm5764_vm15 = vmand %vm5736_vm14, %vm8211_vm9 }
 0x242   : > { %v1000_v50 = vadd.f32 %v970_v32, %v5361_v16  ;;  %8434 = vst [vmem:[#allocation43_spill] sm:$0xff] %v5745_v48  ;;  %vm8215_vm12 = vcmp.lt.s32.totalorder %v5376_v49, 17  ;;  %vm1321_vm5 = vcmp.lt.s32.totalorder %v5228_v18, 17  ;;  %v5779_v36 = vmul.f32 %v5276_v45, %v5745_v48  ;;  %vm1350_vm14 = vmand %vm1287_vm10, %vm1327_vm6 }
 0x243   : > { %v925_v13 = vpop.permute.xlu1 %924  ;;  %vm1290_vm9 = vcmp.ge.s32.totalorder %v5379_v51, 1  ;;  %v1158_v15 = vmul.f32 %v5251_v14, %v5597_v35 }
 0x244   : > { %v972_v54 = vmul.f32 %v5226_v20, %v925_v13  ;;  %v428_v31 = vpop.permute.xlu0 %427  ;;  %v1184_v52 = vadd.f32 %v1154_v34, %v1000_v50  ;;  %v5775_v50 = vmul.f32 %v8418_v62, %v5745_v48 }
 0x245   : > { %v579_v29 = vmul.f32 %v8426_v22, %v428_v31  ;;  %v1215_v31 = vadd.f32 %v5437_v9, %v1178_v28 }
 0x246   : > { %v1002_v40 = vadd.f32 %v972_v54, %v5363_v17  ;;  %v1217_v54 = vadd.f32 %v5437_v9, %v1180_v53  ;;  %8439 = vst [vmem:[#allocation45_spill] sm:$0xff] %v5775_v50 }
 0x247   : > { %v933_v56 = vpop.permute.xlu1 %932  ;;  %v793_v17 = vadd.f32 %v8433_v25, %v579_v29  ;;  %v5756_v29 = vsel %vm5723_vm4, %v1243_v7, 0.0  ;;  %v1245_v53 = vmax.f32 %v1215_v31, 0.0  ;;  %v1219_v25 = vadd.f32 %v5437_v9, %v1182_v58  ;;  %vm1312_vm4 = vmand %vm1272_vm0, %vm8214_vm13 }
 0x248   : > { %v433_v28 = vpop.permute.xlu0 %432  ;;  %8435 = vst [vmem:[#allocation58_spill] sm:$0xff] %v5756_v29  ;;  %v974_v7 = vmul.f32 %v5226_v20, %v933_v56  ;;  %v5788_v31 = vmul.f32 %v5289_v10, %v5745_v48  ;;  %v1247_v34 = vmax.f32 %v1217_v54, 0.0  ;;  %v5799_v16 = vmul.f32 %v5276_v45, %v5756_v29  ;;  %vm5813_vm1 = vmand %vm1312_vm4, %vm1328_vm7  ;;  %v6064_v48 = vld [vmem:[#allocation10] ss:$0 sm:$0xff] }
 0x249   : > { %v580_v32 = vmul.f32 %v8426_v22, %v433_v28  ;;  %v977_v3 = vadd.f32 %v5605_v30, %v793_v17  ;;  %v1186_v28 = vadd.f32 %v1156_v27, %v1002_v40  ;;  %v5795_v30 = vmul.f32 %v8418_v62, %v5756_v29 }
 0x24a   : > { %8440 = vst [vmem:[#allocation60_spill] sm:$0xff] %v5788_v31  ;;  %8442 = vst [vmem:[#allocation59_spill] sm:$0xff] %v5799_v16  ;;  %v1249_v54 = vmax.f32 %v1219_v25, 0.0  ;;  %v1004_v27 = vadd.f32 %v974_v7, %v5370_v24  ;;  %v5834_v7 = vsel %vm1350_vm14, %v1247_v34, 0.0  ;;  %vm1330_vm4 = vcmp.lt.s32.totalorder %v5379_v51, 17 }
 0x24b   : > { %v5770_v13 = vpop.permute.xlu1 %940  ;;  %v1161_v40 = vadd.f32 %v5571_v6, %v977_v3  ;;  %v794_v17 = vadd.f32 %v5387_v42, %v580_v32  ;;  %8441 = vst [vmem:[#allocation53_spill] sm:$0xff] %v5795_v30  ;;  %v1221_v6 = vadd.f32 %v5437_v9, %v1184_v52  ;;  %v5809_v42 = vsel %vm5764_vm15, %v1245_v53, 0.0  ;;  %vm5828_vm15 = vmand %vm1277_vm2, %vm8214_vm13 }
 0x24c   : > { %8438 = vst [vmem:[#allocation44_spill] sm:$0xff] %v5770_v13  ;;  %v448_v58 = vpop.permute.xlu0 %447  ;;  %8443 = vst [vmem:[#allocation74_spill] sm:$0xff] %v5809_v42  ;;  %v1223_v3 = vadd.f32 %v5437_v9, %v1186_v28  ;;  %v5821_v52 = vmul.f32 %v5289_v10, %v5756_v29  ;;  %v5850_v35 = vsel %vm5813_vm1, %v1249_v54, 0.0  ;;  %v5866_v32 = vmul.f32 %v5276_v45, %v5834_v7 }
 0x24d   : > { %v1198_v53 = vadd.f32 %v5437_v9, %v1161_v40  ;;  %v583_v25 = vmul.f32 %v8426_v22, %v448_v58  ;;  %8449 = vst [vmem:[#allocation76_spill] sm:$0xff] %v5834_v7  ;;  %v978_v56 = vadd.f32 %v5383_v5, %v794_v17  ;;  %v1251_v58 = vmax.f32 %v1221_v6, 0.0  ;;  %vm1291_vm14 = vmand %vm1272_vm0, %vm1281_vm8 }
 0x24e   : > { %8446 = vst [vmem:[#allocation75_spill] sm:$0xff] %v5821_v52  ;;  %8450 = vst [vmem:[#allocation77_spill] sm:$0xff] %v5850_v35  ;;  %v1253_v34 = vmax.f32 %v1223_v3, 0.0  ;;  %v1188_v17 = vadd.f32 %v1158_v15, %v1004_v27  ;;  %v5890_v40 = vmul.f32 %v5276_v45, %v5850_v35  ;;  %v5912_v5 = vmul.f32 %v5289_v10, %v5850_v35 }
 0x24f   : > { %vm5856_vm13 = vmand %vm5828_vm15, %vm1328_vm7  ;;  %8454 = vst [vmem:[#allocation79_spill] sm:$0xff] %v5866_v32  ;;  %v1228_v54 = vmax.f32 %v1198_v53, 0.0  ;;  %v797_v0 = vadd.f32 %v5414_v41, %v583_v25 }
 0x250   : > { %v1013_v28 = vpop.permute.xlu1 %1012  ;;  %v458_v24 = vpop.permute.xlu0 %457  ;;  %vm1356_vm1 = vmand %vm8216_vm11, %vm8215_vm12  ;;  %8458 = vst [vmem:[#allocation81_spill] sm:$0xff] %v5890_v40  ;;  %v5894_v30 = vsel %vm5856_vm13, %v1251_v58, 0.0  ;;  %vm1751_vm12 = vcmp.lt.s32.totalorder %v5190_v33, 6 }
 0x251   : > { %v1132_v20 = vmul.f32 %v5251_v14, %v1013_v28  ;;  %v5862_v28 = vmul.f32 %v8418_v62, %v5834_v7  ;;  %vm5879_vm15 = vmand %vm1291_vm14, %vm1321_vm5  ;;  %v585_v27 = vmul.f32 %v8426_v22, %v458_v24  ;;  %8459 = vst [vmem:[#allocation82_spill] sm:$0xff] %v5894_v30  ;;  %vm1592_vm14 = vcmp.lt.s32.totalorder %v5190_v33, 7 }
 0x252   : > { %vm5905_vm11 = vmand %vm1277_vm2, %vm1281_vm8  ;;  %8463 = vst [vmem:[#allocation84_spill] sm:$0xff] %v5912_v5  ;;  %v8484_v5 = vld [vmem:[#allocation57_spill] sm:$0xff] }
 0x253   : > { %v1162_v6 = vadd.f32 %v1132_v20, %v978_v56  ;;  %8453 = vst [vmem:[#allocation78_spill] sm:$0xff] %v5862_v28  ;;  %v5875_v20 = vmul.f32 %v5289_v10, %v5834_v7  ;;  %v5896_v28 = vsel %vm1356_vm1, %v1253_v34, 0.0  ;;  %vm5919_vm13 = vmand %vm1281_vm8, %vm1321_vm5  ;;  %v799_v41 = vadd.f32 %v5423_v1, %v585_v27  ;;  %v8492_v7 = vld [vmem:[#allocation63_spill] sm:$0xff] }
 0x254   : > { %v1017_v13 = vpop.permute.xlu1 %1016  ;;  %v468_v3 = vpop.permute.xlu0 %467  ;;  %8460 = vst [vmem:[#allocation83_spill] sm:$0xff] %v5896_v28  ;;  %vm5930_vm1 = vmand %vm1272_vm0, %vm1290_vm9  ;;  %v5943_v12 = vmul.f32 %v5276_v45, %v5896_v28 }
 0x255   : > { %8455 = vst [vmem:[#allocation80_spill] sm:$0xff] %v5875_v20  ;;  %v1199_v56 = vadd.f32 %v5437_v9, %v1162_v6  ;;  %v1133_v53 = vmul.f32 %v5251_v14, %v1017_v13  ;;  %v1225_v6 = vadd.f32 %v5437_v9, %v1188_v17  ;;  %v587_v49 = vmul.f32 %v8426_v22, %v468_v3  ;;  %vm1333_vm8 = vmand %vm5905_vm11, %vm1321_vm5 }
 0x256   : > { %8468 = vst [vmem:[#allocation85_spill] sm:$0xff] %v5943_v12  ;;  %vm8470_vm11 = vcmp.ge.s32.totalorder %v5268_v43, 1 }
 0x257   : > { %v1229_v13 = vmax.f32 %v1199_v56, 0.0  ;;  %v1163_v58 = vadd.f32 %v1133_v53, %v5608_v19  ;;  %v1421_v56 = vsel %vm5879_vm15, %v1228_v54, 0.0  ;;  %v981_v19 = vadd.f32 %v5391_v46, %v797_v0  ;;  %vm1358_vm15 = vmand %vm5930_vm1, %vm1330_vm4 }
 0x258   : > { %v1025_v25 = vpop.permute.xlu1 %1024  ;;  %v478_v53 = vpop.permute.xlu0 %477  ;;  %v1255_v1 = vmax.f32 %v1225_v6, 0.0  ;;  %v1458_v18 = vmul.f32 %v8418_v62, %v1421_v56  ;;  %vm1335_vm5 = vmand %vm8470_vm11, %vm1322_vm3 }
 0x259   : > { %v1200_v40 = vadd.f32 %v5437_v9, %v1163_v58  ;;  %v1135_v54 = vmul.f32 %v5251_v14, %v1025_v25  ;;  %v1422_v3 = vsel %vm5919_vm13, %v1229_v13, 0.0  ;;  %v5953_v58 = vmul.f32 %v5289_v10, %v5896_v28 }
 0x25a   : > { %v1731_v15 = vrot.slane %v1422_v3, 2  ;;  %v589_v34 = vmul.f32 %v8426_v22, %v478_v53  ;;  %v5971_v46 = vsel %vm1358_vm15, %v1255_v1, 0.0  ;;  %v1510_v28 = vadd.f32 %v5624_v55, %v1458_v18  ;;  %v8475_v55 = vld [vmem:[#allocation27_spill] sm:$0xff] }
 0x25b   : > { %v1230_v27 = vmax.f32 %v1200_v40, 0.0  ;;  %v1165_v25 = vadd.f32 %v1135_v54, %v981_v19  ;;  %8469 = vst [vmem:[#allocation86_spill] sm:$0xff] %v5953_v58  ;;  %v801_v40 = vadd.f32 %v5450_v38, %v587_v49  ;;  %v983_v19 = vadd.f32 %v5410_v4, %v799_v41  ;;  %8471 = vst [vmem:[#allocation87_spill] sm:$0xff] %v5971_v46 }
 0x25c   : > { %v1033_v6 = vpop.permute.xlu1 %1032  ;;  %v488_v24 = vpop.permute.xlu0 %487  ;;  %v1572_v54 = vrot.slane %v1422_v3, 1  ;;  %v1562_v38 = vrot.slane %v1421_v56, 1 }
 0x25d   : > { %v1423_v13 = vsel %vm1333_vm8, %v1230_v27, 0.0  ;;  %v1202_v17 = vadd.f32 %v5437_v9, %v1165_v25  ;;  %v1137_v0 = vmul.f32 %v5251_v14, %v1033_v6  ;;  %v591_v49 = vmul.f32 %v8426_v22, %v488_v24  ;;  %v8472_v24 = vld [vmem:[#allocation25_spill] sm:$0xff] }
 0x25e   : > { %v1582_v27 = vrot.slane %v1423_v13, 1  ;;  %v1721_v25 = vrot.slane %v1421_v56, 2  ;;  %v1741_v4 = vrot.slane %v1423_v13, 2  ;;  %v985_v43 = vadd.f32 %v5419_v47, %v801_v40  ;;  %v8473_v56 = vld [vmem:[#allocation61_spill] sm:$0xff] }
 0x25f   : > { %v1232_v51 = vmax.f32 %v1202_v17, 0.0  ;;  %v1167_v41 = vadd.f32 %v1137_v0, %v983_v19  ;;  %v1603_v1 = vsel %vm1592_vm14, %v1562_v38, %v1572_v54  ;;  %v803_v46 = vadd.f32 %v8472_v24, %v589_v34  ;;  %v8476_v38 = vld [vmem:[#allocation70_spill] sm:$0xff]  ;;  %v8477_v24 = vld [vmem:[#allocation71_spill] sm:$0xff] }
 0x260   : > { %v1041_v12 = vpop.permute.xlu1 %1040  ;;  %v1762_v6 = vsel %vm1751_vm12, %v1721_v25, %v1731_v15  ;;  %vm8474_vm3 = vcmp.ge.s32.totalorder %v8473_v56, 1  ;;  %v805_v0 = vadd.f32 %v8475_v55, %v591_v49  ;;  %v498_v18 = vpop.permute.xlu0 %497  ;;  %v1459_v13 = vmul.f32 %v8418_v62, %v1422_v3 }
 0x261   : > { %v1425_v58 = vsel %vm1335_vm5, %v1232_v51, 0.0  ;;  %v1139_v53 = vmul.f32 %v5251_v14, %v1041_v12  ;;  %vm1297_vm13 = vmand %vm1272_vm0, %vm8474_vm3  ;;  %v1593_v51 = vsel %vm1592_vm14, %v1572_v54, %v1582_v27  ;;  %v1204_v12 = vadd.f32 %v5437_v9, %v1167_v41 }
 0x262   : > { %v1573_v17 = vrot.slane %v1425_v58, 1  ;;  %v1732_v47 = vrot.slane %v1425_v58, 2  ;;  %v1752_v40 = vsel %vm1751_vm12, %v1731_v15, %v1741_v4  ;;  %v1495_v19 = vmul.f32 %v5276_v45, %v1425_v58  ;;  %vm8485_vm15 = vmmov %vm8474_vm3 }
 0x263   : > { %v1169_v34 = vadd.f32 %v1139_v53, %v985_v43  ;;  %v1617_v25 = vmul.f32 %v8476_v38, %v1603_v1  ;;  %v1776_v35 = vmul.f32 %v8477_v24, %v1762_v6  ;;  %v1461_v54 = vmul.f32 %v8418_v62, %v1425_v58  ;;  %v8481_v43 = vld [vmem:[#allocation72_spill] sm:$0xff]  ;;  %vm6023_vm11 = vmand %vm1277_vm2, %vm8485_vm15 }
 0x264   : > { %v8478_v27 = vrot.slane %v5582_v61, 1  ;;  %vm8479_vm1 = vcmp.lt.s32.totalorder %v8473_v56, 17  ;;  %v1618_v3 = vmul.f32 %v8476_v38, %v1593_v51  ;;  %v8480_v15 = vrot.slane %v5615_v57, 1 }
 0x265   : > { %vm1337_vm8 = vmand %vm1297_vm13, %vm8479_vm1  ;;  %v1234_v41 = vmax.f32 %v1204_v12, 0.0  ;;  %v987_v53 = vadd.f32 %v8481_v43, %v803_v46  ;;  %v1777_v58 = vmul.f32 %v8477_v24, %v1752_v40  ;;  %v8482_v1 = vrot.slane %v5582_v61, 2 }
 0x266   : > { %v1604_v49 = vsel %vm1592_vm14, %v8478_v27, %v1573_v17  ;;  %v1594_v4 = vsel %vm1592_vm14, %v1573_v17, %v8480_v15  ;;  %v593_v55 = vmul.f32 %v8426_v22, %v498_v18  ;;  %v8483_v27 = vld [vmem:[#allocation24_spill] sm:$0xff]  ;;  %v1511_v51 = vadd.f32 %v1495_v19, %v1459_v13  ;;  %v1049_v17 = vpop.permute.xlu1 %1048  ;;  %v508_v19 = vpop.permute.xlu0 %507  ;;  %v8489_v15 = vld [vmem:[#allocation73_spill] sm:$0xff]  ;;  %vm8491_vm5 = vmmov %vm8479_vm1 }
 0x267   : > { %v1763_v6 = vsel %vm1751_vm12, %v8482_v1, %v1732_v47  ;;  %v6016_v30 = vadd.f32 %v8483_v27, %v805_v0  ;;  %v1653_v20 = vmul.f32 %v8484_v5, %v1604_v49  ;;  %v1427_v32 = vsel %vm1337_vm8, %v1234_v41, 0.0  ;;  %vm1339_vm3 = vmand %vm6023_vm11, %vm8491_vm5 }
 0x268   : > { %v1206_v61 = vadd.f32 %v5437_v9, %v1169_v34  ;;  %v6029_v12 = vadd.f32 %v5693_v37, %v1461_v54  ;;  %v1654_v0 = vmul.f32 %v8484_v5, %v1594_v4  ;;  %v8488_v18 = vrot.slane %v5615_v57, 2 }
 0x269   : > { %v1564_v40 = vrot.slane %v1427_v32, 1  ;;  %v1812_v41 = vmul.f32 %v8489_v15, %v1763_v6  ;;  %v1530_v43 = vmul.f32 %v5289_v10, %v1427_v32  ;;  %v1723_v1 = vrot.slane %v1427_v32, 2 }
 0x26a   : > { %v1753_v13 = vsel %vm1751_vm12, %v1732_v47, %v8488_v18  ;;  %v1236_v27 = vmax.f32 %v1206_v61, 0.0  ;;  %v1619_v34 = vmul.f32 %v8476_v38, %v1604_v49  ;;  %v6040_v37 = vmul.f32 %v8476_v38, %v1594_v4  ;;  %v518_v31 = vpop.permute.xlu0 %517 }
 0x26b   : > { %v1496_v54 = vmul.f32 %v5276_v45, %v1427_v32  ;;  %v8490_v57 = vrot.slane %v5628_v23, 1  ;;  %v1547_v18 = vadd.f32 %v5660_v39, %v1511_v51  ;;  %v1669_v61 = vadd.f32 %v1653_v20, %v1617_v25  ;;  %v1057_v39 = vpop.permute.xlu1 %1056 }
 0x26c   : > { %v8493_v4 = vrot.slane %v5628_v23, 2  ;;  %v1670_v29 = vadd.f32 %v1654_v0, %v1618_v3  ;;  %v1813_v42 = vmul.f32 %v8489_v15, %v1753_v13  ;;  %v1828_v26 = vadd.f32 %v1812_v41, %v1776_v35 }
 0x26d   : > { %v1605_v47 = vsel %vm1592_vm14, %v1564_v40, %v8490_v57  ;;  %v1462_v40 = vmul.f32 %v8418_v62, %v1427_v32  ;;  %v8494_v57 = vld [vmem:[#allocation64_spill] sm:$0xff]  ;;  %v1546_v46 = vadd.f32 %v1530_v43, %v1510_v28  ;;  %v1429_v52 = vsel %vm1339_vm3, %v1236_v27, 0.0 }
 0x26e   : > { %v1689_v49 = vmul.f32 %v8492_v7, %v1605_v47  ;;  %v1764_v50 = vsel %vm1751_vm12, %v1723_v1, %v8493_v4  ;;  %v1778_v20 = vmul.f32 %v8477_v24, %v1763_v6  ;;  %v1512_v25 = vadd.f32 %v1496_v54, %v5620_v2  ;;  %v8497_v54 = vld [vmem:[#allocation29_spill] sm:$0xff] }
 0x26f   : > { %v1848_v56 = vmul.f32 %v8494_v57, %v1764_v50  ;;  %v1584_v51 = vrot.slane %v1429_v52, 1  ;;  %v1743_v16 = vrot.slane %v1429_v52, 2  ;;  %v1779_v3 = vmul.f32 %v8477_v24, %v1753_v13 }
 0x270   : > { %v1705_v60 = vadd.f32 %v1689_v49, %v1669_v61  ;;  %v1141_v32 = vmul.f32 %v5251_v14, %v1049_v17  ;;  %v1829_v4 = vadd.f32 %v1813_v42, %v1777_v58  ;;  %v8495_v35 = vrot.slane %v5628_v23, 1 }
 0x271   : > { %v1864_v0 = vadd.f32 %v1848_v56, %v1828_v26  ;;  %v8496_v6 = vrot.slane %v5628_v23, 2  ;;  %v1143_v52 = vmul.f32 %v5251_v14, %v1057_v39  ;;  %v6076_v26 = vadd.f32 %v5700_v63, %v1462_v40  ;;  %v528_v56 = vpop.permute.xlu0 %527 }
 0x272   : > { %v1880_v1 = vadd.f32 %v1705_v60, %v1546_v46  ;;  %v1595_v28 = vsel %vm1592_vm14, %v8495_v35, %v1584_v51  ;;  %v6079_v60 = vmul.f32 %v8476_v38, %v1605_v47  ;;  %v6083_v17 = vadd.f32 %v5704_v8, %v1512_v25 }
 0x273   : > { %v1754_v2 = vsel %vm1751_vm12, %v8496_v6, %v1743_v16  ;;  %v1690_v58 = vmul.f32 %v8492_v7, %v1595_v28  ;;  %v1655_v13 = vmul.f32 %v8484_v5, %v1605_v47  ;;  %v1171_v41 = vadd.f32 %v1141_v32, %v987_v53  ;;  %v1065_v47 = vpop.permute.xlu1 %1064  ;;  %v8500_v32 = vld [vmem:[#allocation62_spill] sm:$0xff] }
 0x274   : > { %v1896_v42 = vadd.f32 %v1880_v1, %v1864_v0  ;;  %v1849_v23 = vmul.f32 %v8494_v57, %v1754_v2  ;;  %v6088_v16 = vmul.f32 %v8477_v24, %v1764_v50  ;;  %v1814_v63 = vmul.f32 %v8489_v15, %v1764_v50 }
 0x275   : > { %v1706_v27 = vadd.f32 %v1690_v58, %v1670_v29  ;;  %v807_v61 = vadd.f32 %v8497_v54, %v593_v55  ;;  %v1208_v49 = vadd.f32 %v5437_v9, %v1171_v41  ;;  %v595_v8 = vmul.f32 %v8426_v22, %v508_v19 }
 0x276   : > { %v1919_v43 = vadd.f32 %v6064_v48, %v1896_v42  ;;  %v1173_v40 = vadd.f32 %v1143_v52, %v6016_v30  ;;  %v1656_v53 = vmul.f32 %v8484_v5, %v1595_v28  ;;  %v1865_v39 = vadd.f32 %v1849_v23, %v1829_v4  ;;  %v8506_v23 = vld [vmem:[#allocation32_spill] sm:$0xff] }
 0x277   : > { %v1881_v25 = vadd.f32 %v1706_v27, %v1547_v18  ;;  %vm8498_vm13 = vcmp.lt.s32.totalorder %v5292_v44, 17  ;;  %vm8499_vm1 = vcmp.ge.s32.totalorder %v5292_v44, 1  ;;  %v1671_v29 = vadd.f32 %v1655_v13, %v1619_v34 }
 0x278   : > { %v6096_v46 = vmax.f32 %v1919_v43, 0.0  ;;  %vm1341_vm8 = vmand %vm8499_vm1, %vm8498_vm13  ;;  %v1238_v50 = vmax.f32 %v1208_v49, 0.0  ;;  %v1210_v55 = vadd.f32 %v5437_v9, %v1173_v40  ;;  %v597_v19 = vmul.f32 %v8426_v22, %v518_v31  ;;  %v538_v43 = vpop.permute.xlu0 %537  ;;  %v8515_v31 = vld [vmem:[#allocation50_spill] sm:$0xff] }
 0x279   : > { %v1830_v30 = vadd.f32 %v1814_v63, %v1778_v20  ;;  %v1815_v51 = vmul.f32 %v8489_v15, %v1754_v2  ;;  %v1897_v0 = vadd.f32 %v1881_v25, %v1865_v39  ;;  %v1145_v1 = vmul.f32 %v5251_v14, %v1065_v47  ;;  %v8504_v20 = vld [vmem:[#allocation26_spill] sm:$0xff]  ;;  %v1073_v63 = vpop.permute.xlu1 %1072 }
 0x27a   : > { %1955 = vperm.xlu1 %4055, %v6096_v46   ;;  %v6109_v18 = vmul.f32 %v8476_v38, %v1595_v28  ;;  %v6112_v44 = vmul.f32 %v8477_v24, %v1754_v2  ;;  %v1431_v34 = vsel %vm1341_vm8, %v1238_v50, 0.0  ;;  %vm8501_vm15 = vcmp.ge.s32.totalorder %v8500_v32, 1  ;;  %v8505_v28 = vld [vmem:[#allocation30_spill] sm:$0xff] }
 0x27b   : > { %vm6118_vm11 = vmand %vm1272_vm0, %vm8501_vm15  ;;  %v991_v4 = vadd.f32 %v8504_v20, %v807_v61  ;;  %v1672_v35 = vadd.f32 %v1656_v53, %v6040_v37  ;;  %v1920_v6 = vadd.f32 %v6064_v48, %v1897_v0  ;;  %v809_v52 = vadd.f32 %v8505_v28, %v595_v8  ;;  %v8513_v25 = vld [vmem:[#allocation34_spill] sm:$0xff] }
 0x27c   : > { %v599_v2 = vmul.f32 %v8426_v22, %v528_v56  ;;  %v1575_v42 = vrot.slane %v1431_v34, 1  ;;  %v1734_v58 = vrot.slane %v1431_v34, 2  ;;  %v1240_v13 = vmax.f32 %v1210_v55, 0.0  ;;  %v8514_v55 = vld [vmem:[#allocation28_spill] sm:$0xff]  ;;  %vm8516_vm13 = vmmov %vm8501_vm15 }
 0x27d   : > { %v811_v41 = vadd.f32 %v8506_v23, %v597_v19  ;;  %v1831_v27 = vadd.f32 %v1815_v51, %v1779_v3  ;;  %v6128_v54 = vmax.f32 %v1920_v6, 0.0  ;;  %v1533_v61 = vmul.f32 %v5289_v10, %v1431_v34  ;;  %vm1305_vm1 = vmand %vm1277_vm2, %vm8516_vm13 }
 0x27e   : > { %vm8508_vm5 = vcmp.lt.s32.totalorder %v8500_v32, 17  ;;  %v1175_v37 = vadd.f32 %v1145_v1, %v991_v4  ;;  %v8509_v49 = vrot.slane %v5717_v59, 1  ;;  %v8510_v40 = vrot.slane %v5653_v21, 1  ;;  %v8522_v32 = vld [vmem:[#allocation42_spill] sm:$0xff]  ;;  %vm6274_vm13 = vmand %vm1272_vm0, %vm1287_vm10 }
 0x27f   : > { %8507 = vst [vmem:[#allocation25_spill] sm:$0xff] %v6128_v54  ;;  %vm1343_vm3 = vmand %vm6118_vm11, %vm8508_vm5  ;;  %v8511_v47 = vrot.slane %v5717_v59, 2  ;;  %v8512_v53 = vrot.slane %v5653_v21, 2  ;;  %v6156_v50 = vadd.f32 %v8513_v25, %v599_v2  ;;  %v6159_v19 = vadd.f32 %v8514_v55, %v809_v52  ;;  %1960 = vperm.xlu0 %4054, %v6128_v54   ;;  %v8518_v55 = vld [vmem:[#allocation43_spill] sm:$0xff] }
 0x280   : > { %v6139_v8 = vsel %vm1592_vm14, %v1575_v42, %v8509_v49  ;;  %v1606_v3 = vsel %vm1592_vm14, %v8510_v40, %v1575_v42  ;;  %v6162_v51 = vmul.f32 %v5251_v14, %v1073_v63  ;;  %v6165_v59 = vmul.f32 %v8426_v22, %v538_v43  ;;  %vm8520_vm8 = vmmov %vm8508_vm5 }
 0x281   : > { %v6149_v56 = vsel %vm1751_vm12, %v1734_v58, %v8511_v47  ;;  %v1765_v39 = vsel %vm1751_vm12, %v8512_v53, %v1734_v58  ;;  %v1691_v0 = vmul.f32 %v8492_v7, %v1606_v3  ;;  %v1692_v21 = vmul.f32 %v8492_v7, %v6139_v8  ;;  %vm1345_vm15 = vmand %vm1305_vm1, %vm8520_vm8 }
 0x282   : > { %v1433_v1 = vsel %vm1343_vm3, %v1240_v13, 0.0  ;;  %v6172_v20 = vadd.f32 %v8515_v31, %v811_v41  ;;  %v1499_v4 = vmul.f32 %v5276_v45, %v1431_v34  ;;  %v1850_v6 = vmul.f32 %v8494_v57, %v1765_v39  ;;  %vm1349_vm1 = vmand %vm6274_vm13, %vm1327_vm6 }
 0x283   : > { %v1851_v28 = vmul.f32 %v8494_v57, %v6149_v56  ;;  %v1212_v52 = vadd.f32 %v5437_v9, %v1175_v37  ;;  %v1465_v2 = vmul.f32 %v8418_v62, %v1431_v34  ;;  %v1549_v42 = vadd.f32 %v1533_v61, %v6029_v12  ;;  %v8517_v12 = vld [vmem:[#allocation55_spill] sm:$0xff]  ;;  %vm6343_vm8 = vmand %vm1277_vm2, %vm1287_vm10 }
 0x284   : > { %v1707_v58 = vadd.f32 %v1691_v0, %v1671_v29  ;;  %v1708_v23 = vadd.f32 %v1692_v21, %v1672_v35  ;;  %v1657_v13 = vmul.f32 %v8484_v5, %v1606_v3  ;;  %v1816_v41 = vmul.f32 %v8489_v15, %v1765_v39  ;;  %vm1351_vm10 = vmand %vm6343_vm8, %vm1327_vm6 }
 0x285   : > { %v1866_v63 = vadd.f32 %v1850_v6, %v1830_v30  ;;  %v1500_v43 = vmul.f32 %v5276_v45, %v1433_v1  ;;  %v1867_v49 = vadd.f32 %v1851_v28, %v1831_v27  ;;  %v1566_v40 = vrot.slane %v1433_v1, 1 }
 0x286   : > { %v1882_v37 = vadd.f32 %v1707_v58, %v6083_v17  ;;  %v1883_v34 = vadd.f32 %v1708_v23, %v1549_v42  ;;  %v1515_v29 = vadd.f32 %v1499_v4, %v8517_v12  ;;  %v1534_v35 = vmul.f32 %v5289_v10, %v1433_v1  ;;  %v8524_v12 = vld [vmem:[#allocation59_spill] sm:$0xff] }
 0x287   : > { %v1725_v61 = vrot.slane %v1433_v1, 2  ;;  %v1242_v47 = vmax.f32 %v1212_v52, 0.0  ;;  %v6192_v30 = vadd.f32 %v5779_v36, %v1465_v2  ;;  %v8519_v0 = vrot.slane %v8518_v55, 1 }
 0x288   : > { %v1898_v53 = vadd.f32 %v1882_v37, %v1866_v63  ;;  %v1899_v25 = vadd.f32 %v1883_v34, %v1867_v49  ;;  %v1658_v17 = vmul.f32 %v8484_v5, %v6139_v8  ;;  %v1673_v21 = vadd.f32 %v1657_v13, %v6079_v60  ;;  %v8523_v13 = vld [vmem:[#allocation60_spill] sm:$0xff] }
 0x289   : > { %v1607_v27 = vsel %vm1592_vm14, %v1566_v40, %v8519_v0  ;;  %v8521_v36 = vrot.slane %v8518_v55, 2  ;;  %v1832_v6 = vadd.f32 %v1816_v41, %v6088_v16  ;;  %v1466_v52 = vmul.f32 %v8418_v62, %v1433_v1 }
 0x28a   : > { %v1693_v31 = vmul.f32 %v8492_v7, %v1607_v27  ;;  %v1921_v28 = vadd.f32 %v6064_v48, %v1898_v53  ;;  %v1516_v2 = vadd.f32 %v1500_v43, %v8522_v32  ;;  %v1550_v42 = vadd.f32 %v1534_v35, %v6076_v26  ;;  %v1081_v43 = vpop.permute.xlu1 %1080 }
 0x28b   : > { %v1766_v4 = vsel %vm1751_vm12, %v1725_v61, %v8521_v36  ;;  %v1435_v23 = vsel %vm1345_vm15, %v1242_v47, 0.0  ;;  %v1551_v63 = vadd.f32 %v8523_v13, %v1515_v29  ;;  %v1922_v49 = vadd.f32 %v6064_v48, %v1899_v25  ;;  %v8530_v13 = vld [vmem:[#allocation65_spill] sm:$0xff] }
 0x28c   : > { %v1709_v58 = vadd.f32 %v1693_v31, %v1673_v21  ;;  %v1852_v60 = vmul.f32 %v8494_v57, %v1766_v4  ;;  %v6216_v37 = vmax.f32 %v1921_v28, 0.0  ;;  %v1586_v34 = vrot.slane %v1435_v23, 1 }
 0x28d   : > { %v1623_v16 = vmul.f32 %v8476_v38, %v1606_v3  ;;  %v1782_v41 = vmul.f32 %v8477_v24, %v1765_v39  ;;  %v1817_v26 = vmul.f32 %v8489_v15, %v6149_v56  ;;  %v6223_v35 = vadd.f32 %v8524_v12, %v1466_v52  ;;  %v8526_v3 = vld [vmem:[#allocation75_spill] sm:$0xff] }
 0x28e   : > { %v1868_v1 = vadd.f32 %v1852_v60, %v1832_v6  ;;  %v1884_v40 = vadd.f32 %v1709_v58, %v1550_v42  ;;  %v8525_v29 = vmov %v8519_v0  ;;  %v1745_v47 = vrot.slane %v1435_v23, 2  ;;  %1965 = vperm.xlu1 %4055, %v6216_v37   ;;  %v1089_v12 = vpop.permute.xlu1 %1088 }
 0x28f   : > { %v1597_v61 = vsel %vm1592_vm14, %v8525_v29, %v1586_v34  ;;  %v6231_v53 = vadd.f32 %v8526_v3, %v1516_v2  ;;  %v1674_v25 = vadd.f32 %v1658_v17, %v6109_v18  ;;  %v6235_v21 = vmax.f32 %v1922_v49, 0.0 }
 0x290   : > { %v1900_v39 = vadd.f32 %v1884_v40, %v1868_v1  ;;  %v1694_v0 = vmul.f32 %v8492_v7, %v1597_v61  ;;  %v8528_v31 = vmov %v8521_v36  ;;  %v1177_v6 = vadd.f32 %v6162_v51, %v6159_v19  ;;  %v548_v1 = vpop.permute.xlu0 %547 }
 0x291   : > { %8527 = vst [vmem:[#allocation61_spill] sm:$0xff] %v6235_v21  ;;  %v1756_v36 = vsel %vm1751_vm12, %v8528_v31, %v1745_v47  ;;  %v1149_v28 = vmul.f32 %v5251_v14, %v1081_v43  ;;  %v1659_v52 = vmul.f32 %v8484_v5, %v1607_v27  ;;  %v1818_v32 = vmul.f32 %v8489_v15, %v1766_v4 }
 0x292   : > { %v1923_v18 = vadd.f32 %v6064_v48, %v1900_v39  ;;  %v1710_v17 = vadd.f32 %v1694_v0, %v1674_v25  ;;  %v1833_v2 = vadd.f32 %v1817_v26, %v6112_v44  ;;  %v1853_v42 = vmul.f32 %v8494_v57, %v1756_v36  ;;  %1970 = vperm.xlu1 %4055, %v6235_v21  }
 0x293   : > { %v1214_v55 = vadd.f32 %v5437_v9, %v1177_v6  ;;  %v1179_v58 = vadd.f32 %v1149_v28, %v6172_v20  ;;  %v6253_v19 = vmul.f32 %v8476_v38, %v1607_v27  ;;  %v6256_v51 = vmul.f32 %v8477_v24, %v1766_v4  ;;  %v8537_v28 = vld [vmem:[#allocation74_spill] sm:$0xff] }
 0x294   : > { %v6258_v60 = vmax.f32 %v1923_v18, 0.0  ;;  %v1885_v23 = vadd.f32 %v1710_v17, %v1551_v63  ;;  %vm8531_vm11 = vcmp.lt.s32.totalorder %v8530_v13, 17  ;;  %vm8532_vm5 = vcmp.ge.s32.totalorder %v8530_v13, 1  ;;  %v558_v13 = vpop.permute.xlu0 %557 }
 0x295   : > { %vm1347_vm3 = vmand %vm8532_vm5, %vm8531_vm11  ;;  %v1660_v44 = vmul.f32 %v8484_v5, %v1597_v61  ;;  %v1869_v49 = vadd.f32 %v1853_v42, %v1833_v2  ;;  %v1244_v20 = vmax.f32 %v1214_v55, 0.0  ;;  %v1216_v34 = vadd.f32 %v5437_v9, %v1179_v58  ;;  %v8541_v55 = vld [vmem:[#allocation58_spill] sm:$0xff] }
 0x296   : > { %8529 = vst [vmem:[#allocation27_spill] sm:$0xff] %v6258_v60  ;;  %v1675_v27 = vadd.f32 %v1659_v52, %v1623_v16  ;;  %v1834_v40 = vadd.f32 %v1818_v32, %v1782_v41  ;;  %v1624_v4 = vmul.f32 %v8476_v38, %v6139_v8  ;;  %v1783_v63 = vmul.f32 %v8477_v24, %v6149_v56  ;;  %v8536_v56 = vld [vmem:[#allocation36_spill] sm:$0xff]  ;;  %v8539_v32 = vld [vmem:[#allocation31_spill] sm:$0xff] }
 0x297   : > { %1975 = vperm.xlu0 %4054, %v6258_v60   ;;  %v6280_v9 = vmul.f32 %v8476_v38, %v1597_v61  ;;  %v1819_v16 = vmul.f32 %v8489_v15, %v1756_v36  ;;  %v1901_v41 = vadd.f32 %v1885_v23, %v1869_v49  ;;  %v1437_v8 = vsel %vm1347_vm3, %v1244_v20, 0.0 }
 0x298   : > { %v1577_v29 = vrot.slane %v1437_v8, 1  ;;  %v815_v47 = vadd.f32 %v8536_v56, %v6165_v59  ;;  %v1246_v3 = vmax.f32 %v1216_v34, 0.0  ;;  %v603_v39 = vmul.f32 %v8426_v22, %v548_v1 }
 0x299   : > { %v1676_v25 = vadd.f32 %v1660_v44, %v1624_v4  ;;  %v1924_v0 = vadd.f32 %v6064_v48, %v1901_v41  ;;  %v1537_v31 = vmul.f32 %v5289_v10, %v1437_v8  ;;  %v1736_v6 = vrot.slane %v1437_v8, 2 }
 0x29a   : > { %v6293_v61 = vmul.f32 %v8477_v24, %v1756_v36  ;;  %v8538_v52 = vrot.slane %v8537_v28, 1  ;;  %v997_v18 = vadd.f32 %v8539_v32, %v6156_v50  ;;  %v1151_v17 = vmul.f32 %v5251_v14, %v1089_v12  ;;  %v8543_v50 = vld [vmem:[#allocation38_spill] sm:$0xff]  ;;  %v1097_v12 = vpop.permute.xlu1 %1096 }
 0x29b   : > { %v1835_v2 = vadd.f32 %v1819_v16, %v1783_v63  ;;  %v6304_v42 = vmax.f32 %v1924_v0, 0.0  ;;  %v8542_v58 = vrot.slane %v8541_v55, 1  ;;  %v1503_v44 = vmul.f32 %v5276_v45, %v1437_v8 }
 0x29c   : > { %v6299_v59 = vsel %vm1592_vm14, %v1577_v29, %v8538_v52  ;;  %v1439_v20 = vsel %vm1349_vm1, %v1246_v3, 0.0  ;;  %v6315_v34 = vadd.f32 %v8543_v50, %v603_v39  ;;  %v1553_v1 = vadd.f32 %v1537_v31, %v6192_v30  ;;  %v8546_v30 = vld [vmem:[#allocation33_spill] sm:$0xff] }
 0x29d   : > { %8540 = vst [vmem:[#allocation70_spill] sm:$0xff] %v6304_v42  ;;  %v1608_v36 = vsel %vm1592_vm14, %v8542_v58, %v1577_v29  ;;  %v1696_v23 = vmul.f32 %v8492_v7, %v6299_v59  ;;  %v8544_v63 = vrot.slane %v8537_v28, 2  ;;  %v8545_v16 = vrot.slane %v8541_v55, 2  ;;  %1980 = vperm.xlu1 %4055, %v6304_v42  }
 0x29e   : > { %v1695_v49 = vmul.f32 %v8492_v7, %v1608_v36  ;;  %v1181_v56 = vadd.f32 %v1151_v17, %v997_v18  ;;  %v6330_v3 = vmul.f32 %v8426_v22, %v558_v13  ;;  %v999_v39 = vadd.f32 %v8546_v30, %v815_v47  ;;  %v8549_v47 = vld [vmem:[#allocation45_spill] sm:$0xff] }
 0x29f   : > { %v1712_v4 = vadd.f32 %v1696_v23, %v1676_v25  ;;  %v6322_v26 = vsel %vm1751_vm12, %v1736_v6, %v8544_v63  ;;  %v1767_v41 = vsel %vm1751_vm12, %v8545_v16, %v1736_v6  ;;  %v1469_v25 = vmul.f32 %v8418_v62, %v1437_v8  ;;  %v8552_v63 = vld [vmem:[#allocation79_spill] sm:$0xff] }
 0x2a0   : > { %v1711_v29 = vadd.f32 %v1695_v49, %v1675_v27  ;;  %v1854_v0 = vmul.f32 %v8494_v57, %v1767_v41  ;;  %v1855_v31 = vmul.f32 %v8494_v57, %v6322_v26  ;;  %v1661_v6 = vmul.f32 %v8484_v5, %v1608_v36 }
 0x2a1   : > { %v1887_v28 = vadd.f32 %v1712_v4, %v1553_v1  ;;  %v1568_v32 = vrot.slane %v1439_v20, 1  ;;  %v1153_v8 = vmul.f32 %v5251_v14, %v1097_v12  ;;  %v1519_v18 = vadd.f32 %v1503_v44, %v8549_v47  ;;  %v6355_v1 = vld [vmem:[#allocation7] ss:$0 sm:$0xff] }
 0x2a2   : > { %v1886_v52 = vadd.f32 %v1711_v29, %v6231_v53  ;;  %v1820_v17 = vmul.f32 %v8489_v15, %v1767_v41  ;;  %v1870_v55 = vadd.f32 %v1854_v0, %v1834_v40  ;;  %v1871_v58 = vadd.f32 %v1855_v31, %v1835_v2  ;;  %v8550_v53 = vld [vmem:[#allocation76_spill] sm:$0xff] }
 0x2a3   : > { %v1538_v23 = vmul.f32 %v5289_v10, %v1439_v20  ;;  %v8551_v13 = vrot.slane %v8550_v53, 1  ;;  %v1727_v50 = vrot.slane %v1439_v20, 2  ;;  %v1218_v4 = vadd.f32 %v6355_v1, %v1181_v56 }
 0x2a4   : > { %v6359_v16 = vadd.f32 %v8552_v63, %v1469_v25  ;;  %v1902_v44 = vadd.f32 %v1886_v52, %v1870_v55  ;;  %v1903_v12 = vadd.f32 %v1887_v28, %v1871_v58  ;;  %v1504_v40 = vmul.f32 %v5276_v45, %v1439_v20  ;;  %v8556_v55 = vld [vmem:[#allocation53_spill] sm:$0xff] }
 0x2a5   : > { %v1609_v49 = vsel %vm1592_vm14, %v1568_v32, %v8551_v13  ;;  %v1677_v2 = vadd.f32 %v1661_v6, %v6253_v19  ;;  %v8553_v30 = vrot.slane %v8550_v53, 2  ;;  %v1248_v25 = vmax.f32 %v1218_v4, 0.0 }
 0x2a6   : > { %v1697_v29 = vmul.f32 %v8492_v7, %v1609_v49  ;;  %v1662_v0 = vmul.f32 %v8484_v5, %v6299_v59  ;;  %v1836_v31 = vadd.f32 %v1820_v17, %v6256_v51  ;;  %v1925_v43 = vadd.f32 %v6064_v48, %v1902_v44  ;;  %v1105_v44 = vpop.permute.xlu1 %1104 }
 0x2a7   : > { %v1768_v56 = vsel %vm1751_vm12, %v1727_v50, %v8553_v30  ;;  %v1926_v28 = vadd.f32 %v6064_v48, %v1903_v12  ;;  %v1554_v52 = vadd.f32 %v1538_v23, %v6223_v35  ;;  %v1441_v32 = vsel %vm1351_vm10, %v1248_v25, 0.0  ;;  %v8557_v50 = vld [vmem:[#allocation80_spill] sm:$0xff]  ;;  %vm1359_vm10 = vmand %vm1290_vm9, %vm1330_vm4 }
 0x2a8   : > { %v1713_v19 = vadd.f32 %v1697_v29, %v1677_v2  ;;  %v1856_v6 = vmul.f32 %v8494_v57, %v1768_v56  ;;  %v6379_v27 = vmax.f32 %v1925_v43, 0.0  ;;  %v1520_v58 = vadd.f32 %v1504_v40, %v8556_v55  ;;  %v8559_v25 = vld [vmem:[#allocation84_spill] sm:$0xff] }
 0x2a9   : > { %v6381_v47 = vmax.f32 %v1926_v28, 0.0  ;;  %v1588_v13 = vrot.slane %v1441_v32, 1  ;;  %v1555_v4 = vadd.f32 %v8557_v50, %v1519_v18  ;;  %v1627_v51 = vmul.f32 %v8476_v38, %v1608_v36  ;;  %v8562_v50 = vld [vmem:[#allocation67_spill] sm:$0xff] }
 0x2aa   : > { %8554 = vst [vmem:[#allocation71_spill] sm:$0xff] %v6379_v27  ;;  %v1872_v17 = vadd.f32 %v1856_v6, %v1836_v31  ;;  %v1888_v63 = vadd.f32 %v1713_v19, %v1554_v52  ;;  %v1821_v35 = vmul.f32 %v8489_v15, %v6322_v26  ;;  %v6389_v23 = vmul.f32 %v8418_v62, %v1439_v20 }
 0x2ab   : > { %8555 = vst [vmem:[#allocation72_spill] sm:$0xff] %v6381_v47  ;;  %v8558_v12 = vrot.slane %v8550_v53, 1  ;;  %v1747_v40 = vrot.slane %v1441_v32, 2  ;;  %1985 = vperm.xlu0 %4054, %v6379_v27   ;;  %1990 = vperm.xlu1 %4055, %v6381_v47   ;;  %v1786_v36 = vmul.f32 %v8477_v24, %v1767_v41  ;;  %v1678_v29 = vadd.f32 %v1662_v0, %v6280_v9 }
 0x2ac   : > { %v1904_v18 = vadd.f32 %v1888_v63, %v1872_v17  ;;  %v6401_v20 = vadd.f32 %v8559_v25, %v1520_v58  ;;  %v6404_v31 = vmul.f32 %v8476_v38, %v1609_v49  ;;  %v8560_v43 = vrot.slane %v8550_v53, 2  ;;  %v1113_v17 = vpop.permute.xlu1 %1112 }
 0x2ad   : > { %v1599_v2 = vsel %vm1592_vm14, %v8558_v12, %v1588_v13  ;;  %v1183_v52 = vadd.f32 %v1153_v8, %v999_v39  ;;  %v1663_v19 = vmul.f32 %v8484_v5, %v1609_v49  ;;  %v1822_v41 = vmul.f32 %v8489_v15, %v1768_v56  ;;  %v8566_v8 = vld [vmem:[#allocation35_spill] sm:$0xff]  ;;  %v8573_v39 = vld [vmem:[#allocation68_spill] sm:$0xff] }
 0x2ae   : > { %v1698_v30 = vmul.f32 %v8492_v7, %v1599_v2  ;;  %v1758_v28 = vsel %vm1751_vm12, %v8560_v43, %v1747_v40  ;;  %v1927_v9 = vadd.f32 %v6064_v48, %v1904_v18  ;;  %v1664_v6 = vmul.f32 %v8484_v5, %v1599_v2  ;;  %v568_v18 = vpop.permute.xlu0 %567 }
 0x2af   : > { %v1837_v32 = vadd.f32 %v1821_v35, %v6293_v61  ;;  %v1857_v55 = vmul.f32 %v8494_v57, %v1758_v28  ;;  %v1220_v58 = vadd.f32 %v6355_v1, %v1183_v52  ;;  %vm8563_vm6 = vcmp.ge.s32.totalorder %v8562_v50, 1 }
 0x2b0   : > { %v1714_v0 = vadd.f32 %v1698_v30, %v1678_v29  ;;  %v6417_v53 = vmax.f32 %v1927_v9, 0.0  ;;  %vm6423_vm15 = vmand %vm8563_vm6, %vm1328_vm7  ;;  %v1001_v49 = vadd.f32 %v8566_v8, %v6315_v34  ;;  %v1155_v61 = vmul.f32 %v5251_v14, %v1105_v44 }
 0x2b1   : > { %v6431_v63 = vmul.f32 %v8477_v24, %v1768_v56  ;;  %v1873_v35 = vadd.f32 %v1857_v55, %v1837_v32  ;;  %v1250_v40 = vmax.f32 %v1220_v58, 0.0  ;;  %v1679_v29 = vadd.f32 %v1663_v19, %v1627_v51  ;;  %v8569_v55 = vld [vmem:[#allocation82_spill] sm:$0xff]  ;;  %vm1320_vm6 = vmand %vm1277_vm2, %vm1290_vm9 }
 0x2b2   : > { %8561 = vst [vmem:[#allocation24_spill] sm:$0xff] %v6417_v53  ;;  %v1889_v13 = vadd.f32 %v1714_v0, %v1555_v4  ;;  %v8567_v4 = vld [vmem:[#allocation40_spill] sm:$0xff]  ;;  %v1838_v30 = vadd.f32 %v1822_v41, %v1786_v36  ;;  %v1628_v25 = vmul.f32 %v8476_v38, %v6299_v59  ;;  %v1185_v43 = vadd.f32 %v1155_v61, %v1001_v49  ;;  %v8568_v0 = vld [vmem:[#allocation37_spill] sm:$0xff] }
 0x2b3   : > { %v819_v12 = vadd.f32 %v8567_v4, %v6330_v3  ;;  %1995 = vperm.xlu0 %4054, %v6417_v53   ;;  %v1787_v34 = vmul.f32 %v8477_v24, %v6322_v26  ;;  %v1443_v56 = vsel %vm6423_vm15, %v1250_v40, 0.0  ;;  %v1157_v52 = vmul.f32 %v5251_v14, %v1113_v17  ;;  %vm1360_vm15 = vmand %vm1320_vm6, %vm1330_vm4 }
 0x2b4   : > { %v1905_v44 = vadd.f32 %v1889_v13, %v1873_v35  ;;  %v6444_v3 = vmul.f32 %v8476_v38, %v1599_v2  ;;  %v1680_v51 = vadd.f32 %v1664_v6, %v1628_v25  ;;  %v1579_v36 = vrot.slane %v1443_v56, 1  ;;  %v8571_v2 = vld [vmem:[#allocation77_spill] sm:$0xff] }
 0x2b5   : > { %v607_v19 = vmul.f32 %v8426_v22, %v568_v18  ;;  %v1823_v59 = vmul.f32 %v8489_v15, %v1758_v28  ;;  %v1738_v9 = vrot.slane %v1443_v56, 2  ;;  %v1003_v26 = vadd.f32 %v8568_v0, %v819_v12  ;;  %v8578_v25 = vld [vmem:[#allocation41_spill] sm:$0xff] }
 0x2b6   : > { %v1928_v41 = vadd.f32 %v6064_v48, %v1905_v44  ;;  %v1541_v32 = vmul.f32 %v5289_v10, %v1443_v56  ;;  %v8570_v58 = vrot.slane %v8569_v55, 1  ;;  %v8572_v50 = vrot.slane %v8571_v2, 1 }
 0x2b7   : > { %vm8574_vm7 = vcmp.ge.s32.totalorder %v8573_v39, 1  ;;  %v1222_v8 = vadd.f32 %v6355_v1, %v1185_v43  ;;  %v6467_v49 = vmul.f32 %v8477_v24, %v1758_v28  ;;  %v1187_v35 = vadd.f32 %v1157_v52, %v1003_v26 }
 0x2b8   : > { %v1600_v13 = vsel %vm1592_vm14, %v1579_v36, %v8570_v58  ;;  %v6459_v6 = vsel %vm1592_vm14, %v8572_v50, %v1579_v36  ;;  %vm1315_vm11 = vmand %vm1272_vm0, %vm8574_vm7  ;;  %v6469_v61 = vmax.f32 %v1928_v41, 0.0  ;;  %v8576_v12 = vrot.slane %v8569_v55, 2  ;;  %v8580_v41 = vld [vmem:[#allocation81_spill] sm:$0xff] }
 0x2b9   : > { %v1699_v17 = vmul.f32 %v8492_v7, %v6459_v6  ;;  %v1700_v4 = vmul.f32 %v8492_v7, %v1600_v13  ;;  %v8577_v18 = vrot.slane %v8571_v2, 2  ;;  %v821_v43 = vadd.f32 %v8578_v25, %v607_v19  ;;  %vm8581_vm3 = vmmov %vm8574_vm7 }
 0x2ba   : > { %8575 = vst [vmem:[#allocation57_spill] sm:$0xff] %v6469_v61  ;;  %v6478_v40 = vsel %vm1751_vm12, %v1738_v9, %v8576_v12  ;;  %v1839_v44 = vadd.f32 %v1823_v59, %v1787_v34  ;;  %vm8579_vm0 = vcmp.lt.s32.totalorder %v8573_v39, 17  ;;  %v1522_v0 = vadd.f32 %v8580_v41, %v6389_v23  ;;  %2000 = vperm.xlu1 %4055, %v6469_v61   ;;  %v1121_v34 = vpop.permute.xlu1 %1120  ;;  %vm1317_vm13 = vmand %vm1277_vm2, %vm8581_vm3  ;;  %v8583_v41 = vld [vmem:[#allocation83_spill] sm:$0xff] }
 0x2bb   : > { %v6484_v28 = vsel %vm1751_vm12, %v8577_v18, %v1738_v9  ;;  %v1715_v36 = vadd.f32 %v1699_v17, %v1679_v29  ;;  %vm1355_vm5 = vmand %vm1315_vm11, %vm8579_vm0  ;;  %v1557_v26 = vadd.f32 %v1541_v32, %v6359_v16  ;;  %v1716_v55 = vadd.f32 %v1700_v4, %v1680_v51 }
 0x2bc   : > { %v1858_v52 = vmul.f32 %v8494_v57, %v6484_v28  ;;  %v1859_v9 = vmul.f32 %v8494_v57, %v6478_v40  ;;  %v1252_v19 = vmax.f32 %v1222_v8, 0.0  ;;  %v1507_v29 = vmul.f32 %v5276_v45, %v1443_v56  ;;  %vm8585_vm1 = vmmov %vm8579_vm0 }
 0x2bd   : > { %v1890_v58 = vadd.f32 %v1715_v36, %v6401_v20  ;;  %v1224_v50 = vadd.f32 %v6355_v1, %v1187_v35  ;;  %v1665_v23 = vmul.f32 %v8484_v5, %v6459_v6  ;;  %v1891_v12 = vadd.f32 %v1716_v55, %v1557_v26  ;;  %vm1357_vm8 = vmand %vm1317_vm13, %vm8585_vm1 }
 0x2be   : > { %v1874_v59 = vadd.f32 %v1858_v52, %v1838_v30  ;;  %v1875_v17 = vadd.f32 %v1859_v9, %v1839_v44  ;;  %v1445_v18 = vsel %vm1355_vm5, %v1252_v19, 0.0  ;;  %v1824_v16 = vmul.f32 %v8489_v15, %v6484_v28  ;;  %v8582_v44 = vld [vmem:[#allocation78_spill] sm:$0xff] }
 0x2bf   : > { %v1570_v30 = vrot.slane %v1445_v18, 1  ;;  %v1159_v20 = vmul.f32 %v5251_v14, %v1121_v34  ;;  %v1542_v8 = vmul.f32 %v5289_v10, %v1445_v18  ;;  %v1729_v35 = vrot.slane %v1445_v18, 2 }
 0x2c0   : > { %v1906_v51 = vadd.f32 %v1890_v58, %v1874_v59  ;;  %v1907_v32 = vadd.f32 %v1891_v12, %v1875_v17  ;;  %v1254_v4 = vmax.f32 %v1224_v50, 0.0  ;;  %v1473_v25 = vmul.f32 %v8418_v62, %v1443_v56 }
 0x2c1   : > { %v1523_v36 = vadd.f32 %v1507_v29, %v8582_v44  ;;  %v8584_v26 = vrot.slane %v8583_v41, 1  ;;  %v1681_v19 = vadd.f32 %v1665_v23, %v6404_v31  ;;  %v8586_v56 = vrot.slane %v8583_v41, 2  ;;  %v8587_v23 = vld [vmem:[#allocation86_spill] sm:$0xff] }
 0x2c2   : > { %v1929_v52 = vadd.f32 %v6064_v48, %v1906_v51  ;;  %v1930_v9 = vadd.f32 %v6064_v48, %v1907_v32  ;;  %v1840_v58 = vadd.f32 %v1824_v16, %v6431_v63  ;;  %v1666_v39 = vmul.f32 %v8484_v5, %v1600_v13 }
 0x2c3   : > { %v1611_v55 = vsel %vm1592_vm14, %v1570_v30, %v8584_v26  ;;  %v1770_v29 = vsel %vm1751_vm12, %v1729_v35, %v8586_v56  ;;  %v1558_v12 = vadd.f32 %v1542_v8, %v1522_v0  ;;  %v1447_v31 = vsel %vm1357_vm8, %v1254_v4, 0.0  ;;  %v8588_v26 = vld [vmem:[#allocation39_spill] sm:$0xff] }
 0x2c4   : > { %v1701_v34 = vmul.f32 %v8492_v7, %v1611_v55  ;;  %v6526_v59 = vmax.f32 %v1929_v52, 0.0  ;;  %v1860_v50 = vmul.f32 %v8494_v57, %v1770_v29  ;;  %v6531_v17 = vmax.f32 %v1930_v9, 0.0 }
 0x2c5   : > { %v1559_v30 = vadd.f32 %v8587_v23, %v1523_v36  ;;  %v1590_v32 = vrot.slane %v1447_v31, 1  ;;  %v1632_v44 = vmul.f32 %v8476_v38, %v1600_v13  ;;  %v1005_v35 = vadd.f32 %v8588_v26, %v821_v43  ;;  %v8590_v36 = vld [vmem:[#allocation85_spill] sm:$0xff] }
 0x2c6   : > { %v1717_v51 = vadd.f32 %v1701_v34, %v1681_v19  ;;  %2005 = vperm.xlu0 %4054, %v6526_v59   ;;  %v1876_v52 = vadd.f32 %v1860_v50, %v1840_v58  ;;  %v1749_v16 = vrot.slane %v1447_v31, 2  ;;  %v1825_v56 = vmul.f32 %v8489_v15, %v6478_v40  ;;  %2010 = vperm.xlu1 %4055, %v6531_v17  }
 0x2c7   : > { %v8589_v0 = vrot.slane %v8583_v41, 1  ;;  %v1682_v4 = vadd.f32 %v1666_v39, %v6444_v3  ;;  %v1189_v13 = vadd.f32 %v1159_v20, %v1005_v35  ;;  %v1525_v43 = vadd.f32 %v8590_v36, %v1473_v25 }
 0x2c8   : > { %v1892_v63 = vadd.f32 %v1717_v51, %v1558_v12  ;;  %v8591_v58 = vrot.slane %v8583_v41, 2  ;;  %v1791_v12 = vmul.f32 %v8477_v24, %v6478_v40  ;;  %v1841_v23 = vadd.f32 %v1825_v56, %v6467_v49 }
 0x2c9   : > { %v1601_v8 = vsel %vm1592_vm14, %v8589_v0, %v1590_v32  ;;  %v1226_v20 = vadd.f32 %v6355_v1, %v1189_v13  ;;  %v1508_v40 = vmul.f32 %v5276_v45, %v1445_v18  ;;  %v1472_v35 = vmul.f32 %v8418_v62, %v8571_v2 }
 0x2ca   : > { %v1908_v9 = vadd.f32 %v1892_v63, %v1876_v52  ;;  %v1668_v19 = vmul.f32 %v8484_v5, %v1601_v8  ;;  %v1702_v34 = vmul.f32 %v8492_v7, %v1601_v8  ;;  %v1760_v50 = vsel %vm1751_vm12, %v8591_v58, %v1749_v16  ;;  %v8594_v16 = vld [vmem:[#allocation87_spill] sm:$0xff] }
 0x2cb   : > { %v1827_v51 = vmul.f32 %v8489_v15, %v1760_v50  ;;  %v1861_v3 = vmul.f32 %v8494_v57, %v1760_v50  ;;  %v1256_v26 = vmax.f32 %v1226_v20, 0.0  ;;  %v1571_v0 = vrot.slane %v8594_v16, 1 }
 0x2cc   : > { %v1931_v25 = vadd.f32 %v6064_v48, %v1908_v9  ;;  %v6558_v39 = vadd.f32 %v1668_v19, %v1632_v44  ;;  %v1718_v31 = vadd.f32 %v1702_v34, %v1682_v4  ;;  %v1730_v49 = vrot.slane %v8594_v16, 2 }
 0x2cd   : > { %v6566_v32 = vadd.f32 %v1827_v51, %v1791_v12  ;;  %v1877_v44 = vadd.f32 %v1861_v3, %v1841_v23  ;;  %v1667_v56 = vmul.f32 %v8484_v5, %v1611_v55  ;;  %v6575_v8 = vsel %vm1359_vm10, %v1256_v26, 0.0 }
 0x2ce   : > { %v6570_v52 = vmax.f32 %v1931_v25, 0.0  ;;  %v1893_v63 = vadd.f32 %v1718_v31, %v1559_v30  ;;  %v1545_v45 = vmul.f32 %v5289_v10, %v6575_v8  ;;  %v1581_v18 = vrot.slane %v6575_v8, 1 }
 0x2cf   : > { %v1740_v62 = vrot.slane %v6575_v8, 2  ;;  %v1544_v2 = vmul.f32 %v5289_v10, %v8594_v16  ;;  %v1631_v30 = vmul.f32 %v8476_v38, %v6459_v6  ;;  %v1524_v13 = vadd.f32 %v1508_v40, %v1472_v35  ;;  %v8597_v16 = vld [vmem:[#allocation23_spill] sm:$0xff]  ;;  %v8599_v8 = vld [vmem:[#allocation44_spill] sm:$0xff] }
 0x2d0   : > { %8593 = vst [vmem:[#allocation73_spill] sm:$0xff] %v6570_v52  ;;  %v1909_v4 = vadd.f32 %v1893_v63, %v1877_v44  ;;  %2015 = vperm.xlu0 %4054, %v6570_v52   ;;  %v1826_v5 = vmul.f32 %v8489_v15, %v1770_v29  ;;  %v1561_v36 = vadd.f32 %v1545_v45, %v1525_v43 }
 0x2d1   : > { %v1612_v9 = vsel %vm1592_vm14, %v1571_v0, %v1581_v18  ;;  %v1771_v19 = vsel %vm1751_vm12, %v1730_v49, %v1740_v62  ;;  %v1790_v34 = vmul.f32 %v8477_v24, %v6484_v28  ;;  %v1683_v10 = vadd.f32 %v1667_v56, %v1631_v30  ;;  %v4087_v28 = vld [vmem:[%s4848_s1 + $0xe8] sm:$0xff] }
 0x2d2   : > { %v1932_v55 = vadd.f32 %v6064_v48, %v1909_v4  ;;  %v1703_v58 = vmul.f32 %v8492_v7, %v1612_v9  ;;  %v1862_v38 = vmul.f32 %v8494_v57, %v1771_v19  ;;  %v1560_v15 = vadd.f32 %v1544_v2, %v1524_v13  ;;  %v8598_v49 = vld [vmem:[#allocation51_spill] sm:$0xff]  ;;  %v8600_v4 = vld [vmem:[#allocation56_spill] sm:$0xff] }
 0x2d3   : > { %v1842_v29 = vadd.f32 %v1826_v5, %v1790_v34  ;;  %v8596_v24 = vmov 1   ;;  %v608_v0 = vmul.f32 %v8426_v22, %v8597_v16  ;;  %v976_v45 = vmul.f32 %v8600_v4, %v8599_v8  ;;  %v8601_v30 = vld [vmem:[#allocation47_spill] sm:$0xff] }
 0x2d4   : > { %v6596_v6 = vmax.f32 %v1932_v55, 0.0  ;;  %v1719_v43 = vadd.f32 %v1703_v58, %v1683_v10  ;;  %v1160_v13 = vmul.f32 %v5251_v14, %v8601_v30 }
 0x2d5   : > { %v1878_v50 = vadd.f32 %v1862_v38, %v1842_v29 }
 0x2d6   : > { %2020 = vperm.xlu1 %4055, %v6596_v6   ;;  %v1894_v12 = vadd.f32 %v1719_v43, %v1560_v15 }
 0x2d8   : > { %v1910_v51 = vadd.f32 %v1894_v12, %v1878_v50 }
 0x2da   : > { %v1933_v3 = vadd.f32 %v6064_v48, %v1910_v51 }
 0x2dc   : > { %v6600_v20 = vmax.f32 %v1933_v3, 0.0 }
 0x2de   : > { %8595 = vst [vmem:[#allocation63_spill] sm:$0xff] %v6600_v20  ;;  %2025 = vperm.xlu0 %4054, %v6600_v20  }
 0x2e2   : > { %4056 = vset.pattern.permute.xlu0 %v8596_v24 }
 0x2e3   : > { %756 = vperm.xlu0 %4056, %v4087_v28  }
 0x2e7   : > { %2070 = vperm.xlu0 %4056, %v6096_v46  }
 0x2eb   : > { %2082 = vperm.xlu0 %4056, %v6235_v21  }
 0x2ef   : > { %2090 = vperm.xlu0 %4056, %v6304_v42  }
 0x2f3   : > { %2098 = vperm.xlu0 %4056, %v6381_v47  }
 0x2f7   : > { %2106 = vperm.xlu0 %4056, %v6469_v61  }
 0x2fb   : > { %2114 = vperm.xlu0 %4056, %v6531_v17  }
 0x2fe   : > { %v6612_v25 = vpop.permute.xlu0 %1960 }
 0x2ff   : > { %2122 = vperm.xlu0 %4056, %v6596_v6  }
 0x316   : > { %v6614_v31 = vpop.permute.xlu0 %1975 }
 0x32a   : > { %v6616_v23 = vpop.permute.xlu0 %1985 }
 0x332   : > { %v6618_v40 = vpop.permute.xlu0 %1995 }
 0x345   : > { %v6620_v26 = vpop.permute.xlu0 %2005 }
 0x34f   : > { %v6622_v35 = vpop.permute.xlu0 %2015 }
 0x35d   : > { %v6624_v44 = vpop.permute.xlu0 %2025 }
 0x362   : > { %v757_v63 = vpop.permute.xlu0 %756 }
 0x363   : > { %v792_v56 = vmul.f32 %v8598_v49, %v757_v63 }
 0x365   : > { %v822_v2 = vadd.f32 %v792_v56, %v608_v0 }
 0x367   : > { %v1006_v5 = vadd.f32 %v976_v45, %v822_v2  ;;  %v4464_v2 = vmov 6  }
 0x369   : > { %v1190_v55 = vadd.f32 %v1160_v13, %v1006_v5 }
 0x36b   : > { %v1227_v9 = vadd.f32 %v6355_v1, %v1190_v55 }
 0x36d   : > { %v1257_v22 = vmax.f32 %v1227_v9, 0.0 }
 0x36f   : > { %v1450_v19 = vsel %vm1360_vm15, %v1257_v22, 0.0 }
 0x370   : > { %v1591_v34 = vrot.slane %v1450_v19, 1  ;;  %v1750_v10 = vrot.slane %v1450_v19, 2 }
 0x372   : > { %v1602_v58 = vsel %vm1592_vm14, %v1581_v18, %v1591_v34  ;;  %v1761_v14 = vsel %vm1751_vm12, %v1740_v62, %v1750_v10  ;;  %v8603_v18 = vmov 2  }
 0x373   : > { %v1704_v38 = vmul.f32 %v8492_v7, %v1602_v58  ;;  %v1863_v11 = vmul.f32 %v8494_v57, %v1761_v14  ;;  %v4462_v7 = vmov 4   ;;  %v6698_v57 = vpop.permute.xlu1 %1955 }
 0x375   : > { %v1720_v15 = vadd.f32 %v1704_v38, %v6558_v39  ;;  %v1879_v1 = vadd.f32 %v1863_v11, %v6566_v32  ;;  %v6700_v39 = vpop.permute.xlu0 %2070  ;;  %v6790_v11 = vld [vmem:[#allocation11] sm:$0xff] }
 0x377   : > { %v1895_v41 = vadd.f32 %v1720_v15, %v1561_v36  ;;  %v6704_v32 = vpop.permute.xlu1 %1965  ;;  %v4463_v36 = vmov 5  }
 0x378   : > { %8605 = vst [vmem:[#allocation29_spill] sm:$0xff] %v6704_v32 }
 0x379   : > { %v1911_v29 = vadd.f32 %v1895_v41, %v1879_v1  ;;  %v6708_v62 = vpop.permute.xlu0 %2082  ;;  %v8242_v41 = vmov 7  }
 0x37b   : > { %v1934_v43 = vadd.f32 %v6064_v48, %v1911_v29  ;;  %v8604_v48 = vmov 3   ;;  %v6712_v12 = vpop.permute.xlu1 %1970  ;;  %v8613_v29 = vld [vmem:[#allocation49_spill] sm:$0xff] }
 0x37d   : > { %v6649_v50 = vmax.f32 %v1934_v43, 0.0  ;;  %v6714_v51 = vpop.permute.xlu0 %2090  ;;  %v6799_v43 = vrot.slane %v6790_v11, %v8613_v29 }
 0x37f   : > { %8602 = vst [vmem:[#allocation64_spill] sm:$0xff] %v6649_v50  ;;  %2130 = vperm.xlu0 %4056, %v6649_v50   ;;  %2030 = vperm.xlu1 %4055, %v6649_v50   ;;  %v6718_v3 = vpop.permute.xlu1 %1980  ;;  %8614 = vst [vmem:[#allocation55_spill] sm:$0xff] %v6799_v43 }
 0x383   : > { %4059 = vset.pattern.permute.xlu0 %v8603_v18  ;;  %4057 = vset.pattern.permute.xlu1 %v8596_v24  ;;  %v6722_v24 = vpop.permute.xlu0 %2098  ;;  %v6726_v28 = vpop.permute.xlu1 %1990 }
 0x384   : > { %2174 = vperm.xlu0 %4059, %v6128_v54   ;;  %2074 = vperm.xlu1 %4057, %v6128_v54  }
 0x387   : > { %v6728_v63 = vpop.permute.xlu0 %2106  ;;  %v6732_v16 = vpop.permute.xlu1 %2000 }
 0x388   : > { %2186 = vperm.xlu0 %4059, %v6258_v60   ;;  %2078 = vperm.xlu1 %4057, %v6216_v37  }
 0x38b   : > { %v6736_v0 = vpop.permute.xlu0 %2114  ;;  %v6738_v49 = vpop.permute.xlu1 %2010 }
 0x38c   : > { %2194 = vperm.xlu0 %4059, %v6379_v27   ;;  %2086 = vperm.xlu1 %4057, %v6258_v60  }
 0x38f   : > { %v6742_v56 = vpop.permute.xlu1 %2020  ;;  %v6744_v8 = vpop.permute.xlu0 %2122 }
 0x390   : > { %2202 = vperm.xlu0 %4059, %v6417_v53   ;;  %2094 = vperm.xlu1 %4057, %v6379_v27  }
 0x394   : > { %2210 = vperm.xlu0 %4059, %v6526_v59   ;;  %2102 = vperm.xlu1 %4057, %v6417_v53  }
 0x398   : > { %2218 = vperm.xlu0 %4059, %v6570_v52   ;;  %2110 = vperm.xlu1 %4057, %v6526_v59  }
 0x39c   : > { %2226 = vperm.xlu0 %4059, %v6600_v20   ;;  %2118 = vperm.xlu1 %4057, %v6570_v52  }
 0x3a0   : > { %4060 = vset.pattern.permute.xlu0 %v8604_v48  ;;  %2126 = vperm.xlu1 %4057, %v6600_v20  }
 0x3a1   : > { %2270 = vperm.xlu0 %4060, %v6096_v46  }
 0x3a4   : > { %4058 = vset.pattern.permute.xlu1 %v8603_v18  ;;  %v8615_v18 = vld [vmem:[#allocation48_spill] sm:$0xff] }
 0x3a5   : > { %2282 = vperm.xlu0 %4060, %v6235_v21   ;;  %2170 = vperm.xlu1 %4058, %v6096_v46  }
 0x3a9   : > { %2290 = vperm.xlu0 %4060, %v6304_v42   ;;  %2178 = vperm.xlu1 %4058, %v6216_v37  }
 0x3ad   : > { %2298 = vperm.xlu0 %4060, %v6381_v47   ;;  %2182 = vperm.xlu1 %4058, %v6235_v21  }
 0x3b1   : > { %2306 = vperm.xlu0 %4060, %v6469_v61   ;;  %2190 = vperm.xlu1 %4058, %v6304_v42  }
 0x3b5   : > { %2314 = vperm.xlu0 %4060, %v6531_v17   ;;  %2198 = vperm.xlu1 %4058, %v6381_v47  }
 0x3b9   : > { %2322 = vperm.xlu0 %4060, %v6596_v6   ;;  %2206 = vperm.xlu1 %4058, %v6469_v61  }
 0x3bd   : > { %2330 = vperm.xlu0 %4060, %v6649_v50   ;;  %2214 = vperm.xlu1 %4058, %v6531_v17  }
 0x3c1   : > { %4063 = vset.pattern.permute.xlu0 %v4462_v7  ;;  %2222 = vperm.xlu1 %4058, %v6596_v6  }
 0x3c2   : > { %2374 = vperm.xlu0 %4063, %v6128_v54  }
 0x3c5   : > { %2230 = vperm.xlu1 %4058, %v6649_v50  }
 0x3c6   : > { %2386 = vperm.xlu0 %4063, %v6258_v60  }
 0x3c9   : > { %4061 = vset.pattern.permute.xlu1 %v8604_v48  ;;  %v6803_v48 = vrot.slane %v6790_v11, %v8615_v18 }
 0x3ca   : > { %2394 = vperm.xlu0 %4063, %v6379_v27   ;;  %2274 = vperm.xlu1 %4061, %v6128_v54  }
 0x3cb   : > { %8616 = vst [vmem:[#allocation43_spill] sm:$0xff] %v6803_v48 }
 0x3ce   : > { %2402 = vperm.xlu0 %4063, %v6417_v53   ;;  %2278 = vperm.xlu1 %4061, %v6216_v37  }
 0x3d2   : > { %2410 = vperm.xlu0 %4063, %v6526_v59   ;;  %2286 = vperm.xlu1 %4061, %v6258_v60  }
 0x3d6   : > { %2418 = vperm.xlu0 %4063, %v6570_v52   ;;  %2294 = vperm.xlu1 %4061, %v6379_v27  }
 0x3da   : > { %2426 = vperm.xlu0 %4063, %v6600_v20   ;;  %2302 = vperm.xlu1 %4061, %v6417_v53  }
 0x3de   : > { %4064 = vset.pattern.permute.xlu0 %v4463_v36  ;;  %2310 = vperm.xlu1 %4061, %v6526_v59  }
 0x3df   : > { %2470 = vperm.xlu0 %4064, %v6096_v46  }
 0x3e2   : > { %2318 = vperm.xlu1 %4061, %v6570_v52  }
 0x3e3   : > { %2482 = vperm.xlu0 %4064, %v6235_v21  }
 0x3e6   : > { %2326 = vperm.xlu1 %4061, %v6600_v20  }
 0x3e7   : > { %2490 = vperm.xlu0 %4064, %v6304_v42  }
 0x3ea   : > { %4062 = vset.pattern.permute.xlu1 %v4462_v7 }
 0x3eb   : > { %2498 = vperm.xlu0 %4064, %v6381_v47   ;;  %2370 = vperm.xlu1 %4062, %v6096_v46  }
 0x3ef   : > { %2506 = vperm.xlu0 %4064, %v6469_v61   ;;  %2378 = vperm.xlu1 %4062, %v6216_v37  }
 0x3f3   : > { %2514 = vperm.xlu0 %4064, %v6531_v17   ;;  %2382 = vperm.xlu1 %4062, %v6235_v21  }
 0x3f7   : > { %2522 = vperm.xlu0 %4064, %v6596_v6   ;;  %2390 = vperm.xlu1 %4062, %v6304_v42  }
 0x3fb   : > { %2530 = vperm.xlu0 %4064, %v6649_v50   ;;  %2398 = vperm.xlu1 %4062, %v6381_v47  }
 0x3fe   : > { %v6748_v4 = vpop.permute.xlu1 %2030  ;;  %v6750_v45 = vpop.permute.xlu0 %2130 }
 0x3ff   : > { %4067 = vset.pattern.permute.xlu0 %v4464_v2  ;;  %2406 = vperm.xlu1 %4062, %v6469_v61  }
 0x400   : > { %2574 = vperm.xlu0 %4067, %v6128_v54  }
 0x403   : > { %2414 = vperm.xlu1 %4062, %v6531_v17   ;;  %v6755_v30 = vpop.permute.xlu1 %2074  ;;  %v6757_v13 = vpop.permute.xlu0 %2174 }
 0x404   : > { %2586 = vperm.xlu0 %4067, %v6258_v60  }
 0x407   : > { %2422 = vperm.xlu1 %4062, %v6596_v6   ;;  %v6761_v5 = vpop.permute.xlu1 %2078  ;;  %v6763_v55 = vpop.permute.xlu0 %2186 }
 0x408   : > { %8606 = vst [vmem:[#allocation62_spill] sm:$0xff] %v6761_v5  ;;  %8607 = vst [vmem:[#allocation26_spill] sm:$0xff] %v6763_v55  ;;  %2594 = vperm.xlu0 %4067, %v6379_v27   ;;  %v8617_v5 = vld [vmem:[#allocation52_spill] sm:$0xff] }
 0x409   : > { %v6809_v32 = vrot.slane %v6790_v11, %v8617_v5 }
 0x40b   : > { %2430 = vperm.xlu1 %4062, %v6649_v50   ;;  %v6767_v9 = vpop.permute.xlu1 %2086  ;;  %v6769_v22 = vpop.permute.xlu0 %2194  ;;  %8618 = vst [vmem:[#allocation42_spill] sm:$0xff] %v6809_v32 }
 0x40c   : > { %8608 = vst [vmem:[#allocation30_spill] sm:$0xff] %v6769_v22  ;;  %2602 = vperm.xlu0 %4067, %v6417_v53  }
 0x40f   : > { %4065 = vset.pattern.permute.xlu1 %v4463_v36  ;;  %v6772_v19 = vpop.permute.xlu1 %2094  ;;  %v6774_v34 = vpop.permute.xlu0 %2202  ;;  %v2051_v36 = vmul.f32 %v6799_v43, %v6624_v44 }
 0x410   : > { %8609 = vst [vmem:[#allocation32_spill] sm:$0xff] %v6774_v34  ;;  %2610 = vperm.xlu0 %4067, %v6526_v59   ;;  %2474 = vperm.xlu1 %4065, %v6128_v54  }
 0x413   : > { %v6778_v10 = vpop.permute.xlu1 %2102  ;;  %v6780_v58 = vpop.permute.xlu0 %2210 }
 0x414   : > { %8610 = vst [vmem:[#allocation34_spill] sm:$0xff] %v6780_v58  ;;  %2618 = vperm.xlu0 %4067, %v6570_v52   ;;  %2478 = vperm.xlu1 %4065, %v6216_v37  }
 0x417   : > { %v6784_v14 = vpop.permute.xlu1 %2110  ;;  %v6786_v38 = vpop.permute.xlu0 %2218 }
 0x418   : > { %8611 = vst [vmem:[#allocation28_spill] sm:$0xff] %v6786_v38  ;;  %2626 = vperm.xlu0 %4067, %v6600_v20   ;;  %2486 = vperm.xlu1 %4065, %v6258_v60  }
 0x41b   : > { %v6792_v15 = vpop.permute.xlu1 %2118  ;;  %v2227_v1 = vpop.permute.xlu0 %2226 }
 0x41c   : > { %8612 = vst [vmem:[#allocation50_spill] sm:$0xff] %v6792_v15  ;;  %4068 = vset.pattern.permute.xlu0 %v8242_v41  ;;  %2494 = vperm.xlu1 %4065, %v6379_v27   ;;  %v2251_v58 = vmul.f32 %v6809_v32, %v2227_v1 }
 0x41d   : > { %2670 = vperm.xlu0 %4068, %v6096_v46  }
 0x41f   : > { %v2127_v7 = vpop.permute.xlu1 %2126 }
 0x420   : > { %v2151_v41 = vmul.f32 %v6803_v48, %v2127_v7  ;;  %2502 = vperm.xlu1 %4065, %v6417_v53   ;;  %v6813_v38 = vpop.permute.xlu0 %2270 }
 0x421   : > { %8619 = vst [vmem:[#allocation60_spill] sm:$0xff] %v6813_v38  ;;  %2682 = vperm.xlu0 %4068, %v6235_v21  }
 0x422   : > { %v2167_v18 = vadd.f32 %v2151_v41, %v2051_v36 }
 0x424   : > { %2510 = vperm.xlu1 %4065, %v6526_v59   ;;  %v6818_v34 = vpop.permute.xlu1 %2170  ;;  %v6820_v44 = vpop.permute.xlu0 %2282  ;;  %v6822_v22 = vadd.f32 %v2251_v58, %v2167_v18 }
 0x425   : > { %8620 = vst [vmem:[#allocation59_spill] sm:$0xff] %v6818_v34  ;;  %8621 = vst [vmem:[#allocation75_spill] sm:$0xff] %v6820_v44  ;;  %2690 = vperm.xlu0 %4068, %v6304_v42  }
 0x428   : > { %2518 = vperm.xlu1 %4065, %v6570_v52   ;;  %v6826_v7 = vpop.permute.xlu1 %2178  ;;  %v6828_v38 = vpop.permute.xlu0 %2290 }
 0x429   : > { %8622 = vst [vmem:[#allocation65_spill] sm:$0xff] %v6826_v7  ;;  %8623 = vst [vmem:[#allocation66_spill] sm:$0xff] %v6828_v38  ;;  %2698 = vperm.xlu0 %4068, %v6381_v47  }
 0x42c   : > { %2526 = vperm.xlu1 %4065, %v6600_v20   ;;  %v6832_v1 = vpop.permute.xlu1 %2182  ;;  %v6834_v41 = vpop.permute.xlu0 %2298 }
 0x42d   : > { %8624 = vst [vmem:[#allocation36_spill] sm:$0xff] %v6834_v41  ;;  %2706 = vperm.xlu0 %4068, %v6469_v61  }
 0x430   : > { %4066 = vset.pattern.permute.xlu1 %v4464_v2  ;;  %v6837_v58 = vpop.permute.xlu1 %2190  ;;  %v6839_v18 = vpop.permute.xlu0 %2306 }
 0x431   : > { %8625 = vst [vmem:[#allocation74_spill] sm:$0xff] %v6837_v58  ;;  %8626 = vst [vmem:[#allocation31_spill] sm:$0xff] %v6839_v18  ;;  %2570 = vperm.xlu1 %4066, %v6096_v46   ;;  %2714 = vperm.xlu0 %4068, %v6531_v17  }
 0x434   : > { %v6843_v36 = vpop.permute.xlu1 %2198  ;;  %v6845_v7 = vpop.permute.xlu0 %2314 }
 0x435   : > { %8627 = vst [vmem:[#allocation58_spill] sm:$0xff] %v6843_v36  ;;  %8628 = vst [vmem:[#allocation38_spill] sm:$0xff] %v6845_v7  ;;  %2578 = vperm.xlu1 %4066, %v6216_v37   ;;  %2722 = vperm.xlu0 %4068, %v6596_v6   ;;  %v8243_v36 = vmov 8  }
 0x438   : > { %v6849_v41 = vpop.permute.xlu1 %2206  ;;  %v6851_v38 = vpop.permute.xlu0 %2322 }
 0x439   : > { %8629 = vst [vmem:[#allocation33_spill] sm:$0xff] %v6849_v41  ;;  %8630 = vst [vmem:[#allocation45_spill] sm:$0xff] %v6851_v38  ;;  %2582 = vperm.xlu1 %4066, %v6235_v21   ;;  %2730 = vperm.xlu0 %4068, %v6649_v50  }
 0x43c   : > { %v6855_v2 = vpop.permute.xlu1 %2214  ;;  %v6857_v18 = vpop.permute.xlu0 %2330 }
 0x43d   : > { %8631 = vst [vmem:[#allocation76_spill] sm:$0xff] %v6855_v2  ;;  %8632 = vst [vmem:[#allocation79_spill] sm:$0xff] %v6857_v18  ;;  %2590 = vperm.xlu1 %4066, %v6304_v42   ;;  %4071 = vset.pattern.permute.xlu0 %v8243_v36 }
 0x43e   : > { %2774 = vperm.xlu0 %4071, %v6128_v54  }
 0x440   : > { %v6862_v7 = vpop.permute.xlu1 %2222 }
 0x441   : > { %8633 = vst [vmem:[#allocation53_spill] sm:$0xff] %v6862_v7  ;;  %2598 = vperm.xlu1 %4066, %v6381_v47   ;;  %v6865_v38 = vpop.permute.xlu0 %2374 }
 0x442   : > { %8634 = vst [vmem:[#allocation80_spill] sm:$0xff] %v6865_v38  ;;  %2786 = vperm.xlu0 %4071, %v6258_v60  }
 0x444   : > { %v6868_v41 = vpop.permute.xlu1 %2230 }
 0x445   : > { %8635 = vst [vmem:[#allocation84_spill] sm:$0xff] %v6868_v41  ;;  %2606 = vperm.xlu1 %4066, %v6469_v61   ;;  %v6871_v18 = vpop.permute.xlu0 %2386 }
 0x446   : > { %8636 = vst [vmem:[#allocation67_spill] sm:$0xff] %v6871_v18  ;;  %2794 = vperm.xlu0 %4071, %v6379_v27  }
 0x449   : > { %2614 = vperm.xlu1 %4066, %v6531_v17   ;;  %v6875_v36 = vpop.permute.xlu1 %2274  ;;  %v6877_v2 = vpop.permute.xlu0 %2394 }
 0x44a   : > { %8637 = vst [vmem:[#allocation35_spill] sm:$0xff] %v6875_v36  ;;  %8638 = vst [vmem:[#allocation40_spill] sm:$0xff] %v6877_v2  ;;  %2802 = vperm.xlu0 %4071, %v6417_v53   ;;  %v8643_v36 = vmov 7  }
 0x44d   : > { %2622 = vperm.xlu1 %4066, %v6596_v6   ;;  %v6881_v38 = vpop.permute.xlu1 %2278  ;;  %v6883_v7 = vpop.permute.xlu0 %2402 }
 0x44e   : > { %8639 = vst [vmem:[#allocation37_spill] sm:$0xff] %v6881_v38  ;;  %8640 = vst [vmem:[#allocation82_spill] sm:$0xff] %v6883_v7  ;;  %2810 = vperm.xlu0 %4071, %v6526_v59  }
 0x451   : > { %2630 = vperm.xlu1 %4066, %v6649_v50   ;;  %v6887_v18 = vpop.permute.xlu1 %2286  ;;  %v6889_v41 = vpop.permute.xlu0 %2410 }
 0x452   : > { %8641 = vst [vmem:[#allocation77_spill] sm:$0xff] %v6887_v18  ;;  %8642 = vst [vmem:[#allocation68_spill] sm:$0xff] %v6889_v41  ;;  %2818 = vperm.xlu0 %4071, %v6570_v52   ;;  %v8244_v18 = vmov 9  }
 0x455   : > { %4069 = vset.pattern.permute.xlu1 %v8643_v36  ;;  %v6893_v2 = vpop.permute.xlu1 %2294  ;;  %v6895_v44 = vpop.permute.xlu0 %2418 }
 0x456   : > { %8644 = vst [vmem:[#allocation41_spill] sm:$0xff] %v6893_v2  ;;  %8645 = vst [vmem:[#allocation81_spill] sm:$0xff] %v6895_v44  ;;  %2674 = vperm.xlu1 %4069, %v6128_v54   ;;  %2826 = vperm.xlu0 %4071, %v6600_v20  }
 0x459   : > { %v6899_v38 = vpop.permute.xlu1 %2302  ;;  %v2427_v7 = vpop.permute.xlu0 %2426 }
 0x45a   : > { %8646 = vst [vmem:[#allocation78_spill] sm:$0xff] %v6899_v38  ;;  %2678 = vperm.xlu1 %4069, %v6216_v37   ;;  %4072 = vset.pattern.permute.xlu0 %v8244_v18  ;;  %v8245_v38 = vsub.s32 4, %v5190_v33  ;;  %v8651_v18 = vld [vmem:[#allocation54_spill] sm:$0xff] }
 0x45b   : > { %2870 = vperm.xlu0 %4072, %v6096_v46   ;;  %v6919_v34 = vrot.slane %v6790_v11, %v8651_v18 }
 0x45d   : > { %v6904_v41 = vpop.permute.xlu1 %2310  ;;  %8652 = vst [vmem:[#allocation69_spill] sm:$0xff] %v6919_v34 }
 0x45e   : > { %8647 = vst [vmem:[#allocation83_spill] sm:$0xff] %v6904_v41  ;;  %2686 = vperm.xlu1 %4069, %v6258_v60   ;;  %v6907_v36 = vpop.permute.xlu0 %2470 }
 0x45f   : > { %8648 = vst [vmem:[#allocation86_spill] sm:$0xff] %v6907_v36  ;;  %2882 = vperm.xlu0 %4072, %v6235_v21   ;;  %v6924_v36 = vrot.slane %v6790_v11, %v8245_v38 }
 0x461   : > { %v6910_v44 = vpop.permute.xlu1 %2318  ;;  %8653 = vst [vmem:[#allocation87_spill] sm:$0xff] %v6924_v36 }
 0x462   : > { %8649 = vst [vmem:[#allocation39_spill] sm:$0xff] %v6910_v44  ;;  %2694 = vperm.xlu1 %4069, %v6379_v27   ;;  %v6914_v2 = vpop.permute.xlu0 %2482 }
 0x463   : > { %8650 = vst [vmem:[#allocation85_spill] sm:$0xff] %v6914_v2  ;;  %2890 = vperm.xlu0 %4072, %v6304_v42   ;;  %v2451_v2 = vmul.f32 %v6924_v36, %v2427_v7 }
 0x465   : > { %v2327_v41 = vpop.permute.xlu1 %2326 }
 0x466   : > { %v2351_v44 = vmul.f32 %v6919_v34, %v2327_v41  ;;  %2702 = vperm.xlu1 %4069, %v6417_v53   ;;  %v6928_v58 = vpop.permute.xlu0 %2490 }
 0x467   : > { %8654 = vst [vmem:[#allocation23_spill] sm:$0xff] %v6928_v58  ;;  %2898 = vperm.xlu0 %4072, %v6381_v47  }
 0x468   : > { %v2367_v55 = vadd.f32 %v2351_v44, %v6822_v22 }
 0x46a   : > { %2710 = vperm.xlu1 %4069, %v6526_v59   ;;  %v6934_v18 = vpop.permute.xlu1 %2370  ;;  %v6936_v15 = vpop.permute.xlu0 %2498  ;;  %v6938_v38 = vadd.f32 %v2451_v2, %v2367_v55  ;;  %v8661_v55 = vmov 8  }
 0x46b   : > { %8655 = vst [vmem:[#allocation51_spill] sm:$0xff] %v6934_v18  ;;  %8656 = vst [vmem:[#allocation44_spill] sm:$0xff] %v6936_v15  ;;  %2906 = vperm.xlu0 %4072, %v6469_v61  }
 0x46e   : > { %2718 = vperm.xlu1 %4069, %v6570_v52   ;;  %v6942_v41 = vpop.permute.xlu1 %2378  ;;  %v6944_v58 = vpop.permute.xlu0 %2506 }
 0x46f   : > { %8657 = vst [vmem:[#allocation56_spill] sm:$0xff] %v6942_v41  ;;  %8658 = vst [vmem:[#allocation47_spill] sm:$0xff] %v6944_v58  ;;  %2914 = vperm.xlu0 %4072, %v6531_v17   ;;  %v8246_v58 = vmov 10  }
 0x472   : > { %2726 = vperm.xlu1 %4069, %v6600_v20   ;;  %v6948_v22 = vpop.permute.xlu1 %2382  ;;  %v6950_v44 = vpop.permute.xlu0 %2514 }
 0x473   : > { %8659 = vst [vmem:[#allocation49_spill] sm:$0xff] %v6948_v22  ;;  %8660 = vst [vmem:[#allocation52_spill] sm:$0xff] %v6950_v44  ;;  %2922 = vperm.xlu0 %4072, %v6596_v6  }
 0x476   : > { %4070 = vset.pattern.permute.xlu1 %v8661_v55  ;;  %v6954_v7 = vpop.permute.xlu1 %2390  ;;  %v6956_v2 = vpop.permute.xlu0 %2522 }
 0x477   : > { %8662 = vst [vmem:[#allocation88_spill] sm:$0xff] %v6954_v7  ;;  %8663 = vst [vmem:[#allocation89_spill] sm:$0xff] %v6956_v2  ;;  %2770 = vperm.xlu1 %4070, %v6096_v46   ;;  %2930 = vperm.xlu0 %4072, %v6649_v50  }
 0x47a   : > { %v6960_v41 = vpop.permute.xlu1 %2398  ;;  %v6962_v18 = vpop.permute.xlu0 %2530 }
 0x47b   : > { %8664 = vst [vmem:[#allocation90_spill] sm:$0xff] %v6960_v41  ;;  %8665 = vst [vmem:[#allocation91_spill] sm:$0xff] %v6962_v18  ;;  %2778 = vperm.xlu1 %4070, %v6216_v37   ;;  %4075 = vset.pattern.permute.xlu0 %v8246_v58  ;;  %v8247_v41 = vmov 11  }
 0x47c   : > { %2974 = vperm.xlu0 %4075, %v6128_v54  }
 0x47e   : > { %v6967_v55 = vpop.permute.xlu1 %2406 }
 0x47f   : > { %8666 = vst [vmem:[#allocation92_spill] sm:$0xff] %v6967_v55  ;;  %2782 = vperm.xlu1 %4070, %v6235_v21   ;;  %v6970_v2 = vpop.permute.xlu0 %2574 }
 0x480   : > { %8667 = vst [vmem:[#allocation93_spill] sm:$0xff] %v6970_v2  ;;  %2986 = vperm.xlu0 %4075, %v6258_v60  }
 0x482   : > { %v6973_v44 = vpop.permute.xlu1 %2414 }
 0x483   : > { %8668 = vst [vmem:[#allocation94_spill] sm:$0xff] %v6973_v44  ;;  %2790 = vperm.xlu1 %4070, %v6304_v42   ;;  %v6976_v18 = vpop.permute.xlu0 %2586 }
 0x484   : > { %8669 = vst [vmem:[#allocation95_spill] sm:$0xff] %v6976_v18  ;;  %2994 = vperm.xlu0 %4075, %v6379_v27  }
 0x486   : > { %v6979_v15 = vpop.permute.xlu1 %2422 }
 0x487   : > { %8670 = vst [vmem:[#allocation96_spill] sm:$0xff] %v6979_v15  ;;  %2798 = vperm.xlu1 %4070, %v6381_v47   ;;  %v6982_v58 = vpop.permute.xlu0 %2594 }
 0x488   : > { %8671 = vst [vmem:[#allocation97_spill] sm:$0xff] %v6982_v58  ;;  %3002 = vperm.xlu0 %4075, %v6417_v53  }
 0x48a   : > { %v6985_v55 = vpop.permute.xlu1 %2430 }
 0x48b   : > { %8672 = vst [vmem:[#allocation98_spill] sm:$0xff] %v6985_v55  ;;  %2806 = vperm.xlu1 %4070, %v6469_v61   ;;  %v6988_v2 = vpop.permute.xlu0 %2602 }
 0x48c   : > { %8673 = vst [vmem:[#allocation99_spill] sm:$0xff] %v6988_v2  ;;  %3010 = vperm.xlu0 %4075, %v6526_v59  }
 0x48f   : > { %2814 = vperm.xlu1 %4070, %v6531_v17   ;;  %v6992_v18 = vpop.permute.xlu1 %2474  ;;  %v6994_v44 = vpop.permute.xlu0 %2610 }
 0x490   : > { %8674 = vst [vmem:[#allocation100_spill] sm:$0xff] %v6992_v18  ;;  %8675 = vst [vmem:[#allocation101_spill] sm:$0xff] %v6994_v44  ;;  %3018 = vperm.xlu0 %4075, %v6570_v52   ;;  %v8679_v44 = vmov 9  }
 0x493   : > { %2822 = vperm.xlu1 %4070, %v6596_v6   ;;  %v6998_v58 = vpop.permute.xlu1 %2478  ;;  %v7000_v15 = vpop.permute.xlu0 %2618 }
 0x494   : > { %8676 = vst [vmem:[#allocation102_spill] sm:$0xff] %v6998_v58  ;;  %8677 = vst [vmem:[#allocation103_spill] sm:$0xff] %v7000_v15  ;;  %3026 = vperm.xlu0 %4075, %v6600_v20  }
 0x497   : > { %2830 = vperm.xlu1 %4070, %v6649_v50   ;;  %v7004_v2 = vpop.permute.xlu1 %2486  ;;  %v2627_v55 = vpop.permute.xlu0 %2626 }
 0x498   : > { %8678 = vst [vmem:[#allocation104_spill] sm:$0xff] %v7004_v2  ;;  %4076 = vset.pattern.permute.xlu0 %v8247_v41 }
 0x499   : > { %3070 = vperm.xlu0 %4076, %v6096_v46  }
 0x49b   : > { %4073 = vset.pattern.permute.xlu1 %v8679_v44  ;;  %v7009_v18 = vpop.permute.xlu1 %2494 }
 0x49c   : > { %8680 = vst [vmem:[#allocation105_spill] sm:$0xff] %v7009_v18  ;;  %2874 = vperm.xlu1 %4073, %v6128_v54   ;;  %v7012_v58 = vpop.permute.xlu0 %2670 }
 0x49d   : > { %8681 = vst [vmem:[#allocation106_spill] sm:$0xff] %v7012_v58  ;;  %3082 = vperm.xlu0 %4076, %v6235_v21   ;;  %v8250_v58 = vsub.s32 5, %v5190_v33 }
 0x49f   : > { %v7015_v15 = vpop.permute.xlu1 %2502 }
 0x4a0   : > { %8682 = vst [vmem:[#allocation107_spill] sm:$0xff] %v7015_v15  ;;  %2878 = vperm.xlu1 %4073, %v6216_v37   ;;  %v7018_v2 = vpop.permute.xlu0 %2682  ;;  %v8253_v15 = vsub.s32 6, %v5190_v33 }
 0x4a1   : > { %8683 = vst [vmem:[#allocation108_spill] sm:$0xff] %v7018_v2  ;;  %3090 = vperm.xlu0 %4076, %v6304_v42  }
 0x4a2   : > { %v7043_v2 = vrot.slane %v6790_v11, %v8253_v15 }
 0x4a3   : > { %v7021_v41 = vpop.permute.xlu1 %2510 }
 0x4a4   : > { %8684 = vst [vmem:[#allocation109_spill] sm:$0xff] %v7021_v41  ;;  %2886 = vperm.xlu1 %4073, %v6258_v60   ;;  %v7024_v44 = vpop.permute.xlu0 %2690  ;;  %v7038_v41 = vrot.slane %v6790_v11, %v8250_v58  ;;  %8688 = vst [vmem:[#allocation113_spill] sm:$0xff] %v7043_v2 }
 0x4a5   : > { %8685 = vst [vmem:[#allocation110_spill] sm:$0xff] %v7024_v44  ;;  %3098 = vperm.xlu0 %4076, %v6381_v47  }
 0x4a7   : > { %v7028_v18 = vpop.permute.xlu1 %2518 }
 0x4a8   : > { %8686 = vst [vmem:[#allocation111_spill] sm:$0xff] %v7028_v18  ;;  %2894 = vperm.xlu1 %4073, %v6379_v27   ;;  %v7032_v7 = vpop.permute.xlu0 %2698 }
 0x4a9   : > { %8687 = vst [vmem:[#allocation112_spill] sm:$0xff] %v7032_v7  ;;  %3106 = vperm.xlu0 %4076, %v6469_v61   ;;  %v2651_v7 = vmul.f32 %v7043_v2, %v2627_v55  ;;  %v8254_v55 = vmov 12  }
 0x4ab   : > { %v2527_v44 = vpop.permute.xlu1 %2526 }
 0x4ac   : > { %v2551_v18 = vmul.f32 %v7038_v41, %v2527_v44  ;;  %2902 = vperm.xlu1 %4073, %v6417_v53   ;;  %v7047_v36 = vpop.permute.xlu0 %2706 }
 0x4ad   : > { %8689 = vst [vmem:[#allocation114_spill] sm:$0xff] %v7047_v36  ;;  %3114 = vperm.xlu0 %4076, %v6531_v17  }
 0x4ae   : > { %v2567_v22 = vadd.f32 %v2551_v18, %v6938_v38 }
 0x4b0   : > { %2910 = vperm.xlu1 %4073, %v6526_v59   ;;  %v7053_v58 = vpop.permute.xlu1 %2570  ;;  %v7055_v34 = vpop.permute.xlu0 %2714  ;;  %v7057_v15 = vadd.f32 %v2651_v7, %v2567_v22  ;;  %v8696_v22 = vmov 10  }
 0x4b1   : > { %8690 = vst [vmem:[#allocation115_spill] sm:$0xff] %v7053_v58  ;;  %8691 = vst [vmem:[#allocation116_spill] sm:$0xff] %v7055_v34  ;;  %3122 = vperm.xlu0 %4076, %v6596_v6  }
 0x4b4   : > { %2918 = vperm.xlu1 %4073, %v6570_v52   ;;  %v7061_v44 = vpop.permute.xlu1 %2578  ;;  %v7063_v36 = vpop.permute.xlu0 %2722 }
 0x4b5   : > { %8692 = vst [vmem:[#allocation117_spill] sm:$0xff] %v7061_v44  ;;  %8693 = vst [vmem:[#allocation118_spill] sm:$0xff] %v7063_v36  ;;  %3130 = vperm.xlu0 %4076, %v6649_v50  }
 0x4b8   : > { %2926 = vperm.xlu1 %4073, %v6600_v20   ;;  %v7067_v38 = vpop.permute.xlu1 %2582  ;;  %v7069_v18 = vpop.permute.xlu0 %2730 }
 0x4b9   : > { %8694 = vst [vmem:[#allocation119_spill] sm:$0xff] %v7067_v38  ;;  %8695 = vst [vmem:[#allocation120_spill] sm:$0xff] %v7069_v18  ;;  %4079 = vset.pattern.permute.xlu0 %v8254_v55  ;;  %v8261_v38 = vmov 14  }
 0x4ba   : > { %3174 = vperm.xlu0 %4079, %v6128_v54  }
 0x4bc   : > { %4074 = vset.pattern.permute.xlu1 %v8696_v22  ;;  %v7074_v7 = vpop.permute.xlu1 %2590 }
 0x4bd   : > { %8697 = vst [vmem:[#allocation121_spill] sm:$0xff] %v7074_v7  ;;  %2970 = vperm.xlu1 %4074, %v6096_v46   ;;  %v7077_v44 = vpop.permute.xlu0 %2774 }
 0x4be   : > { %8698 = vst [vmem:[#allocation122_spill] sm:$0xff] %v7077_v44  ;;  %3186 = vperm.xlu0 %4079, %v6258_v60  }
 0x4c0   : > { %v7080_v58 = vpop.permute.xlu1 %2598 }
 0x4c1   : > { %8699 = vst [vmem:[#allocation123_spill] sm:$0xff] %v7080_v58  ;;  %2978 = vperm.xlu1 %4074, %v6216_v37   ;;  %v7083_v18 = vpop.permute.xlu0 %2786 }
 0x4c2   : > { %8700 = vst [vmem:[#allocation124_spill] sm:$0xff] %v7083_v18  ;;  %3194 = vperm.xlu0 %4079, %v6379_v27  }
 0x4c4   : > { %v7086_v55 = vpop.permute.xlu1 %2606 }
 0x4c5   : > { %8701 = vst [vmem:[#allocation125_spill] sm:$0xff] %v7086_v55  ;;  %2982 = vperm.xlu1 %4074, %v6235_v21   ;;  %v7089_v22 = vpop.permute.xlu0 %2794 }
 0x4c6   : > { %8702 = vst [vmem:[#allocation126_spill] sm:$0xff] %v7089_v22  ;;  %3202 = vperm.xlu0 %4079, %v6417_v53  }
 0x4c8   : > { %v7092_v36 = vpop.permute.xlu1 %2614 }
 0x4c9   : > { %8703 = vst [vmem:[#allocation127_spill] sm:$0xff] %v7092_v36  ;;  %2990 = vperm.xlu1 %4074, %v6304_v42   ;;  %v7095_v44 = vpop.permute.xlu0 %2802 }
 0x4ca   : > { %8704 = vst [vmem:[#allocation128_spill] sm:$0xff] %v7095_v44  ;;  %3210 = vperm.xlu0 %4079, %v6526_v59  }
 0x4cc   : > { %v7098_v34 = vpop.permute.xlu1 %2622 }
 0x4cd   : > { %8705 = vst [vmem:[#allocation129_spill] sm:$0xff] %v7098_v34  ;;  %2998 = vperm.xlu1 %4074, %v6381_v47   ;;  %v7101_v18 = vpop.permute.xlu0 %2810  ;;  %v8255_v34 = vmov 13  }
 0x4ce   : > { %8706 = vst [vmem:[#allocation130_spill] sm:$0xff] %v7101_v18  ;;  %3218 = vperm.xlu0 %4079, %v6570_v52  }
 0x4d0   : > { %v7104_v55 = vpop.permute.xlu1 %2630 }
 0x4d1   : > { %8707 = vst [vmem:[#allocation131_spill] sm:$0xff] %v7104_v55  ;;  %3006 = vperm.xlu1 %4074, %v6469_v61   ;;  %v7107_v22 = vpop.permute.xlu0 %2818 }
 0x4d2   : > { %8708 = vst [vmem:[#allocation132_spill] sm:$0xff] %v7107_v22  ;;  %3226 = vperm.xlu0 %4079, %v6600_v20  }
 0x4d5   : > { %3014 = vperm.xlu1 %4074, %v6531_v17   ;;  %v7111_v44 = vpop.permute.xlu1 %2674  ;;  %v2827_v36 = vpop.permute.xlu0 %2826 }
 0x4d6   : > { %8709 = vst [vmem:[#allocation133_spill] sm:$0xff] %v7111_v44  ;;  %4080 = vset.pattern.permute.xlu0 %v8255_v34  ;;  %v8714_v44 = vmov 11  }
 0x4d7   : > { %3270 = vperm.xlu0 %4080, %v6096_v46  }
 0x4d9   : > { %3022 = vperm.xlu1 %4074, %v6596_v6   ;;  %v7116_v18 = vpop.permute.xlu1 %2678 }
 0x4da   : > { %8710 = vst [vmem:[#allocation134_spill] sm:$0xff] %v7116_v18  ;;  %v7118_v55 = vpop.permute.xlu0 %2870 }
 0x4db   : > { %8711 = vst [vmem:[#allocation135_spill] sm:$0xff] %v7118_v55  ;;  %3282 = vperm.xlu0 %4080, %v6235_v21  }
 0x4dd   : > { %3030 = vperm.xlu1 %4074, %v6649_v50   ;;  %v7122_v22 = vpop.permute.xlu1 %2686 }
 0x4de   : > { %8712 = vst [vmem:[#allocation136_spill] sm:$0xff] %v7122_v22  ;;  %v7124_v58 = vpop.permute.xlu0 %2882 }
 0x4df   : > { %8713 = vst [vmem:[#allocation137_spill] sm:$0xff] %v7124_v58  ;;  %3290 = vperm.xlu0 %4080, %v6304_v42   ;;  %v7152_v58 = vld [vmem:[#allocation11 + $0x8] sm:$0xff] }
 0x4e1   : > { %4077 = vset.pattern.permute.xlu1 %v8714_v44  ;;  %v7128_v34 = vpop.permute.xlu1 %2694 }
 0x4e2   : > { %8715 = vst [vmem:[#allocation138_spill] sm:$0xff] %v7128_v34  ;;  %3074 = vperm.xlu1 %4077, %v6128_v54   ;;  %v7131_v7 = vpop.permute.xlu0 %2890  ;;  %v8260_v34 = vsub.s32 7, %v5190_v33 }
 0x4e3   : > { %8716 = vst [vmem:[#allocation139_spill] sm:$0xff] %v7131_v7  ;;  %3298 = vperm.xlu0 %4080, %v6381_v47  }
 0x4e5   : > { %v7134_v55 = vpop.permute.xlu1 %2702 }
 0x4e6   : > { %8717 = vst [vmem:[#allocation140_spill] sm:$0xff] %v7134_v55  ;;  %3078 = vperm.xlu1 %4077, %v6216_v37   ;;  %v7137_v18 = vpop.permute.xlu0 %2898 }
 0x4e7   : > { %8718 = vst [vmem:[#allocation141_spill] sm:$0xff] %v7137_v18  ;;  %3306 = vperm.xlu0 %4080, %v6469_v61   ;;  %v7162_v18 = vrot.slane %v7152_v58, %v8613_v29 }
 0x4e9   : > { %v7140_v22 = vpop.permute.xlu1 %2710 }
 0x4ea   : > { %8719 = vst [vmem:[#allocation142_spill] sm:$0xff] %v7140_v22  ;;  %3086 = vperm.xlu1 %4077, %v6258_v60   ;;  %v7143_v44 = vpop.permute.xlu0 %2906  ;;  %v7158_v22 = vrot.slane %v6790_v11, %v8260_v34 }
 0x4eb   : > { %8720 = vst [vmem:[#allocation143_spill] sm:$0xff] %v7143_v44  ;;  %3314 = vperm.xlu0 %4080, %v6531_v17  }
 0x4ed   : > { %v7147_v7 = vpop.permute.xlu1 %2718 }
 0x4ee   : > { %8721 = vst [vmem:[#allocation144_spill] sm:$0xff] %v7147_v7  ;;  %3094 = vperm.xlu1 %4077, %v6379_v27   ;;  %v7150_v55 = vpop.permute.xlu0 %2914 }
 0x4ef   : > { %8722 = vst [vmem:[#allocation145_spill] sm:$0xff] %v7150_v55  ;;  %3322 = vperm.xlu0 %4080, %v6596_v6   ;;  %v2851_v55 = vmul.f32 %v7162_v18, %v2827_v36 }
 0x4f1   : > { %v2727_v44 = vpop.permute.xlu1 %2726 }
 0x4f2   : > { %v2751_v7 = vmul.f32 %v7158_v22, %v2727_v44  ;;  %3102 = vperm.xlu1 %4077, %v6417_v53   ;;  %v7166_v2 = vpop.permute.xlu0 %2922 }
 0x4f3   : > { %8723 = vst [vmem:[#allocation146_spill] sm:$0xff] %v7166_v2  ;;  %3330 = vperm.xlu0 %4080, %v6649_v50  }
 0x4f4   : > { %v2767_v33 = vadd.f32 %v2751_v7, %v7057_v15 }
 0x4f6   : > { %3110 = vperm.xlu1 %4077, %v6526_v59   ;;  %v7172_v11 = vpop.permute.xlu1 %2770  ;;  %v7174_v34 = vpop.permute.xlu0 %2930  ;;  %v7176_v29 = vadd.f32 %v2851_v55, %v2767_v33  ;;  %v8729_v33 = vmov 12  }
 0x4f7   : > { %8724 = vst [vmem:[#allocation147_spill] sm:$0xff] %v7172_v11  ;;  %8725 = vst [vmem:[#allocation148_spill] sm:$0xff] %v7174_v34  ;;  %4083 = vset.pattern.permute.xlu0 %v8261_v38 }
 0x4f8   : > { %3374 = vperm.xlu0 %4083, %v6128_v54  }
 0x4fa   : > { %3118 = vperm.xlu1 %4077, %v6570_v52   ;;  %v7181_v44 = vpop.permute.xlu1 %2778 }
 0x4fb   : > { %8726 = vst [vmem:[#allocation149_spill] sm:$0xff] %v7181_v44  ;;  %v7183_v36 = vpop.permute.xlu0 %2974 }
 0x4fc   : > { %8727 = vst [vmem:[#allocation150_spill] sm:$0xff] %v7183_v36  ;;  %3386 = vperm.xlu0 %4083, %v6258_v60  }
 0x4fe   : > { %3126 = vperm.xlu1 %4077, %v6600_v20   ;;  %v7187_v15 = vpop.permute.xlu1 %2782 }
 0x4ff   : > { %v7189_v7 = vpop.permute.xlu0 %2986 }
 0x500   : > { %8728 = vst [vmem:[#allocation151_spill] sm:$0xff] %v7189_v7  ;;  %3394 = vperm.xlu0 %4083, %v6379_v27  }
 0x502   : > { %4078 = vset.pattern.permute.xlu1 %v8729_v33  ;;  %v7193_v55 = vpop.permute.xlu1 %2790 }
 0x503   : > { %3170 = vperm.xlu1 %4078, %v6096_v46   ;;  %v7196_v38 = vpop.permute.xlu0 %2994 }
 0x504   : > { %8730 = vst [vmem:[#allocation152_spill] sm:$0xff] %v7196_v38  ;;  %3402 = vperm.xlu0 %4083, %v6417_v53  }
 0x506   : > { %v7199_v44 = vpop.permute.xlu1 %2798 }
 0x507   : > { %3178 = vperm.xlu1 %4078, %v6216_v37   ;;  %v7202_v11 = vpop.permute.xlu0 %3002 }
 0x508   : > { %8731 = vst [vmem:[#allocation153_spill] sm:$0xff] %v7202_v11  ;;  %3410 = vperm.xlu0 %4083, %v6526_v59   ;;  %v7219_v11 = vrot.slane %v7152_v58, %v8617_v5 }
 0x50a   : > { %v7205_v7 = vpop.permute.xlu1 %2806 }
 0x50b   : > { %8732 = vst [vmem:[#allocation154_spill] sm:$0xff] %v7205_v7  ;;  %3182 = vperm.xlu1 %4078, %v6235_v21   ;;  %v7208_v33 = vpop.permute.xlu0 %3010  ;;  %v8262_v7 = vmov 15  }
 0x50c   : > { %8733 = vst [vmem:[#allocation155_spill] sm:$0xff] %v7208_v33  ;;  %3418 = vperm.xlu0 %4083, %v6570_v52  }
 0x50e   : > { %v7211_v36 = vpop.permute.xlu1 %2814 }
 0x50f   : > { %8734 = vst [vmem:[#allocation156_spill] sm:$0xff] %v7211_v36  ;;  %3190 = vperm.xlu1 %4078, %v6304_v42   ;;  %v7214_v38 = vpop.permute.xlu0 %3018 }
 0x510   : > { %8735 = vst [vmem:[#allocation157_spill] sm:$0xff] %v7214_v38  ;;  %3426 = vperm.xlu0 %4083, %v6600_v20  }
 0x512   : > { %v7221_v34 = vpop.permute.xlu1 %2822 }
 0x513   : > { %8736 = vst [vmem:[#allocation158_spill] sm:$0xff] %v7221_v34  ;;  %3198 = vperm.xlu1 %4078, %v6381_v47   ;;  %v3027_v2 = vpop.permute.xlu0 %3026 }
 0x514   : > { %v7225_v33 = vmul.f32 %v7219_v11, %v3027_v2  ;;  %4084 = vset.pattern.permute.xlu0 %v8262_v7 }
 0x515   : > { %3470 = vperm.xlu0 %4084, %v6096_v46  }
 0x516   : > { %v7229_v38 = vpop.permute.xlu1 %2830 }
 0x517   : > { %8737 = vst [vmem:[#allocation159_spill] sm:$0xff] %v7229_v38  ;;  %3206 = vperm.xlu1 %4078, %v6469_v61   ;;  %v2037_v38 = vmul.f32 %v6799_v43, %v6698_v57  ;;  %v2043_v57 = vmul.f32 %v6799_v43, %v6616_v23  ;;  %v2048_v23 = vmul.f32 %v6799_v43, %v6738_v49 }
 0x518   : > { %v7232_v36 = vpop.permute.xlu0 %3070  ;;  %v2146_v49 = vmul.f32 %v6803_v48, %v6728_v63 }
 0x519   : > { %8738 = vst [vmem:[#allocation160_spill] sm:$0xff] %v7232_v36  ;;  %3482 = vperm.xlu0 %4084, %v6235_v21  }
 0x51b   : > { %3214 = vperm.xlu1 %4078, %v6531_v17   ;;  %v7236_v5 = vpop.permute.xlu1 %2874 }
 0x51c   : > { %8739 = vst [vmem:[#allocation161_spill] sm:$0xff] %v7236_v5  ;;  %v7238_v34 = vpop.permute.xlu0 %3082  ;;  %v2038_v5 = vmul.f32 %v6799_v43, %v6612_v25  ;;  %v2045_v25 = vmul.f32 %v6799_v43, %v6618_v40  ;;  %v2047_v40 = vmul.f32 %v6799_v43, %v6620_v26  ;;  %v2141_v26 = vmul.f32 %v6803_v48, %v6767_v9 }
 0x51d   : > { %3490 = vperm.xlu0 %4084, %v6304_v42   ;;  %v2040_v42 = vmul.f32 %v6799_v43, %v6712_v12  ;;  %v2046_v12 = vmul.f32 %v6799_v43, %v6732_v16  ;;  %v2142_v16 = vmul.f32 %v6803_v48, %v6714_v51  ;;  %v2150_v51 = vmul.f32 %v6803_v48, %v6744_v8 }
 0x51e   : > { %v2147_v8 = vmul.f32 %v6803_v48, %v6784_v14 }
 0x51f   : > { %3222 = vperm.xlu1 %4078, %v6596_v6   ;;  %v7242_v2 = vpop.permute.xlu1 %2878 }
 0x520   : > { %8740 = vst [vmem:[#allocation162_spill] sm:$0xff] %v7242_v2  ;;  %v7244_v7 = vpop.permute.xlu0 %3090  ;;  %v2041_v2 = vmul.f32 %v6799_v43, %v6614_v31  ;;  %v2137_v31 = vmul.f32 %v6803_v48, %v6700_v39 }
 0x521   : > { %3498 = vperm.xlu0 %4084, %v6381_v47   ;;  %v2042_v47 = vmul.f32 %v6799_v43, %v6718_v3  ;;  %v2140_v3 = vmul.f32 %v6803_v48, %v6708_v62  ;;  %v2050_v62 = vmul.f32 %v6799_v43, %v6742_v56  ;;  %v2052_v56 = vmul.f32 %v6799_v43, %v6748_v4 }
 0x522   : > { %v2153_v63 = vadd.f32 %v2137_v31, %v2037_v38  ;;  %v2240_v4 = vmul.f32 %v6809_v32, %v6832_v1  ;;  %v2157_v38 = vadd.f32 %v2141_v26, %v2041_v2 }
 0x523   : > { %3230 = vperm.xlu1 %4078, %v6649_v50   ;;  %v7248_v36 = vpop.permute.xlu1 %2886  ;;  %v2156_v9 = vadd.f32 %v2140_v3, %v2040_v42  ;;  %v2238_v42 = vmul.f32 %v6809_v32, %v6757_v13  ;;  %v7325_v14 = vadd.f32 %v2150_v51, %v2050_v62 }
 0x524   : > { %8741 = vst [vmem:[#allocation163_spill] sm:$0xff] %v7248_v36  ;;  %v7258_v21 = vpop.permute.xlu0 %3098  ;;  %v2044_v36 = vmul.f32 %v6799_v43, %v6726_v28  ;;  %v2138_v28 = vmul.f32 %v6803_v48, %v6755_v30  ;;  %v2144_v30 = vmul.f32 %v6803_v48, %v6722_v24  ;;  %v2152_v24 = vmul.f32 %v6803_v48, %v6750_v45 }
 0x525   : > { %8742 = vst [vmem:[#allocation164_spill] sm:$0xff] %v7258_v21  ;;  %3506 = vperm.xlu0 %4084, %v6469_v61   ;;  %v2049_v61 = vmul.f32 %v6799_v43, %v6622_v35  ;;  %v8743_v21 = vmov 13   ;;  %v2256_v62 = vadd.f32 %v2240_v4, %v2156_v9  ;;  %v8756_v9 = vld [vmem:[#allocation69_spill] sm:$0xff] }
 0x526   : > { %v2160_v45 = vadd.f32 %v2144_v30, %v2044_v36  ;;  %v7327_v3 = vadd.f32 %v2152_v24, %v2052_v56  ;;  %v8748_v36 = vld [vmem:[#allocation26_spill] sm:$0xff]  ;;  %v8753_v56 = vld [vmem:[#allocation59_spill] sm:$0xff] }
 0x527   : > { %4081 = vset.pattern.permute.xlu1 %v8743_v21  ;;  %v7286_v39 = vpop.permute.xlu1 %2894  ;;  %v2148_v21 = vmul.f32 %v6803_v48, %v6736_v0  ;;  %v2145_v0 = vmul.f32 %v6803_v48, %v6778_v10  ;;  %v2162_v10 = vadd.f32 %v2146_v49, %v2046_v12  ;;  %v2241_v13 = vmul.f32 %v6809_v32, %v8748_v36  ;;  %v8750_v30 = vld [vmem:[#allocation30_spill] sm:$0xff] }
 0x528   : > { %8744 = vst [vmem:[#allocation165_spill] sm:$0xff] %v7286_v39  ;;  %3274 = vperm.xlu1 %4081, %v6128_v54   ;;  %v7297_v35 = vpop.permute.xlu0 %3106  ;;  %v2154_v39 = vadd.f32 %v2138_v28, %v2038_v5  ;;  %v2143_v54 = vmul.f32 %v6803_v48, %v6772_v19  ;;  %v8747_v5 = vld [vmem:[#allocation50_spill] sm:$0xff]  ;;  %v2243_v26 = vmul.f32 %v6809_v32, %v8750_v30 }
 0x529   : > { %8745 = vst [vmem:[#allocation166_spill] sm:$0xff] %v7297_v35  ;;  %3514 = vperm.xlu0 %4084, %v6531_v17   ;;  %v2158_v35 = vadd.f32 %v2142_v16, %v2042_v47  ;;  %v2149_v19 = vmul.f32 %v6803_v48, %v8747_v5  ;;  %v2164_v31 = vadd.f32 %v2148_v21, %v2048_v23  ;;  %v8749_v28 = vld [vmem:[#allocation74_spill] sm:$0xff]  ;;  %v8752_v21 = vld [vmem:[#allocation32_spill] sm:$0xff]  ;;  %v8758_v5 = vld [vmem:[#allocation49_spill] sm:$0xff] }
 0x52a   : > { %v7330_v1 = vadd.f32 %v2238_v42, %v2154_v39  ;;  %v2159_v2 = vadd.f32 %v2143_v54, %v2043_v57  ;;  %v2242_v16 = vmul.f32 %v6809_v32, %v8749_v28  ;;  %v2161_v12 = vadd.f32 %v2145_v0, %v2045_v25  ;;  %v8754_v57 = vld [vmem:[#allocation34_spill] sm:$0xff]  ;;  %v8761_v28 = vld [vmem:[#allocation33_spill] sm:$0xff] }
 0x52b   : > { %v7316_v43 = vpop.permute.xlu1 %2902  ;;  %v2163_v23 = vadd.f32 %v2147_v8, %v2047_v40  ;;  %v2245_v51 = vmul.f32 %v6809_v32, %v8752_v21  ;;  %v2165_v39 = vadd.f32 %v2149_v19, %v2049_v61  ;;  %v2237_v24 = vmul.f32 %v6809_v32, %v8753_v56  ;;  %v8755_v40 = vld [vmem:[#allocation75_spill] sm:$0xff]  ;;  %v8757_v8 = vld [vmem:[#allocation58_spill] sm:$0xff]  ;;  %v8762_v56 = vld [vmem:[#allocation76_spill] sm:$0xff] }
 0x52c   : > { %8746 = vst [vmem:[#allocation167_spill] sm:$0xff] %v7316_v43  ;;  %3278 = vperm.xlu1 %4081, %v6216_v37   ;;  %v7323_v47 = vpop.permute.xlu0 %3114  ;;  %v7344_v42 = vadd.f32 %v2241_v13, %v2157_v38  ;;  %v2247_v25 = vmul.f32 %v6809_v32, %v8754_v57  ;;  %v2340_v0 = vmul.f32 %v8756_v9, %v8755_v40  ;;  %v8759_v61 = vld [vmem:[#allocation87_spill] sm:$0xff]  ;;  %v8760_v38 = vld [vmem:[#allocation28_spill] sm:$0xff] }
 0x52d   : > { %3522 = vperm.xlu0 %4084, %v6596_v6   ;;  %v2244_v4 = vmul.f32 %v6809_v32, %v8757_v8  ;;  %v2440_v19 = vmul.f32 %v8759_v61, %v8758_v5  ;;  %v2249_v36 = vmul.f32 %v6809_v32, %v8760_v38  ;;  %v2258_v13 = vadd.f32 %v2242_v16, %v2158_v35  ;;  %v8766_v38 = vld [vmem:[#allocation88_spill] sm:$0xff]  ;;  %v8780_v43 = vld [vmem:[#allocation23_spill] sm:$0xff] }
 0x52e   : > { %v2246_v30 = vmul.f32 %v6809_v32, %v8761_v28  ;;  %v7362_v21 = vadd.f32 %v2243_v26, %v2159_v2  ;;  %v2248_v57 = vmul.f32 %v6809_v32, %v8762_v56  ;;  %v7366_v40 = vadd.f32 %v2245_v51, %v2161_v12  ;;  %v8767_v12 = vld [vmem:[#allocation36_spill] sm:$0xff] }
 0x52f   : > { %v7338_v49 = vpop.permute.xlu1 %2910  ;;  %v7368_v8 = vadd.f32 %v2247_v25, %v2163_v23  ;;  %v7372_v48 = vadd.f32 %v2237_v24, %v2153_v63  ;;  %v7376_v16 = vadd.f32 %v2249_v36, %v2165_v39  ;;  %v2442_v2 = vmul.f32 %v8759_v61, %v8766_v38  ;;  %v8769_v25 = vld [vmem:[#allocation38_spill] sm:$0xff]  ;;  %v8770_v36 = vld [vmem:[#allocation48_spill] sm:$0xff]  ;;  %v8771_v38 = vld [vmem:[#allocation53_spill] sm:$0xff] }
 0x530   : > { %8751 = vst [vmem:[#allocation50_spill] sm:$0xff] %v7338_v49  ;;  %3286 = vperm.xlu1 %4081, %v6258_v60   ;;  %v7347_v54 = vpop.permute.xlu0 %3122  ;;  %v2356_v60 = vadd.f32 %v2340_v0, %v2256_v62  ;;  %v8765_v49 = vld [vmem:[#allocation66_spill] sm:$0xff]  ;;  %v2344_v23 = vmul.f32 %v8756_v9, %v8767_v12  ;;  %v8768_v62 = vld [vmem:[#allocation31_spill] sm:$0xff]  ;;  %v2260_v63 = vadd.f32 %v2244_v4, %v2160_v45  ;;  %v8775_v4 = vld [vmem:[#allocation45_spill] sm:$0xff] }
 0x531   : > { %3530 = vperm.xlu0 %4084, %v6649_v50   ;;  %8764 = vst [vmem:[#allocation74_spill] sm:$0xff] %v7372_v48  ;;  %v2342_v35 = vmul.f32 %v8756_v9, %v8765_v49  ;;  %v2346_v51 = vmul.f32 %v8756_v9, %v8768_v62  ;;  %v2348_v49 = vmul.f32 %v8756_v9, %v8769_v25  ;;  %v8773_v48 = vld [vmem:[#allocation119_spill] sm:$0xff]  ;;  %v8774_v62 = vld [vmem:[#allocation113_spill] sm:$0xff] }
 0x532   : > { %v2456_v24 = vadd.f32 %v2440_v19, %v2356_v60  ;;  %v2262_v39 = vadd.f32 %v2246_v30, %v2162_v10  ;;  %v7391_v28 = vrot.slane %v7152_v58, %v8770_v36  ;;  %v2264_v56 = vadd.f32 %v2248_v57, %v2164_v31  ;;  %v8776_v10 = vld [vmem:[#allocation84_spill] sm:$0xff]  ;;  %v8777_v31 = vld [vmem:[#allocation35_spill] sm:$0xff] }
 0x533   : > { %v7370_v5 = vpop.permute.xlu1 %2918  ;;  %v2358_v0 = vadd.f32 %v2342_v35, %v2258_v13  ;;  %v2640_v45 = vmul.f32 %v8774_v62, %v8773_v48  ;;  %v2350_v19 = vmul.f32 %v8756_v9, %v8775_v4  ;;  %v2252_v13 = vmul.f32 %v6809_v32, %v8776_v10  ;;  %v8779_v50 = vld [vmem:[#allocation79_spill] sm:$0xff] }
 0x534   : > { %8763 = vst [vmem:[#allocation26_spill] sm:$0xff] %v7370_v5  ;;  %3294 = vperm.xlu1 %4081, %v6379_v27   ;;  %v7381_v26 = vpop.permute.xlu0 %3130  ;;  %v2250_v27 = vmul.f32 %v6809_v32, %v8771_v38  ;;  %v8772_v5 = vld [vmem:[#allocation85_spill] sm:$0xff]  ;;  %v2338_v57 = vmul.f32 %v8756_v9, %v8777_v31  ;;  %v2360_v25 = vadd.f32 %v2344_v23, %v2260_v63 }
 0x535   : > { %v2540_v12 = vmul.f32 %v7038_v41, %v8772_v5  ;;  %v2458_v30 = vadd.f32 %v2442_v2, %v2358_v0  ;;  %v8778_v5 = vld [vmem:[#allocation90_spill] sm:$0xff]  ;;  %v2352_v4 = vmul.f32 %v8756_v9, %v8779_v50  ;;  %v2542_v2 = vmul.f32 %v7038_v41, %v8780_v43  ;;  %v8781_v0 = vld [vmem:[#allocation121_spill] sm:$0xff] }
 0x536   : > { %v2444_v36 = vmul.f32 %v8759_v61, %v8778_v5  ;;  %v2266_v31 = vadd.f32 %v2250_v27, %v7325_v14  ;;  %v2362_v23 = vadd.f32 %v2346_v51, %v2262_v39  ;;  %v2364_v63 = vadd.f32 %v2348_v49, %v2264_v56  ;;  %v8783_v27 = vld [vmem:[#allocation108_spill] sm:$0xff]  ;;  %v8785_v56 = vld [vmem:[#allocation77_spill] sm:$0xff] }
 0x537   : > { %v2927_v60 = vpop.permute.xlu1 %2926  ;;  %v2556_v48 = vadd.f32 %v2540_v12, %v2456_v24  ;;  %v2268_v24 = vadd.f32 %v2252_v13, %v7327_v3  ;;  %v8782_v12 = vld [vmem:[#allocation92_spill] sm:$0xff]  ;;  %v2558_v32 = vadd.f32 %v2542_v2, %v2458_v30  ;;  %v2740_v14 = vmul.f32 %v7158_v22, %v8783_v27  ;;  %v8786_v13 = vld [vmem:[#allocation94_spill] sm:$0xff]  ;;  %v8789_v2 = vld [vmem:[#allocation67_spill] sm:$0xff] }
 0x538   : > { %v2951_v35 = vmul.f32 %v7391_v28, %v2927_v60  ;;  %3302 = vperm.xlu1 %4081, %v6417_v53   ;;  %v2642_v60 = vmul.f32 %v8774_v62, %v8781_v0  ;;  %v2446_v5 = vmul.f32 %v8759_v61, %v8782_v12  ;;  %v2840_v3 = vmul.f32 %v7162_v18, %v7187_v15  ;;  %v8784_v49 = vld [vmem:[#allocation80_spill] sm:$0xff]  ;;  %v8790_v12 = vld [vmem:[#allocation110_spill] sm:$0xff] }
 0x539   : > { %v7409_v38 = vpop.permute.xlu0 %3174  ;;  %v2656_v53 = vadd.f32 %v2640_v45, %v2556_v48  ;;  %v2438_v39 = vmul.f32 %v8759_v61, %v8784_v49  ;;  %v2341_v45 = vmul.f32 %v8756_v9, %v8785_v56  ;;  %v7447_v0 = vmul.f32 %v8759_v61, %v8789_v2 }
 0x53a   : > { %v2967_v10 = vadd.f32 %v2951_v35, %v7176_v29  ;;  %v2354_v29 = vadd.f32 %v2338_v57, %v7330_v1  ;;  %v2460_v35 = vadd.f32 %v2444_v36, %v2360_v25  ;;  %v2658_v30 = vadd.f32 %v2642_v60, %v2558_v32  ;;  %v8787_v1 = vld [vmem:[#allocation44_spill] sm:$0xff]  ;;  %v8788_v36 = vld [vmem:[#allocation123_spill] sm:$0xff] }
 0x53b   : > { %v2544_v57 = vmul.f32 %v7038_v41, %v8787_v1  ;;  %v2366_v25 = vadd.f32 %v2350_v19, %v2266_v31  ;;  %v2644_v48 = vmul.f32 %v8774_v62, %v8788_v36  ;;  %v2756_v15 = vadd.f32 %v2740_v14, %v2656_v53 }
 0x53c   : > { %3310 = vperm.xlu1 %4081, %v6526_v59   ;;  %v7423_v50 = vpop.permute.xlu1 %2970  ;;  %v7426_v43 = vadd.f32 %v7225_v33, %v2967_v10  ;;  %v2448_v33 = vmul.f32 %v8759_v61, %v8786_v13  ;;  %v2462_v10 = vadd.f32 %v2446_v5, %v2362_v23  ;;  %v2742_v27 = vmul.f32 %v7158_v22, %v8790_v12  ;;  %v8791_v23 = vld [vmem:[#allocation47_spill] sm:$0xff]  ;;  %v8793_v12 = vld [vmem:[#allocation125_spill] sm:$0xff] }
 0x53d   : > { %v7433_v51 = vpop.permute.xlu0 %3186  ;;  %v2842_v49 = vmul.f32 %v7162_v18, %v7193_v55  ;;  %v2368_v19 = vadd.f32 %v2352_v4, %v2268_v24  ;;  %v7456_v60 = vadd.f32 %v2438_v39, %v2354_v29  ;;  %v2560_v31 = vadd.f32 %v2544_v57, %v2460_v35  ;;  %v8792_v55 = vld [vmem:[#allocation52_spill] sm:$0xff]  ;;  %v8794_v24 = vld [vmem:[#allocation137_spill] sm:$0xff] }
 0x53e   : > { %v2856_v53 = vadd.f32 %v2840_v3, %v2756_v15  ;;  %v7461_v56 = vadd.f32 %v2341_v45, %v7344_v42  ;;  %v2546_v5 = vmul.f32 %v7038_v41, %v8791_v23  ;;  %v2464_v13 = vadd.f32 %v2448_v33, %v2364_v63  ;;  %v8795_v35 = vld [vmem:[#allocation96_spill] sm:$0xff]  ;;  %v8796_v45 = vld [vmem:[#allocation54_spill] sm:$0xff] }
 0x53f   : > { %v2758_v1 = vadd.f32 %v2742_v27, %v2658_v30  ;;  %v2548_v36 = vmul.f32 %v7038_v41, %v8792_v55  ;;  %v2660_v2 = vadd.f32 %v2644_v48, %v2560_v31  ;;  %v2646_v4 = vmul.f32 %v8774_v62, %v8793_v12  ;;  %v8797_v33 = vld [vmem:[#allocation112_spill] sm:$0xff]  ;;  %v8800_v55 = vld [vmem:[#allocation139_spill] sm:$0xff] }
 0x540   : > { %3318 = vperm.xlu1 %4081, %v6570_v52   ;;  %v7454_v32 = vpop.permute.xlu1 %2978  ;;  %v2940_v29 = vmul.f32 %v7391_v28, %v8794_v24  ;;  %v2450_v3 = vmul.f32 %v8759_v61, %v8795_v35  ;;  %v2562_v42 = vadd.f32 %v2546_v5, %v2462_v10  ;;  %v7475_v57 = vrot.slane %v7152_v58, %v8796_v45  ;;  %v8798_v10 = vld [vmem:[#allocation41_spill] sm:$0xff]  ;;  %v8799_v5 = vld [vmem:[#allocation127_spill] sm:$0xff]  ;;  %v8801_v45 = vld [vmem:[#allocation98_spill] sm:$0xff] }
 0x541   : > { %v7458_v14 = vpop.permute.xlu0 %3194  ;;  %v2858_v39 = vadd.f32 %v2842_v49, %v2758_v1  ;;  %v2744_v30 = vmul.f32 %v7158_v22, %v8797_v33  ;;  %v2844_v48 = vmul.f32 %v7162_v18, %v7199_v44  ;;  %v2343_v49 = vmul.f32 %v8756_v9, %v8798_v10  ;;  %v8802_v33 = vld [vmem:[#allocation114_spill] sm:$0xff] }
 0x542   : > { %v2956_v15 = vadd.f32 %v2940_v29, %v2856_v53  ;;  %v2564_v23 = vadd.f32 %v2548_v36, %v2464_v13  ;;  %v2648_v1 = vmul.f32 %v8774_v62, %v8799_v5  ;;  %v2942_v12 = vmul.f32 %v7391_v28, %v8800_v55  ;;  %v8804_v52 = vld [vmem:[#allocation154_spill] sm:$0xff] }
 0x543   : > { %v2662_v24 = vadd.f32 %v2646_v4, %v2562_v42  ;;  %v2760_v35 = vadd.f32 %v2744_v30, %v2660_v2  ;;  %v3140_v44 = vmul.f32 %v7475_v57, %v7238_v34  ;;  %v2466_v29 = vadd.f32 %v2450_v3, %v2366_v25  ;;  %v8805_v42 = vld [vmem:[#allocation89_spill] sm:$0xff] }
 0x544   : > { %3326 = vperm.xlu1 %4081, %v6600_v20   ;;  %v2983_v63 = vpop.permute.xlu1 %2982  ;;  %v2746_v10 = vmul.f32 %v7158_v22, %v8802_v33  ;;  %v8803_v13 = vmov 14   ;;  %v2958_v5 = vadd.f32 %v2942_v12, %v2858_v39  ;;  %v2846_v4 = vmul.f32 %v7162_v18, %v8804_v52  ;;  %v8806_v39 = vld [vmem:[#allocation129_spill] sm:$0xff] }
 0x545   : > { %v3040_v27 = vmul.f32 %v7219_v11, %v2983_v63  ;;  %v7483_v31 = vpop.permute.xlu0 %3202  ;;  %v2452_v63 = vmul.f32 %v8759_v61, %v8801_v45  ;;  %v2860_v20 = vadd.f32 %v2844_v48, %v2760_v35  ;;  %v7507_v3 = vadd.f32 %v2343_v49, %v7362_v21 }
 0x546   : > { %v2550_v30 = vmul.f32 %v7038_v41, %v8805_v42  ;;  %v2650_v48 = vmul.f32 %v8774_v62, %v8806_v39  ;;  %v2762_v55 = vadd.f32 %v2746_v10, %v2662_v24 }
 0x547   : > { %v3056_v53 = vadd.f32 %v3040_v27, %v2956_v15  ;;  %v2664_v15 = vadd.f32 %v2648_v1, %v2564_v23  ;;  %v8807_v27 = vld [vmem:[#allocation141_spill] sm:$0xff]  ;;  %v2468_v35 = vadd.f32 %v2452_v63, %v2368_v19  ;;  %v8811_v63 = vld [vmem:[#allocation100_spill] sm:$0xff] }
 0x548   : > { %4082 = vset.pattern.permute.xlu1 %v8803_v13  ;;  %v2991_v36 = vpop.permute.xlu1 %2990  ;;  %v2944_v52 = vmul.f32 %v7391_v28, %v8807_v27  ;;  %v2566_v49 = vadd.f32 %v2550_v30, %v2466_v29  ;;  %v2862_v1 = vadd.f32 %v2846_v4, %v2762_v55  ;;  %v2538_v29 = vmul.f32 %v7038_v41, %v8811_v63  ;;  %v8814_v30 = vld [vmem:[#allocation164_spill] sm:$0xff]  ;;  %v8819_v63 = vld [vmem:[#allocation61_spill] sm:$0xff] }
 0x549   : > { %v3042_v2 = vmul.f32 %v7219_v11, %v2991_v36  ;;  %3370 = vperm.xlu1 %4082, %v6096_v46   ;;  %v7502_v34 = vpop.permute.xlu0 %3210  ;;  %v7504_v25 = vadd.f32 %v3140_v44, %v3056_v53  ;;  %v3142_v46 = vmul.f32 %v7475_v57, %v7244_v7  ;;  %v8808_v44 = vld [vmem:[#allocation116_spill] sm:$0xff]  ;;  %v8810_v7 = vld [vmem:[#allocation91_spill] sm:$0xff]  ;;  %v3144_v39 = vmul.f32 %v7475_v57, %v8814_v30 }
 0x54a   : > { %v2748_v21 = vmul.f32 %v7158_v22, %v8808_v44  ;;  %v8809_v53 = vld [vmem:[#allocation156_spill] sm:$0xff]  ;;  %v2960_v33 = vadd.f32 %v2944_v52, %v2860_v20  ;;  %v2552_v19 = vmul.f32 %v7038_v41, %v8810_v7  ;;  %v2666_v36 = vadd.f32 %v2650_v48, %v2566_v49  ;;  %v8813_v20 = vld [vmem:[#allocation143_spill] sm:$0xff]  ;;  %v8815_v52 = vld [vmem:[#allocation118_spill] sm:$0xff] }
 0x54b   : > { %v3058_v12 = vadd.f32 %v3042_v2, %v2958_v5  ;;  %v2848_v45 = vmul.f32 %v7162_v18, %v8809_v53  ;;  %v8812_v2 = vld [vmem:[#allocation131_spill] sm:$0xff]  ;;  %v2946_v42 = vmul.f32 %v7391_v28, %v8813_v20  ;;  %v2750_v55 = vmul.f32 %v7158_v22, %v8815_v52  ;;  %v8816_v44 = vld [vmem:[#allocation46_spill] sm:$0xff] }
 0x54c   : > { %v2999_v23 = vpop.permute.xlu1 %2998  ;;  %v2764_v5 = vadd.f32 %v2748_v21, %v2664_v15  ;;  %v2652_v4 = vmul.f32 %v8774_v62, %v8812_v2  ;;  %v8817_v53 = vsub.s32 4, %v8816_v44  ;;  %v8818_v21 = vld [vmem:[#allocation158_spill] sm:$0xff] }
 0x54d   : > { %v3044_v13 = vmul.f32 %v7219_v11, %v2999_v23  ;;  %3378 = vperm.xlu1 %4082, %v6216_v37   ;;  %v7523_v24 = vpop.permute.xlu0 %3218  ;;  %v7525_v10 = vadd.f32 %v3142_v46, %v3058_v12  ;;  %v2568_v46 = vadd.f32 %v2552_v19, %v2468_v35  ;;  %v2850_v49 = vmul.f32 %v7162_v18, %v8818_v21  ;;  %v8820_v2 = vld [vmem:[#allocation78_spill] sm:$0xff]  ;;  %v8821_v19 = vld [vmem:[#allocation145_spill] sm:$0xff] }
 0x54e   : > { %v2864_v12 = vadd.f32 %v2848_v45, %v2764_v5  ;;  %v7542_v48 = vrot.slane %v7152_v58, %v8817_v53  ;;  %v2962_v23 = vadd.f32 %v2946_v42, %v2862_v1  ;;  %v2345_v35 = vmul.f32 %v8756_v9, %v8820_v2  ;;  %v8822_v42 = vld [vmem:[#allocation166_spill] sm:$0xff]  ;;  %v8823_v53 = vld [vmem:[#allocation93_spill] sm:$0xff] }
 0x54f   : > { %v3060_v27 = vadd.f32 %v3044_v13, %v2960_v33  ;;  %v2554_v45 = vadd.f32 %v2538_v29, %v7456_v60  ;;  %v2948_v58 = vmul.f32 %v7391_v28, %v8821_v19  ;;  %v2668_v20 = vadd.f32 %v2652_v4, %v2568_v46  ;;  %v8825_v21 = vld [vmem:[#allocation133_spill] sm:$0xff] }
 0x550   : > { %v3007_v15 = vpop.permute.xlu1 %3006  ;;  %v2766_v1 = vadd.f32 %v2750_v55, %v2666_v36  ;;  %v3146_v30 = vmul.f32 %v7475_v57, %v8822_v42  ;;  %v2738_v60 = vmul.f32 %v7158_v22, %v8825_v21  ;;  %v8827_v55 = vld [vmem:[#allocation70_spill] sm:$0xff]  ;;  %v2457_v19 = vadd.f32 %v7447_v0, %v7461_v56  ;;  %v8829_v42 = vld [vmem:[#allocation104_spill] sm:$0xff] }
 0x551   : > { %v3046_v7 = vmul.f32 %v7219_v11, %v3007_v15  ;;  %3382 = vperm.xlu1 %4082, %v8819_v63   ;;  %v3227_v33 = vpop.permute.xlu0 %3226  ;;  %v7548_v13 = vadd.f32 %v3144_v39, %v3060_v27  ;;  %v2638_v39 = vmul.f32 %v8774_v62, %v8823_v53  ;;  %v8824_v27 = vld [vmem:[#allocation120_spill] sm:$0xff]  ;;  %v2964_v63 = vadd.f32 %v2948_v58, %v2864_v12  ;;  %v8830_v58 = vld [vmem:[#allocation146_spill] sm:$0xff] }
 0x552   : > { %v7556_v5 = vmul.f32 %v7542_v48, %v3227_v33  ;;  %v2752_v15 = vmul.f32 %v7158_v22, %v8824_v27  ;;  %v2866_v2 = vadd.f32 %v2850_v49, %v2766_v1  ;;  %v8826_v33 = vld [vmem:[#allocation159_spill] sm:$0xff]  ;;  %v2541_v53 = vmul.f32 %v7038_v41, %v8829_v42  ;;  %v8832_v42 = vld [vmem:[#allocation72_spill] sm:$0xff] }
 0x553   : > { %v3062_v52 = vadd.f32 %v3046_v7, %v2962_v23  ;;  %v2852_v4 = vmul.f32 %v7162_v18, %v8826_v33  ;;  %v8828_v23 = vld [vmem:[#allocation40_spill] sm:$0xff]  ;;  %v2654_v12 = vadd.f32 %v2638_v39, %v2554_v45  ;;  %v2950_v1 = vmul.f32 %v7391_v28, %v8830_v58  ;;  %v8831_v33 = vld [vmem:[#allocation105_spill] sm:$0xff] }
 0x554   : > { %v3015_v29 = vpop.permute.xlu1 %3014  ;;  %v2443_v7 = vmul.f32 %v8759_v61, %v8828_v23  ;;  %v2768_v27 = vadd.f32 %v2752_v15, %v2668_v20  ;;  %v2361_v21 = vadd.f32 %v2345_v35, %v7366_v40  ;;  %v2543_v0 = vmul.f32 %v7038_v41, %v8831_v33  ;;  %v8833_v15 = vld [vmem:[#allocation83_spill] sm:$0xff]  ;;  %v8834_v40 = vld [vmem:[#allocation122_spill] sm:$0xff]  ;;  %v8835_v35 = vld [vmem:[#allocation161_spill] sm:$0xff] }
 0x555   : > { %v3048_v36 = vmul.f32 %v7219_v11, %v3015_v29  ;;  %3390 = vperm.xlu1 %4082, %v8827_v55   ;;  %v7570_v46 = vadd.f32 %v3146_v30, %v3062_v52  ;;  %v3148_v30 = vmul.f32 %v7475_v57, %v7323_v47  ;;  %v2754_v56 = vadd.f32 %v2738_v60, %v2654_v12 }
 0x556   : > { %v7578_v49 = vpop.permute.xlu0 %3270  ;;  %v2459_v29 = vadd.f32 %v2443_v7, %v7507_v3  ;;  %v2868_v45 = vadd.f32 %v2852_v4, %v2768_v27  ;;  %v2966_v39 = vadd.f32 %v2950_v1, %v2866_v2  ;;  %v2347_v47 = vmul.f32 %v8756_v9, %v8833_v15  ;;  %v8836_v4 = vld [vmem:[#allocation82_spill] sm:$0xff]  ;;  %v8837_v7 = vld [vmem:[#allocation148_spill] sm:$0xff]  ;;  %v8838_v27 = vld [vmem:[#allocation95_spill] sm:$0xff] }
 0x557   : > { %v3064_v52 = vadd.f32 %v3048_v36, %v2964_v63  ;;  %v2557_v63 = vadd.f32 %v2541_v53, %v2457_v19  ;;  %v2838_v3 = vmul.f32 %v7162_v18, %v8834_v40  ;;  %v2938_v36 = vmul.f32 %v7391_v28, %v8835_v35 }
 0x558   : > { %v3023_v55 = vpop.permute.xlu1 %3022  ;;  %v2445_v2 = vmul.f32 %v8759_v61, %v8836_v4  ;;  %v2952_v12 = vmul.f32 %v7391_v28, %v8837_v7  ;;  %v3150_v58 = vmul.f32 %v7475_v57, %v7347_v54  ;;  %v2641_v19 = vmul.f32 %v8774_v62, %v8838_v27  ;;  %v8841_v4 = vld [vmem:[#allocation57_spill] sm:$0xff]  ;;  %v8842_v27 = vld [vmem:[#allocation39_spill] sm:$0xff] }
 0x559   : > { %v3050_v23 = vmul.f32 %v7219_v11, %v3023_v55  ;;  %3398 = vperm.xlu1 %4082, %v8832_v42   ;;  %v7590_v20 = vadd.f32 %v3148_v30, %v3064_v52  ;;  %v2559_v53 = vadd.f32 %v2543_v0, %v2459_v29  ;;  %v8839_v30 = vld [vmem:[#allocation136_spill] sm:$0xff]  ;;  %v2854_v33 = vadd.f32 %v2838_v3, %v2754_v56  ;;  %v8840_v42 = vld [vmem:[#allocation107_spill] sm:$0xff]  ;;  %v8843_v3 = vld [vmem:[#allocation97_spill] sm:$0xff] }
 0x55a   : > { %v7598_v60 = vpop.permute.xlu0 %3282  ;;  %v2741_v52 = vmul.f32 %v7158_v22, %v8839_v30  ;;  %v2545_v15 = vmul.f32 %v7038_v41, %v8840_v42  ;;  %v2968_v40 = vadd.f32 %v2952_v12, %v2868_v45  ;;  %v2363_v54 = vadd.f32 %v2347_v47, %v7368_v8  ;;  %v8845_v8 = vld [vmem:[#allocation138_spill] sm:$0xff] }
 0x55b   : > { %v3066_v1 = vadd.f32 %v3050_v23, %v2966_v39  ;;  %v2461_v39 = vadd.f32 %v2445_v2, %v2361_v21  ;;  %v2657_v23 = vadd.f32 %v2641_v19, %v2557_v63  ;;  %v2954_v29 = vadd.f32 %v2938_v36, %v2854_v33  ;;  %v8846_v47 = vld [vmem:[#allocation150_spill] sm:$0xff]  ;;  %v8847_v2 = vld [vmem:[#allocation109_spill] sm:$0xff] }
 0x55c   : > { %v3031_v55 = vpop.permute.xlu1 %3030  ;;  %v2349_v56 = vmul.f32 %v8756_v9, %v8842_v27  ;;  %v2643_v30 = vmul.f32 %v8774_v62, %v8843_v3  ;;  %v3152_v45 = vmul.f32 %v7475_v57, %v7381_v26  ;;  %v2743_v21 = vmul.f32 %v7158_v22, %v8845_v8 }
 0x55d   : > { %v3052_v35 = vmul.f32 %v7219_v11, %v3031_v55  ;;  %3406 = vperm.xlu1 %4082, %v8841_v4   ;;  %v7614_v7 = vadd.f32 %v3150_v58, %v3066_v1  ;;  %v8844_v55 = vld [vmem:[#allocation68_spill] sm:$0xff]  ;;  %v2757_v1 = vadd.f32 %v2741_v52, %v2657_v23  ;;  %v3038_v63 = vmul.f32 %v7219_v11, %v8846_v47  ;;  %v8849_v52 = vld [vmem:[#allocation163_spill] sm:$0xff] }
 0x55e   : > { %v7617_v0 = vpop.permute.xlu0 %3290  ;;  %v2447_v58 = vmul.f32 %v8759_v61, %v8844_v55  ;;  %v2561_v36 = vadd.f32 %v2545_v15, %v2461_v39  ;;  %v2547_v19 = vmul.f32 %v7038_v41, %v8847_v2  ;;  %v2659_v33 = vadd.f32 %v2643_v30, %v2559_v53  ;;  %v8851_v39 = vld [vmem:[#allocation99_spill] sm:$0xff]  ;;  %v8852_v30 = vld [vmem:[#allocation140_spill] sm:$0xff] }
 0x55f   : > { %v3068_v12 = vadd.f32 %v3052_v35, %v2968_v40  ;;  %v8848_v40 = vld [vmem:[#allocation124_spill] sm:$0xff]  ;;  %v2941_v4 = vmul.f32 %v7391_v28, %v8849_v52  ;;  %v3054_v23 = vadd.f32 %v3038_v63, %v2954_v29  ;;  %v2365_v15 = vadd.f32 %v2349_v56, %v7376_v16  ;;  %v8853_v29 = vld [vmem:[#allocation81_spill] sm:$0xff] }
 0x560   : > { %v2841_v35 = vmul.f32 %v7162_v18, %v8848_v40  ;;  %v2645_v53 = vmul.f32 %v8774_v62, %v8851_v39  ;;  %v3238_v8 = vmul.f32 %v7542_v48, %v7409_v38  ;;  %v2449_v63 = vmul.f32 %v8759_v61, %v8853_v29  ;;  %v8860_v39 = vld [vmem:[#allocation60_spill] sm:$0xff] }
 0x561   : > { %3414 = vperm.xlu1 %4082, %v6531_v17   ;;  %v3075_v42 = vpop.permute.xlu1 %3074  ;;  %v7634_v26 = vadd.f32 %v3152_v45, %v3068_v12  ;;  %v2463_v17 = vadd.f32 %v2447_v58, %v2363_v54  ;;  %v2745_v45 = vmul.f32 %v7158_v22, %v8852_v30  ;;  %v2759_v12 = vadd.f32 %v2743_v21, %v2659_v33  ;;  %v8855_v58 = vld [vmem:[#allocation126_spill] sm:$0xff]  ;;  %v8856_v33 = vld [vmem:[#allocation165_spill] sm:$0xff]  ;;  %v8862_v30 = vld [vmem:[#allocation151_spill] sm:$0xff] }
 0x562   : > { %v3138_v27 = vmul.f32 %v7475_v57, %v3075_v42  ;;  %v7641_v3 = vpop.permute.xlu0 %3298  ;;  %v2857_v55 = vadd.f32 %v2841_v35, %v2757_v1  ;;  %v8854_v42 = vld [vmem:[#allocation111_spill] sm:$0xff]  ;;  %v2661_v56 = vadd.f32 %v2645_v53, %v2561_v36  ;;  %v2843_v21 = vmul.f32 %v7162_v18, %v8855_v58 }
 0x563   : > { %8850 = vst [vmem:[#allocation30_spill] sm:$0xff] %v7641_v3  ;;  %v2563_v2 = vadd.f32 %v2547_v19, %v2463_v17  ;;  %v2549_v16 = vmul.f32 %v7038_v41, %v8854_v42  ;;  %v2943_v38 = vmul.f32 %v7391_v28, %v8856_v33  ;;  %v8858_v19 = vld [vmem:[#allocation101_spill] sm:$0xff]  ;;  %v2337_v53 = vmul.f32 %v8756_v9, %v8860_v39  ;;  %v8861_v17 = vld [vmem:[#allocation51_spill] sm:$0xff] }
 0x564   : > { %v3154_v47 = vadd.f32 %v3138_v27, %v3054_v23  ;;  %v2957_v1 = vadd.f32 %v2941_v4, %v2857_v55  ;;  %v2647_v52 = vmul.f32 %v8774_v62, %v8858_v19  ;;  %v2465_v23 = vadd.f32 %v2449_v63, %v2365_v15  ;;  %v8859_v27 = vld [vmem:[#allocation142_spill] sm:$0xff]  ;;  %v8864_v15 = vld [vmem:[#allocation167_spill] sm:$0xff]  ;;  %v8865_v63 = vld [vmem:[#allocation64_spill] sm:$0xff] }
 0x565   : > { %3422 = vperm.xlu1 %4082, %v6596_v6   ;;  %v7655_v54 = vpop.permute.xlu1 %3078  ;;  %v2761_v36 = vadd.f32 %v2745_v45, %v2661_v56  ;;  %v2747_v6 = vmul.f32 %v7158_v22, %v8859_v27  ;;  %v2437_v4 = vmul.f32 %v8759_v61, %v8861_v17  ;;  %v3041_v55 = vmul.f32 %v7219_v11, %v8862_v30  ;;  %v8866_v33 = vld [vmem:[#allocation29_spill] sm:$0xff]  ;;  %v8867_v19 = vld [vmem:[#allocation55_spill] sm:$0xff] }
 0x566   : > { %v7661_v40 = vpop.permute.xlu0 %3306  ;;  %v7663_v35 = vadd.f32 %v3238_v8, %v3154_v47  ;;  %v2859_v29 = vadd.f32 %v2843_v21, %v2759_v12  ;;  %v2565_v8 = vadd.f32 %v2549_v16, %v2465_v23  ;;  %v8863_v47 = vld [vmem:[#allocation128_spill] sm:$0xff]  ;;  %v2663_v58 = vadd.f32 %v2647_v52, %v2563_v2  ;;  %v8869_v12 = vld [vmem:[#allocation74_spill] sm:$0xff]  ;;  %v8870_v21 = vld [vmem:[#allocation103_spill] sm:$0xff] }
 0x567   : > { %8857 = vst [vmem:[#allocation32_spill] sm:$0xff] %v7661_v40  ;;  %v2845_v42 = vmul.f32 %v7162_v18, %v8863_v47  ;;  %v2945_v45 = vmul.f32 %v7391_v28, %v8864_v15  ;;  %v2039_v27 = vmul.f32 %v8867_v19, %v8866_v33  ;;  %v3057_v17 = vadd.f32 %v3041_v55, %v2957_v1  ;;  %v8871_v47 = vld [vmem:[#allocation144_spill] sm:$0xff] }
 0x568   : > { %v2959_v39 = vadd.f32 %v2943_v38, %v2859_v29  ;;  %v2353_v16 = vadd.f32 %v2337_v53, %v8869_v12  ;;  %v2649_v2 = vmul.f32 %v8774_v62, %v8870_v21  ;;  %v2763_v52 = vadd.f32 %v2747_v6, %v2663_v58  ;;  %v8873_v29 = vld [vmem:[#allocation130_spill] sm:$0xff]  ;;  %v8876_v21 = vld [vmem:[#allocation25_spill] sm:$0xff] }
 0x569   : > { %3430 = vperm.xlu1 %4082, %v8865_v63   ;;  %v3087_v56 = vpop.permute.xlu1 %3086  ;;  %v2861_v23 = vadd.f32 %v2845_v42, %v2761_v36  ;;  %v2749_v15 = vmul.f32 %v7158_v22, %v8871_v47  ;;  %v8872_v63 = vld [vmem:[#allocation152_spill] sm:$0xff]  ;;  %v3241_v1 = vmul.f32 %v7542_v48, %v7433_v51  ;;  %v8874_v19 = vmov 15   ;;  %v8875_v36 = vld [vmem:[#allocation50_spill] sm:$0xff] }
 0x56a   : > { %v3141_v40 = vmul.f32 %v7475_v57, %v3087_v56  ;;  %v7683_v30 = vpop.permute.xlu0 %3314  ;;  %v3043_v3 = vmul.f32 %v7219_v11, %v8872_v63  ;;  %v2453_v55 = vadd.f32 %v2437_v4, %v2353_v16  ;;  %v2847_v56 = vmul.f32 %v7162_v18, %v8873_v29  ;;  %v8879_v4 = vld [vmem:[#allocation43_spill] sm:$0xff] }
 0x56b   : > { %8868 = vst [vmem:[#allocation59_spill] sm:$0xff] %v7683_v30  ;;  %v2665_v53 = vadd.f32 %v2649_v2, %v2565_v8  ;;  %v2961_v33 = vadd.f32 %v2945_v45, %v2861_v23  ;;  %v2947_v42 = vmul.f32 %v7391_v28, %v8875_v36  ;;  %v8880_v8 = vld [vmem:[#allocation86_spill] sm:$0xff]  ;;  %v8881_v16 = vld [vmem:[#allocation115_spill] sm:$0xff]  ;;  %v8882_v23 = vld [vmem:[#allocation153_spill] sm:$0xff]  ;;  %v3243_v29 = vmul.f32 %v7542_v48, %v7458_v14 }
 0x56c   : > { %v3157_v38 = vadd.f32 %v3141_v40, %v3057_v17  ;;  %v3059_v58 = vadd.f32 %v3043_v3, %v2959_v39  ;;  %v8878_v40 = vld [vmem:[#allocation62_spill] sm:$0xff]  ;;  %v2537_v45 = vmul.f32 %v7038_v41, %v8880_v8  ;;  %v2637_v2 = vmul.f32 %v8774_v62, %v8881_v16 }
 0x56d   : > { %4085 = vset.pattern.permute.xlu1 %v8874_v19  ;;  %v3095_v6 = vpop.permute.xlu1 %3094  ;;  %v2139_v17 = vmul.f32 %v8879_v4, %v8878_v40  ;;  %v3045_v3 = vmul.f32 %v7219_v11, %v8882_v23  ;;  %v2765_v39 = vadd.f32 %v2749_v15, %v2665_v53  ;;  %v2863_v63 = vadd.f32 %v2847_v56, %v2763_v52  ;;  %v8886_v16 = vld [vmem:[#allocation26_spill] sm:$0xff]  ;;  %v8887_v53 = vld [vmem:[#allocation37_spill] sm:$0xff] }
 0x56e   : > { %v3143_v12 = vmul.f32 %v7475_v57, %v3095_v6  ;;  %3474 = vperm.xlu1 %4085, %v8876_v21   ;;  %v7701_v47 = vpop.permute.xlu0 %3322  ;;  %v7703_v51 = vadd.f32 %v3241_v1, %v3157_v38  ;;  %v8883_v1 = vld [vmem:[#allocation65_spill] sm:$0xff]  ;;  %v8884_v38 = vld [vmem:[#allocation42_spill] sm:$0xff]  ;;  %v2553_v36 = vadd.f32 %v2537_v45, %v2453_v55  ;;  %v8885_v21 = vld [vmem:[#allocation132_spill] sm:$0xff]  ;;  %v2949_v30 = vmul.f32 %v7391_v28, %v8886_v16 }
 0x56f   : > { %8877 = vst [vmem:[#allocation34_spill] sm:$0xff] %v7701_v47  ;;  %v2239_v6 = vmul.f32 %v8884_v38, %v8883_v1  ;;  %v2849_v40 = vmul.f32 %v7162_v18, %v8885_v21  ;;  %v3061_v8 = vadd.f32 %v3045_v3, %v2961_v33  ;;  %v2963_v47 = vadd.f32 %v2947_v42, %v2863_v63  ;;  %v8889_v63 = vld [vmem:[#allocation56_spill] sm:$0xff]  ;;  %v8890_v1 = vld [vmem:[#allocation106_spill] sm:$0xff] }
 0x570   : > { %v3159_v19 = vadd.f32 %v3143_v12, %v3059_v58  ;;  %v2155_v56 = vadd.f32 %v2139_v17, %v2039_v27  ;;  %v2339_v55 = vmul.f32 %v8756_v9, %v8887_v53  ;;  %v2653_v58 = vadd.f32 %v2637_v2, %v2553_v36  ;;  %v8888_v12 = vld [vmem:[#allocation155_spill] sm:$0xff] }
 0x571   : > { %v3103_v4 = vpop.permute.xlu1 %3102  ;;  %v3047_v33 = vmul.f32 %v7219_v11, %v8888_v12  ;;  %v2865_v42 = vadd.f32 %v2849_v40, %v2765_v39  ;;  %v3245_v45 = vmul.f32 %v7542_v48, %v7483_v31  ;;  %v8891_v27 = vld [vmem:[#allocation147_spill] sm:$0xff] }
 0x572   : > { %v3145_v15 = vmul.f32 %v7475_v57, %v3103_v4  ;;  %3478 = vperm.xlu1 %4085, %v6216_v37   ;;  %v7723_v52 = vpop.permute.xlu0 %3330  ;;  %v7725_v14 = vadd.f32 %v3243_v29, %v3159_v19  ;;  %v2255_v3 = vadd.f32 %v2239_v6, %v2155_v56  ;;  %v2439_v37 = vmul.f32 %v8759_v61, %v8889_v63  ;;  %v8892_v39 = vld [vmem:[#allocation27_spill] sm:$0xff]  ;;  %v8893_v6 = vld [vmem:[#allocation102_spill] sm:$0xff]  ;;  %v8894_v4 = vld [vmem:[#allocation157_spill] sm:$0xff] }
 0x573   : > { %v2737_v29 = vmul.f32 %v7158_v22, %v8890_v1  ;;  %v2837_v17 = vmul.f32 %v7162_v18, %v8891_v27  ;;  %v2965_v2 = vadd.f32 %v2949_v30, %v2865_v42  ;;  %v3063_v19 = vadd.f32 %v3047_v33, %v2963_v47  ;;  %v8899_v27 = vld [vmem:[#allocation149_spill] sm:$0xff] }
 0x574   : > { %v3161_v23 = vadd.f32 %v3145_v15, %v3061_v8  ;;  %v2355_v31 = vadd.f32 %v2339_v55, %v2255_v3  ;;  %v2539_v21 = vmul.f32 %v7038_v41, %v8893_v6  ;;  %v3049_v8 = vmul.f32 %v7219_v11, %v8894_v4  ;;  %v8895_v15 = vld [vmem:[#allocation117_spill] sm:$0xff]  ;;  %v8896_v41 = vld [vmem:[#allocation71_spill] sm:$0xff]  ;;  %v8902_v4 = vld [vmem:[#allocation160_spill] sm:$0xff] }
 0x575   : > { %v3111_v9 = vpop.permute.xlu1 %3110  ;;  %v2753_v61 = vadd.f32 %v2737_v29, %v2653_v58  ;;  %v3247_v30 = vmul.f32 %v7542_v48, %v7502_v34  ;;  %v2639_v56 = vmul.f32 %v8774_v62, %v8895_v15  ;;  %v8898_v3 = vld [vmem:[#allocation135_spill] sm:$0xff]  ;;  %v3037_v63 = vmul.f32 %v7219_v11, %v7423_v50  ;;  %v8901_v50 = vld [vmem:[#allocation162_spill] sm:$0xff] }
 0x576   : > { %v3147_v38 = vmul.f32 %v7475_v57, %v3111_v9  ;;  %3486 = vperm.xlu1 %4085, %v8892_v39   ;;  %v7741_v36 = vadd.f32 %v3245_v45, %v3161_v23  ;;  %v2455_v16 = vadd.f32 %v2439_v37, %v2355_v31  ;;  %v3065_v55 = vadd.f32 %v3049_v8, %v2965_v2  ;;  %v8897_v45 = vld [vmem:[#allocation134_spill] sm:$0xff] }
 0x577   : > { %v7745_v40 = vpop.permute.xlu0 %3374  ;;  %v2853_v53 = vadd.f32 %v2837_v17, %v2753_v61  ;;  %v2739_v23 = vmul.f32 %v7158_v22, %v8897_v45  ;;  %v2937_v34 = vmul.f32 %v7391_v28, %v8898_v3  ;;  %v3249_v37 = vmul.f32 %v7542_v48, %v7523_v24 }
 0x578   : > { %v3163_v47 = vadd.f32 %v3147_v38, %v3063_v19  ;;  %v2555_v42 = vadd.f32 %v2539_v21, %v2455_v16  ;;  %v2839_v17 = vmul.f32 %v7162_v18, %v8899_v27  ;;  %v8900_v19 = vld [vmem:[#allocation24_spill] sm:$0xff]  ;;  %v2939_v31 = vmul.f32 %v7391_v28, %v8901_v50 }
 0x579   : > { %v3119_v12 = vpop.permute.xlu1 %3118  ;;  %v2953_v9 = vadd.f32 %v2937_v34, %v2853_v53  ;;  %v3137_v18 = vmul.f32 %v7475_v57, %v8902_v4  ;;  %v3039_v8 = vmul.f32 %v7219_v11, %v7454_v32  ;;  %v3139_v28 = vmul.f32 %v7475_v57, %v7655_v54 }
 0x57a   : > { %v3149_v33 = vmul.f32 %v7475_v57, %v3119_v12  ;;  %3494 = vperm.xlu1 %4085, %v8896_v41   ;;  %v7755_v58 = vadd.f32 %v3247_v30, %v3163_v47  ;;  %v2655_v29 = vadd.f32 %v2639_v56, %v2555_v42  ;;  %v8904_v41 = vld [vmem:[#allocation63_spill] sm:$0xff]  ;;  %v8905_v3 = vsub.s32 6, %v8816_v44 }
 0x57b   : > { %v7763_v62 = vpop.permute.xlu0 %3386  ;;  %v3053_v6 = vadd.f32 %v3037_v63, %v2953_v9 }
 0x57c   : > { %v3165_v1 = vadd.f32 %v3149_v33, %v3065_v55  ;;  %v2755_v39 = vadd.f32 %v2739_v23, %v2655_v29  ;;  %v8903_v55 = vld [vmem:[#allocation73_spill] sm:$0xff] }
 0x57d   : > { %v3127_v2 = vpop.permute.xlu1 %3126  ;;  %v3153_v15 = vadd.f32 %v3137_v18, %v3053_v6  ;;  %v4088_v23 = vld [vmem:[#allocation11 + $0x8] sm:$0xff] }
 0x57e   : > { %v3151_v22 = vmul.f32 %v7475_v57, %v3127_v2  ;;  %3502 = vperm.xlu1 %4085, %v8900_v19   ;;  %v7771_v38 = vadd.f32 %v3249_v37, %v3165_v1  ;;  %v2855_v61 = vadd.f32 %v2839_v17, %v2755_v39  ;;  %v7798_v34 = vrot.slane %v4088_v23, %v8905_v3 }
 0x57f   : > { %v3395_v21 = vpop.permute.xlu0 %3394 }
 0x580   : > { %v3167_v24 = vadd.f32 %v3151_v22, %v7426_v43  ;;  %v2955_v16 = vadd.f32 %v2939_v31, %v2855_v61 }
 0x582   : > { %3510 = vperm.xlu1 %4085, %v6526_v59   ;;  %v3171_v30 = vpop.permute.xlu1 %3170  ;;  %v7782_v47 = vadd.f32 %v7556_v5, %v3167_v24  ;;  %v3055_v53 = vadd.f32 %v3039_v8, %v2955_v16 }
 0x583   : > { %v3237_v43 = vmul.f32 %v7542_v48, %v3171_v30  ;;  %v3403_v56 = vpop.permute.xlu0 %3402 }
 0x584   : > { %v3155_v32 = vadd.f32 %v3139_v28, %v3055_v53 }
 0x585   : > { %v7787_v12 = vadd.f32 %v3237_v43, %v3153_v15 }
 0x586   : > { %3518 = vperm.xlu1 %4085, %v8903_v55   ;;  %v3179_v11 = vpop.permute.xlu1 %3178 }
 0x587   : > { %v3239_v59 = vmul.f32 %v7542_v48, %v3179_v11  ;;  %v3411_v33 = vpop.permute.xlu0 %3410 }
 0x589   : > { %v3255_v5 = vadd.f32 %v3239_v59, %v3155_v32 }
 0x58a   : > { %3526 = vperm.xlu1 %4085, %v8904_v41   ;;  %v3183_v42 = vpop.permute.xlu1 %3182 }
 0x58b   : > { %v3240_v57 = vmul.f32 %v7542_v48, %v3183_v42  ;;  %v3419_v54 = vpop.permute.xlu0 %3418  ;;  %v3445_v42 = vmul.f32 %v7798_v34, %v3403_v56 }
 0x58c   : > { %v3449_v56 = vmul.f32 %v7798_v34, %v3419_v54 }
 0x58d   : > { %v7794_v45 = vadd.f32 %v3240_v57, %v7504_v25 }
 0x58e   : > { %v3191_v63 = vpop.permute.xlu1 %3190 }
 0x58f   : > { %v3242_v37 = vmul.f32 %v7542_v48, %v3191_v63  ;;  %v3427_v1 = vpop.permute.xlu0 %3426  ;;  %v3447_v63 = vmul.f32 %v7798_v34, %v3411_v33 }
 0x590   : > { %v3451_v29 = vmul.f32 %v7798_v34, %v3427_v1 }
 0x591   : > { %v7803_v27 = vadd.f32 %v3242_v37, %v7525_v10 }
 0x592   : > { %v3199_v17 = vpop.permute.xlu1 %3198 }
 0x593   : > { %v3244_v9 = vmul.f32 %v7542_v48, %v3199_v17 }
 0x594   : > { %v3471_v37 = vpop.permute.xlu0 %3470 }
 0x595   : > { %v7807_v25 = vadd.f32 %v3244_v9, %v7548_v13 }
 0x596   : > { %v3207_v2 = vpop.permute.xlu1 %3206 }
 0x597   : > { %v3246_v22 = vmul.f32 %v7542_v48, %v3207_v2 }
 0x598   : > { %v3483_v2 = vpop.permute.xlu0 %3482 }
 0x599   : > { %v7811_v19 = vadd.f32 %v3246_v22, %v7570_v46  ;;  %v8906_v46 = vsub.s32 5, %v8816_v44 }
 0x59a   : > { %v3215_v39 = vpop.permute.xlu1 %3214 }
 0x59b   : > { %v3248_v50 = vmul.f32 %v7542_v48, %v3215_v39  ;;  %v7827_v18 = vrot.slane %v4088_v23, %v8906_v46 }
 0x59d   : > { %v7815_v31 = vadd.f32 %v3248_v50, %v7590_v20  ;;  %v3337_v39 = vmul.f32 %v7827_v18, %v7578_v49  ;;  %v8907_v50 = vsub.s32 7, %v8816_v44 }
 0x59e   : > { %v3223_v10 = vpop.permute.xlu1 %3222 }
 0x59f   : > { %v3250_v6 = vmul.f32 %v7542_v48, %v3223_v10  ;;  %v7868_v10 = vrot.slane %v4088_v23, %v8907_v50 }
 0x5a1   : > { %v7819_v24 = vadd.f32 %v3250_v6, %v7614_v7  ;;  %v3537_v49 = vmul.f32 %v7868_v10, %v3471_v37 }
 0x5a2   : > { %v3231_v13 = vpop.permute.xlu1 %3230 }
 0x5a3   : > { %v3252_v61 = vmul.f32 %v7542_v48, %v3231_v13 }
 0x5a5   : > { %v7823_v4 = vadd.f32 %v3252_v61, %v7634_v26  ;;  %v3441_v26 = vmul.f32 %v7798_v34, %v7763_v62  ;;  %v4089_v61 = vld [vmem:[%s4848_s1 + $0x18] sm:$0xff] }
 0x5a6   : > { %v3592_v46 = vrot.slane %v4089_v61, 1  ;;  %v7925_v61 = vld [vmem:[%s4848_s1 + $0x68] sm:$0xff] }
 0x5a7   : > { %v3275_v8 = vpop.permute.xlu1 %3274 }
 0x5a8   : > { %v3338_v20 = vmul.f32 %v7827_v18, %v3275_v8  ;;  %v7876_v8 = vld [vmem:[%s4848_s1 + $0x20] sm:$0xff] }
 0x5aa   : > { %v7831_v30 = vadd.f32 %v3338_v20, %v7663_v35  ;;  %v3443_v35 = vmul.f32 %v7798_v34, %v3395_v21  ;;  %v3491_v20 = vpop.permute.xlu0 %3490 }
 0x5ab   : > { %v3279_v16 = vpop.permute.xlu1 %3278 }
 0x5ac   : > { %v3339_v7 = vmul.f32 %v7827_v18, %v3279_v16  ;;  %v7881_v16 = vld [vmem:[#allocation13] ss:$0 sm:$0xff] }
 0x5ae   : > { %v7834_v28 = vadd.f32 %v3339_v7, %v3255_v5 }
 0x5af   : > { %v3287_v15 = vpop.permute.xlu1 %3286 }
 0x5b0   : > { %v3341_v48 = vmul.f32 %v7827_v18, %v3287_v15  ;;  %v3340_v15 = vmul.f32 %v7827_v18, %v7598_v60  ;;  %v3342_v60 = vmul.f32 %v7827_v18, %v7617_v0 }
 0x5b2   : > { %v3357_v43 = vadd.f32 %v3341_v48, %v7703_v51 }
 0x5b3   : > { %v3295_v53 = vpop.permute.xlu1 %3294 }
 0x5b4   : > { %v3343_v55 = vmul.f32 %v7827_v18, %v3295_v53  ;;  %v7841_v11 = vadd.f32 %v3441_v26, %v3357_v43  ;;  %v3499_v26 = vpop.permute.xlu0 %3498 }
 0x5b6   : > { %v3359_v32 = vadd.f32 %v3343_v55, %v7725_v14  ;;  %v3356_v55 = vadd.f32 %v3340_v15, %v7794_v45 }
 0x5b7   : > { %v3303_v59 = vpop.permute.xlu1 %3302 }
 0x5b8   : > { %v3345_v5 = vmul.f32 %v7827_v18, %v3303_v59  ;;  %v7846_v41 = vadd.f32 %v3443_v35, %v3359_v32  ;;  %v7897_v32 = vld [vmem:[%s4848_s1 + $0x38] sm:$0xff] }
 0x5b9   : > { %v3601_v59 = vrot.slane %v7897_v32, 1 }
 0x5ba   : > { %v3361_v62 = vadd.f32 %v3345_v5, %v7741_v36  ;;  %v4092_v5 = vld [vmem:[%s4848_s1 + $0x40] sm:$0xff] }
 0x5bb   : > { %v3311_v57 = vpop.permute.xlu1 %3310 }
 0x5bc   : > { %v3347_v51 = vmul.f32 %v7827_v18, %v3311_v57  ;;  %v7851_v3 = vadd.f32 %v3445_v42, %v3361_v62  ;;  %v3609_v42 = vrot.slane %v4092_v5, 1  ;;  %v3540_v62 = vmul.f32 %v7868_v10, %v3483_v2 }
 0x5be   : > { %v3363_v21 = vadd.f32 %v3347_v51, %v7755_v58 }
 0x5bf   : > { %v3319_v14 = vpop.permute.xlu1 %3318 }
 0x5c0   : > { %v3349_v1 = vmul.f32 %v7827_v18, %v3319_v14  ;;  %v7856_v17 = vadd.f32 %v3447_v63, %v3363_v21  ;;  %v3358_v63 = vadd.f32 %v3342_v60, %v7803_v27  ;;  %v4093_v21 = vld [vmem:[%s4848_s1 + $0x58] sm:$0xff]  ;;  %v3542_v27 = vmul.f32 %v7868_v10, %v3491_v20  ;;  %v4097_v60 = vld [vmem:[%s4848_s1 + $0x88] sm:$0xff] }
 0x5c1   : > { %v3610_v14 = vrot.slane %v4093_v21, 1 }
 0x5c2   : > { %v3365_v36 = vadd.f32 %v3349_v1, %v7771_v38  ;;  %v3353_v38 = vadd.f32 %v3337_v39, %v7787_v12  ;;  %v7911_v1 = vld [vmem:[%s4848_s1 + $0x50] sm:$0xff] }
 0x5c3   : > { %v3327_v9 = vpop.permute.xlu1 %3326  ;;  %v3602_v0 = vrot.slane %v7911_v1, 1  ;;  %v4109_v1 = vld [vmem:[%s4848_s1 + $0x78] sm:$0xff] }
 0x5c4   : > { %v3351_v22 = vmul.f32 %v7827_v18, %v3327_v9  ;;  %v7861_v33 = vadd.f32 %v3449_v56, %v3365_v36  ;;  %v3507_v56 = vpop.permute.xlu0 %3506  ;;  %v3617_v36 = vsel %vm1592_vm14, %v3601_v59, %v3609_v42  ;;  %v8908_v9 = vld [vmem:[#allocation30_spill] sm:$0xff] }
 0x5c5   : > { %v3344_v2 = vmul.f32 %v7827_v18, %v8908_v9  ;;  %v3618_v20 = vsel %vm1592_vm14, %v3602_v0, %v3610_v14 }
 0x5c6   : > { %v3367_v58 = vadd.f32 %v3351_v22, %v7782_v47  ;;  %v3600_v47 = vrot.slane %v7876_v8, 1 }
 0x5c8   : > { %v3371_v54 = vpop.permute.xlu1 %3370  ;;  %v7870_v6 = vadd.f32 %v3451_v29, %v3367_v58  ;;  %v3624_v7 = vsel %vm1592_vm14, %v3592_v46, %v3600_v47  ;;  %v3603_v46 = vrot.slane %v7925_v61, 1  ;;  %v4110_v61 = vld [vmem:[%s4848_s1 + $0x90] sm:$0xff] }
 0x5c9   : > { %v3437_v13 = vmul.f32 %v7798_v34, %v3371_v54 }
 0x5cb   : > { %v3453_v23 = vadd.f32 %v3437_v13, %v3353_v38  ;;  %v3360_v38 = vadd.f32 %v3344_v2, %v7807_v25  ;;  %v3544_v25 = vmul.f32 %v7868_v10, %v3499_v26 }
 0x5cc   : > { %v7883_v29 = vpop.permute.xlu1 %3378 }
 0x5cd   : > { %v3553_v12 = vadd.f32 %v3537_v49, %v3453_v23  ;;  %v4096_v49 = vld [vmem:[%s4848_s1 + $0x70] sm:$0xff] }
 0x5ce   : > { %v3611_v23 = vrot.slane %v4096_v49, 1 }
 0x5cf   : > { %v3576_v48 = vadd.f32 %v7881_v16, %v3553_v12  ;;  %v8909_v12 = vld [vmem:[#allocation32_spill] sm:$0xff] }
 0x5d0   : > { %v3383_v43 = vpop.permute.xlu1 %3382 }
 0x5d1   : > { %v3632_v53 = vadd.f32 %v3624_v7, %v3576_v48  ;;  %v3440_v35 = vmul.f32 %v7798_v34, %v3383_v43  ;;  %v3346_v7 = vmul.f32 %v7827_v18, %v8909_v12  ;;  %v3515_v43 = vpop.permute.xlu0 %3514 }
 0x5d3   : > { %3648 = vst [vmem:[%s7904_s0] sm:$0xff] %v3632_v53  ;;  %v3456_v57 = vadd.f32 %v3440_v35, %v3356_v55  ;;  %v3362_v5 = vadd.f32 %v3346_v7, %v7811_v19  ;;  %v3546_v19 = vmul.f32 %v7868_v10, %v3507_v56 }
 0x5d4   : > { %v3391_v45 = vpop.permute.xlu1 %3390 }
 0x5d5   : > { %v3556_v51 = vadd.f32 %v3540_v62, %v3456_v57  ;;  %v3442_v37 = vmul.f32 %v7798_v34, %v3391_v45  ;;  %v3612_v62 = vrot.slane %v4097_v60, 1  ;;  %v7942_v57 = vld [vmem:[%s4848_s1 + $0x80] sm:$0xff]  ;;  %v3619_v45 = vsel %vm1592_vm14, %v3603_v46, %v3611_v23 }
 0x5d6   : > { %v3604_v26 = vrot.slane %v7942_v57, 1  ;;  %v4111_v57 = vld [vmem:[%s4848_s1 + $0xa8] sm:$0xff] }
 0x5d7   : > { %v3579_v22 = vadd.f32 %v7881_v16, %v3556_v51  ;;  %v3458_v58 = vadd.f32 %v3442_v37, %v3358_v63  ;;  %v8910_v51 = vld [vmem:[#allocation59_spill] sm:$0xff] }
 0x5d8   : > { %v3399_v39 = vpop.permute.xlu1 %3398  ;;  %v3348_v63 = vmul.f32 %v7827_v18, %v8910_v51 }
 0x5d9   : > { %v3635_v50 = vadd.f32 %v3617_v36, %v3579_v22  ;;  %v3558_v54 = vadd.f32 %v3542_v27, %v3458_v58  ;;  %v3444_v13 = vmul.f32 %v7798_v34, %v3399_v39  ;;  %v7957_v22 = vld [vmem:[%s4848_s1 + $0x98] sm:$0xff]  ;;  %v4100_v39 = vld [vmem:[%s4848_s1 + $0xa0] sm:$0xff] }
 0x5da   : > { %v3364_v2 = vadd.f32 %v3348_v63, %v7815_v31  ;;  %v3605_v58 = vrot.slane %v7957_v22, 1  ;;  %v3613_v56 = vrot.slane %v4100_v39, 1  ;;  %v3548_v31 = vmul.f32 %v7868_v10, %v3515_v43 }
 0x5db   : > { %3651 = vst [vmem:[%s7904_s0 + $0x18] sm:$0xff] %v3635_v50  ;;  %v3581_v15 = vadd.f32 %v7881_v16, %v3558_v54  ;;  %v3460_v48 = vadd.f32 %v3444_v13, %v3360_v38  ;;  %v3523_v50 = vpop.permute.xlu0 %3522  ;;  %v3620_v54 = vsel %vm1592_vm14, %v3604_v26, %v3612_v62  ;;  %v8911_v38 = vld [vmem:[#allocation34_spill] sm:$0xff] }
 0x5dc   : > { %v3407_v53 = vpop.permute.xlu1 %3406  ;;  %v3350_v13 = vmul.f32 %v7827_v18, %v8911_v38 }
 0x5dd   : > { %v3637_v55 = vadd.f32 %v3618_v20, %v3581_v15  ;;  %v3560_v35 = vadd.f32 %v3544_v25, %v3460_v48  ;;  %v3446_v42 = vmul.f32 %v7798_v34, %v3407_v53  ;;  %v4101_v48 = vld [vmem:[%s4848_s1 + $0xb8] sm:$0xff] }
 0x5de   : > { %v3366_v25 = vadd.f32 %v3350_v13, %v7819_v24  ;;  %v3614_v53 = vrot.slane %v4101_v48, 1  ;;  %v3550_v24 = vmul.f32 %v7868_v10, %v3523_v50  ;;  %v4105_v50 = vld [vmem:[%s4848_s1 + $0x28] sm:$0xff]  ;;  %v3439_v13 = vmul.f32 %v7798_v34, %v7883_v29  ;;  %v4106_v29 = vld [vmem:[%s4848_s1 + $0x30] sm:$0xff] }
 0x5df   : > { %3653 = vst [vmem:[%s7904_s0 + $0x28] sm:$0xff] %v3637_v55  ;;  %v3583_v37 = vadd.f32 %v7881_v16, %v3560_v35  ;;  %v3462_v21 = vadd.f32 %v3446_v42, %v3362_v5  ;;  %v7974_v55 = vld [vmem:[%s4848_s1 + $0xb0] sm:$0xff]  ;;  %v3621_v35 = vsel %vm1592_vm14, %v3605_v58, %v3613_v56  ;;  %v3352_v5 = vmul.f32 %v7827_v18, %v7723_v52  ;;  %v3531_v62 = vpop.permute.xlu0 %3530 }
 0x5e0   : > { %v3415_v14 = vpop.permute.xlu1 %3414  ;;  %v3606_v43 = vrot.slane %v7974_v55, 1  ;;  %v4104_v18 = vld [vmem:[%s4848_s1 + $0xd0] sm:$0xff] }
 0x5e1   : > { %v3639_v36 = vadd.f32 %v3619_v45, %v3583_v37  ;;  %v3562_v9 = vadd.f32 %v3546_v19, %v3462_v21  ;;  %v3448_v27 = vmul.f32 %v7798_v34, %v3415_v14  ;;  %v3368_v19 = vadd.f32 %v3352_v5, %v7823_v4  ;;  %v7989_v21 = vld [vmem:[%s4848_s1 + $0xc8] sm:$0xff] }
 0x5e2   : > { %v3607_v52 = vrot.slane %v7989_v21, 1  ;;  %v3615_v14 = vrot.slane %v4104_v18, 1 }
 0x5e3   : > { %3655 = vst [vmem:[%s7904_s0 + $0x38] sm:$0xff] %v3639_v36  ;;  %v3585_v49 = vadd.f32 %v7881_v16, %v3562_v9  ;;  %v3464_v23 = vadd.f32 %v3448_v27, %v3364_v2  ;;  %v3622_v36 = vsel %vm1592_vm14, %v3606_v43, %v3614_v53  ;;  %v3552_v9 = vmul.f32 %v7868_v10, %v3531_v62 }
 0x5e4   : > { %v3423_v20 = vpop.permute.xlu1 %3422  ;;  %v3438_v27 = vmul.f32 %v7798_v34, %v7745_v40 }
 0x5e5   : > { %v3641_v12 = vadd.f32 %v3620_v54, %v3585_v49  ;;  %v3564_v7 = vadd.f32 %v3548_v31, %v3464_v23  ;;  %v3450_v15 = vmul.f32 %v7798_v34, %v3423_v20  ;;  %v3608_v54 = vrot.slane %v4105_v50, 1 }
 0x5e6   : > { %v3623_v31 = vsel %vm1592_vm14, %v3607_v52, %v3615_v14  ;;  %v3454_v49 = vadd.f32 %v3438_v27, %v7831_v30 }
 0x5e7   : > { %3657 = vst [vmem:[%s7904_s0 + $0x48] sm:$0xff] %v3641_v12  ;;  %v3587_v42 = vadd.f32 %v7881_v16, %v3564_v7  ;;  %v3466_v60 = vadd.f32 %v3450_v15, %v3366_v25  ;;  %v3593_v7 = vrot.slane %v4106_v29, 1  ;;  %v3455_v15 = vadd.f32 %v3439_v13, %v7834_v28 }
 0x5e8   : > { %v3431_v45 = vpop.permute.xlu1 %3430 }
 0x5e9   : > { %v3643_v51 = vadd.f32 %v3621_v35, %v3587_v42  ;;  %v3566_v63 = vadd.f32 %v3550_v24, %v3466_v60  ;;  %v3452_v37 = vmul.f32 %v7798_v34, %v3431_v45  ;;  %v3616_v34 = vsel %vm1592_vm14, %v3600_v47, %v3608_v54  ;;  %v4107_v47 = vld [vmem:[%s4848_s1 + $0x48] sm:$0xff]  ;;  %v4108_v45 = vld [vmem:[%s4848_s1 + $0x60] sm:$0xff] }
 0x5ea   : > { %v3625_v8 = vsel %vm1592_vm14, %v3593_v7, %v3601_v59  ;;  %v3594_v5 = vrot.slane %v4107_v47, 1  ;;  %v3595_v59 = vrot.slane %v4108_v45, 1 }
 0x5eb   : > { %3659 = vst [vmem:[%s7904_s0 + $0x58] sm:$0xff] %v3643_v51  ;;  %v3589_v2 = vadd.f32 %v7881_v16, %v3566_v63  ;;  %v3468_v4 = vadd.f32 %v3452_v37, %v3368_v19 }
 0x5ec   : > { %v3626_v32 = vsel %vm1592_vm14, %v3594_v5, %v3602_v0  ;;  %v3596_v0 = vrot.slane %v4109_v1, 1 }
 0x5ed   : > { %v3645_v39 = vadd.f32 %v3622_v36, %v3589_v2  ;;  %v3568_v56 = vadd.f32 %v3552_v9, %v3468_v4  ;;  %v3475_v38 = vpop.permute.xlu1 %3474 }
 0x5ee   : > { %v3538_v23 = vmul.f32 %v7868_v10, %v3475_v38 }
 0x5ef   : > { %3661 = vst [vmem:[%s7904_s0 + $0x68] sm:$0xff] %v3645_v39  ;;  %v3591_v40 = vadd.f32 %v7881_v16, %v3568_v56 }
 0x5f0   : > { %v3554_v20 = vadd.f32 %v3538_v23, %v3454_v49 }
 0x5f1   : > { %v3647_v12 = vadd.f32 %v3623_v31, %v3591_v40  ;;  %v3479_v25 = vpop.permute.xlu1 %3478 }
 0x5f2   : > { %v3577_v30 = vadd.f32 %v7881_v16, %v3554_v20  ;;  %v3539_v48 = vmul.f32 %v7868_v10, %v3479_v25 }
 0x5f3   : > { %3663 = vst [vmem:[%s7904_s0 + $0x78] sm:$0xff] %v3647_v12 }
 0x5f4   : > { %v3633_v53 = vadd.f32 %v3616_v34, %v3577_v30  ;;  %v3555_v35 = vadd.f32 %v3539_v48, %v3455_v15 }
 0x5f5   : > { %v3487_v24 = vpop.permute.xlu1 %3486 }
 0x5f6   : > { %3649 = vst [vmem:[%s7904_s0 + $0x8] sm:$0xff] %v3633_v53  ;;  %v3578_v28 = vadd.f32 %v7881_v16, %v3555_v35  ;;  %v3541_v42 = vmul.f32 %v7868_v10, %v3487_v24 }
 0x5f8   : > { %v3634_v60 = vadd.f32 %v3625_v8, %v3578_v28  ;;  %v3557_v62 = vadd.f32 %v3541_v42, %v7841_v11  ;;  %v3627_v11 = vsel %vm1592_vm14, %v3595_v59, %v3603_v46  ;;  %v3597_v46 = vrot.slane %v4110_v61, 1 }
 0x5f9   : > { %v3495_v51 = vpop.permute.xlu1 %3494 }
 0x5fa   : > { %3650 = vst [vmem:[%s7904_s0 + $0x10] sm:$0xff] %v3634_v60  ;;  %v3580_v63 = vadd.f32 %v7881_v16, %v3557_v62  ;;  %v3543_v19 = vmul.f32 %v7868_v10, %v3495_v51 }
 0x5fc   : > { %v3636_v37 = vadd.f32 %v3626_v32, %v3580_v63  ;;  %v3559_v18 = vadd.f32 %v3543_v19, %v7846_v41  ;;  %v3628_v41 = vsel %vm1592_vm14, %v3596_v0, %v3604_v26  ;;  %v3598_v26 = vrot.slane %v4111_v57, 1 }
 0x5fd   : > { %v3503_v14 = vpop.permute.xlu1 %3502 }
 0x5fe   : > { %3652 = vst [vmem:[%s7904_s0 + $0x20] sm:$0xff] %v3636_v37  ;;  %v3582_v36 = vadd.f32 %v7881_v16, %v3559_v18  ;;  %v3545_v9 = vmul.f32 %v7868_v10, %v3503_v14  ;;  %v3630_v22 = vsel %vm1592_vm14, %v3598_v26, %v3606_v43 }
 0x600   : > { %v3638_v2 = vadd.f32 %v3627_v11, %v3582_v36  ;;  %v3561_v4 = vadd.f32 %v3545_v9, %v7851_v3  ;;  %v3629_v3 = vsel %vm1592_vm14, %v3597_v46, %v3605_v58  ;;  %v4112_v58 = vld [vmem:[%s4848_s1 + $0xc0] sm:$0xff]  ;;  %s8095_s1 = scalar_lea.sflag [#allocation4], %s387_s7 }
 0x601   : > { %v3511_v27 = vpop.permute.xlu1 %3510  ;;  %v3599_v23 = vrot.slane %v4112_v58, 1 }
 0x602   : > { %3654 = vst [vmem:[%s7904_s0 + $0x30] sm:$0xff] %v3638_v2  ;;  %v3584_v39 = vadd.f32 %v7881_v16, %v3561_v4  ;;  %v3547_v56 = vmul.f32 %v7868_v10, %v3511_v27 }
 0x603   : > { %v3631_v55 = vsel %vm1592_vm14, %v3599_v23, %v3607_v52 }
 0x604   : > { %v3640_v50 = vadd.f32 %v3628_v41, %v3584_v39  ;;  %v3563_v54 = vadd.f32 %v3547_v56, %v7856_v17 }
 0x605   : > { %v3519_v38 = vpop.permute.xlu1 %3518 }
 0x606   : > { %3656 = vst [vmem:[%s7904_s0 + $0x40] sm:$0xff] %v3640_v50  ;;  %v3586_v13 = vadd.f32 %v7881_v16, %v3563_v54  ;;  %v3549_v31 = vmul.f32 %v7868_v10, %v3519_v38 }
 0x608   : > { %v3642_v49 = vadd.f32 %v3629_v3, %v3586_v13  ;;  %v3565_v17 = vadd.f32 %v3549_v31, %v7861_v33 }
 0x609   : > { %v3527_v40 = vpop.permute.xlu1 %3526 }
 0x60a   : > { %3658 = vst [vmem:[%s7904_s0 + $0x50] sm:$0xff] %v3642_v49  ;;  %v3588_v20 = vadd.f32 %v7881_v16, %v3565_v17  ;;  %v3551_v12 = vmul.f32 %v7868_v10, %v3527_v40 }
 0x60c   : > { %v3644_v34 = vadd.f32 %v3630_v22, %v3588_v20  ;;  %v3567_v33 = vadd.f32 %v3551_v12, %v7870_v6 }
 0x60e   : > { %3660 = vst [vmem:[%s7904_s0 + $0x60] sm:$0xff] %v3644_v34  ;;  %v3590_v43 = vadd.f32 %v7881_v16, %v3567_v33 }
 0x610   : > { %v3646_v10 = vadd.f32 %v3631_v55, %v3590_v43 }
 0x612   : > { %3662 = vst [vmem:[%s7904_s0 + $0x70] sm:$0xff] %v3646_v10 }
 0x613   : > { %4324 = shalt.err (!%p4321_p4)
}
 0x614   : > { %s4325_s7 = scalar_lea.hbm %s8088_s22, 2048  ;;  %s4329_s14 = scalar_lea.hbm %s8913_s2, 8192 }
 0x615   : > { %p4326_p2 = scmp.ne.s32.totalorder %s8088_s22, %s4325_s7  ;;  %p4330_p0 = scmp.lt.u32.totalorder %s8088_s22, %s8913_s2 }
 0x616   : > { %p4331_p1 = scmp.lt.u32.totalorder %s4329_s14, %s4325_s7  ;;  %p4333_p10 = scmp.lt.u32.totalorder %s4325_s7, %s8088_s22 }
 0x617   : > { %p4327_p12 = pnand %p4326_p2, %p8914_p7 }
 0x618   : > { %p4332_p8 = por %p4331_p1, %p4330_p0 }
 0x619   : > { %p4328_p13 = pneg %p4327_p12 }
 0x61a   : > { %p4334_p6 = por %p4333_p10, %p4332_p8 }
 0x61c   : > { %p4335_p11 = pnand %p4334_p6, %p4328_p13 }
 0x61e   : > { %4338 = shalt.err (!%p4335_p11)
}
 0x61f   : > { %s4475_s18 = smov 128   ;;  %s4476_s13 = smov 8  }
 0x620   : > { %3888 = dma.vmem_to_hbm [thread:$0]  (%p8914_p7), %s8090_s27, 2048, %s8088_s22, %s8095_s1, %s4475_s18, %s4475_s18, %s4476_s13  }
 0x621 PF: > { %p3930_p3 = scmp.ge.s32.totalorder %s4445_s11, 2  ;;  %s3696_s23 = sand.u32 1, %s4405_s24  }
 0x622   : > { %p8915_p5 = scmp.ne.s32.totalorder %s8302_s12, 0  ;;  %s3697_s5 = scalar_lea.sflag [#allocation4], %s3696_s23 }
 0x624   : > { %p3914_p9 = pnand %p3930_p3, %p8915_p5 }
 0x626   : > { %4400 = dma.done.wait (!%p3914_p9), %s3697_s5, 2048  }
 0x627   : > { %4402 = vsyncadd (!%p3914_p9), %s3697_s5, 4294965248  ;;  %s26_s11 = sadd.s32 1, %s4445_s11   ;;  %s8916_s24 = smov %s4409_s25 }
 0x628   : > { %p23_p4 = scmp.ge.s32.totalorder %s26_s11, 6   ;;  %s8917_s25 = smov %s4413_s26 }
 0x629   : > { %s8918_s26 = smov %s4773_s3  ;;  %s8919_s27 = smov %s4421_s28 }
 0x62a   : > { %s8920_s28 = smov %s4425_s29  ;;  %s8921_s29 = smov %s4770_s16 }
 0x62b   : > { %s8922_s30 = smov %s4437_s9  ;;  %s8923_s8 = smov %s4441_s10 }
 0x62c   : > { %s8924_s9 = smov %s8927_s20  ;;  %s8925_s10 = smov %s8931_s17 }
 0x62d   :  { %25 = sbr.rel (!%p23_p4) target bundleno = 20 (0x14), region = 118 }
 0x634   :  { %3702 = vsyncpa [#allocation3], 1 }
 0x635   :  { %3704 = vsyncpa [#allocation3 + $0x1], 1 }
 0x636   :  { %3705 = vsyncpa [#allocation6], 1 }
 0x637   :  { %3706 = vsyncpa [#allocation9], 1 }
 0x638   :  { %3707 = vsyncpa [#allocation12], 1 }
 0x639   :  { %3708 = vsyncpa [#allocation4], 1 }
 0x63a   :  { %3710 = vsyncpa [#allocation4 + $0x1], 1 }

</bundles_post_ra>
